<compile_context>
chip_gen: v7x
topology: tpu7x:2x2x1
jax: 0.10.0
libtpu: 0.0.40
codegen_flags: <defaults>
</compile_context>

<pallas_src>
import math

import jax
import jax.numpy as jnp
from jax.experimental import pallas as pl
from jax.experimental.pallas import tpu as pltpu


_BLOCK_PARAM_NAMES = ("wq", "wk", "wv", "wo",
                      "ln1_g", "ln1_b", "ln2_g", "ln2_b",
                      "w1", "b1", "w2", "b2")


# ----------------------------------------------------------------------------
# In-kernel building blocks (traced inside the single pallas_call body)
# ----------------------------------------------------------------------------
def _layernorm(v, g, b, eps=1e-5):
    mu = jnp.mean(v, axis=-1, keepdims=True)
    var = jnp.mean(jnp.square(v - mu), axis=-1, keepdims=True)
    return (v - mu) * jax.lax.rsqrt(var + eps) * g + b


def _transformer_block(x, p):
    """Pre-LN single-head attention + GELU MLP.  x: [B, T, H] float32.
    p: name -> VMEM ref (matmul weights bf16, LN params / biases f32)."""
    B, T, H = x.shape
    f32, bf16 = jnp.float32, jnp.bfloat16

    # --- attention sub-block ---
    xn = _layernorm(x, p["ln1_g"][...], p["ln1_b"][...])
    xn2d = xn.reshape(B * T, H).astype(bf16)
    q = jnp.dot(xn2d, p["wq"][...], preferred_element_type=f32)
    k = jnp.dot(xn2d, p["wk"][...], preferred_element_type=f32)
    v = jnp.dot(xn2d, p["wv"][...], preferred_element_type=f32)
    q = (q * (1.0 / math.sqrt(H))).reshape(B, T, H).astype(bf16)  # scale folded into q
    k = k.reshape(B, T, H).astype(bf16)
    v = v.reshape(B, T, H).astype(bf16)
    s = jnp.einsum("bqd,bkd->bqk", q, k, preferred_element_type=f32)
    s = s - jnp.max(s, axis=-1, keepdims=True)
    e = jnp.exp(s)
    prob = e * pl.reciprocal(jnp.sum(e, axis=-1, keepdims=True), approx=True)
    ctx = jnp.einsum("bqk,bkd->bqd", prob.astype(bf16), v, preferred_element_type=f32)
    attn = jnp.dot(ctx.reshape(B * T, H).astype(bf16), p["wo"][...],
                   preferred_element_type=f32)
    x = x + attn.reshape(B, T, H)

    # --- MLP sub-block ---
    xn2 = _layernorm(x, p["ln2_g"][...], p["ln2_b"][...])
    h = jnp.dot(xn2.reshape(B * T, H).astype(bf16), p["w1"][...],
                preferred_element_type=f32) + p["b1"][...]
    # TODO(synk): PyTorch nn.GELU default is exact erf; tanh approx keeps it on the EUP.
    h = jax.nn.gelu(h, approximate=True)
    mlp = jnp.dot(h.astype(bf16), p["w2"][...], preferred_element_type=f32) + p["b2"][...]
    return x + mlp.reshape(B, T, H)


# ----------------------------------------------------------------------------
# Full forward pass: one pallas_call, grid=() (everything resident in VMEM)
# ----------------------------------------------------------------------------
def deep_earth_forward(params, inputs, mask_config=None):
    names = list(inputs.keys())
    B = next(iter(inputs.values())).shape[0]
    d_tok = params["mask_token"].shape[-1]
    hidden = params["cls_token"].shape[-1]
    n_tok = {n: int(inputs[n].shape[1]) for n in names}
    seq_len = 1 + sum(n_tok.values())
    masked = {n: bool(mask_config and n in mask_config and mask_config[n] > 0.0)
              for n in names}
    decode_names = list(names) if mask_config else []

    # ---- flat operand list (kernel unpacks in exactly this order) ----
    args = []
    for n in names:                              # encoder inputs/weights: unmasked only
        if not masked[n]:
            args += [inputs[n].astype(jnp.bfloat16),
                     params["encoder"][n]["w"], params["encoder"][n]["b"]]
    for n in names:                              # fusion projections
        args += [params["fusion_proj"][n]["w"], params["fusion_proj"][n]["b"]]
    for n in decode_names:                       # decoders
        args += [params["decoders"][n]["w"], params["decoders"][n]["b"]]
    args += [params["mask_token"], params["cls_token"]]
    for blk in ("fusion_block", "simulator_block"):
        args += [params[blk][k] for k in _BLOCK_PARAM_NAMES]

    def kernel(*refs):
        it = iter(refs)
        enc = {}
        for n in names:
            if not masked[n]:
                enc[n] = (next(it), next(it), next(it))          # x, w, b
        proj = {n: (next(it), next(it)) for n in names}          # w, b
        dec = {n: (next(it), next(it)) for n in decode_names}    # w, b
        mask_tok_ref = next(it)
        cls_ref = next(it)
        blocks = [dict(zip(_BLOCK_PARAM_NAMES, (next(it) for _ in _BLOCK_PARAM_NAMES)))
                  for _ in range(2)]
        sim_ref = next(it)                                       # [B, T, H] output
        rec_refs = {n: next(it) for n in decode_names}           # per-modality outputs
        fused = next(it)                                         # VMEM scratch [B, T, H]

        # 1+2) universal encoder + masking, 3a) fusion projection + CLS prepend.
        fused[:, 0:1, :] = jnp.broadcast_to(cls_ref[...], (B, 1, hidden))
        off = 1
        for n in names:
            Nm = n_tok[n]
            if masked[n]:
                # Fully-masked modality: skip encoder matmul, broadcast mask token.
                tok = jnp.broadcast_to(
                    mask_tok_ref[...].reshape(1, d_tok).astype(jnp.bfloat16),
                    (B * Nm, d_tok))
            else:
                x_ref, ew, eb = enc[n]
                t = jnp.dot(x_ref[...].reshape(B * Nm, -1), ew[...],
                            preferred_element_type=jnp.float32) + eb[...]
                tok = t.astype(jnp.bfloat16)
            pw, pb = proj[n]
            pj = jnp.dot(tok, pw[...], preferred_element_type=jnp.float32) + pb[...]
            fused[:, off:off + Nm, :] = pj.reshape(B, Nm, hidden)
            off += Nm

        # 3b) cross-modal fusion block + 4) inductive simulator block,
        #     fused back-to-back so the activation never leaves VMEM.
        x = fused[...]
        for bp in blocks:
            x = _transformer_block(x, bp)
        sim_ref[...] = x
        fused[...] = x

        # 5) per-modality decoders (start_idx == 1 for every modality, as in
        #    the reference orchestrator).
        for n in decode_names:
            Nm = n_tok[n]
            seg = fused[:, 1:1 + Nm, :].reshape(B * Nm, hidden)
            dw, db = dec[n]
            r = jnp.dot(seg.astype(jnp.bfloat16), dw[...],
                        preferred_element_type=jnp.float32) + db[...]
            rec_refs[n][...] = r.reshape(B, Nm, d_tok)

    out_shape = [jax.ShapeDtypeStruct((B, seq_len, hidden), jnp.float32)]
    out_shape += [jax.ShapeDtypeStruct((B, n_tok[n], d_tok), jnp.float32)
                  for n in decode_names]

    outs = pl.pallas_call(
        kernel,
        out_shape=tuple(out_shape),
        scratch_shapes=[pltpu.VMEM((B, seq_len, hidden), jnp.float32)],
    )(*args)

    recon = {n: outs[1 + i] for i, n in enumerate(decode_names)}
    return {"reconstructions": recon}


# ----------------------------------------------------------------------------
# Parameter construction (deterministic, in-script; weights bf16 for the MXU)
# ----------------------------------------------------------------------------
def _init_linear(key, din, dout):
    kw, kb = jax.random.split(key)
    bound = 1.0 / math.sqrt(din)
    return {
        "w": jax.random.uniform(kw, (din, dout), jnp.float32, -bound, bound
                                ).astype(jnp.bfloat16),
        "b": jax.random.uniform(kb, (1, dout), jnp.float32, -bound, bound),
    }


def _init_block(key, h, h4):
    ks = jax.random.split(key, 6)
    nrm = lambda k, shp: (jax.random.normal(k, shp, jnp.float32) * 0.02
                          ).astype(jnp.bfloat16)
    return {
        "wq": nrm(ks[0], (h, h)), "wk": nrm(ks[1], (h, h)),
        "wv": nrm(ks[2], (h, h)), "wo": nrm(ks[3], (h, h)),
        "ln1_g": jnp.ones((1, h), jnp.float32), "ln1_b": jnp.zeros((1, h), jnp.float32),
        "ln2_g": jnp.ones((1, h), jnp.float32), "ln2_b": jnp.zeros((1, h), jnp.float32),
        "w1": nrm(ks[4], (h, h4)), "b1": jnp.zeros((1, h4), jnp.float32),
        "w2": nrm(ks[5], (h4, h)), "b2": jnp.zeros((1, h), jnp.float32),
    }


def build_params(modality_feat_dims, d_tok, hidden_dim):
    # TODO(synk): the reference lazily creates nn.Linear decoders / mask token at
    # forward time; here all submodule params are pre-built deterministically.
    key = jax.random.PRNGKey(0)
    keys = jax.random.split(key, 4 + 3 * len(modality_feat_dims))
    params = {
        "encoder": {}, "fusion_proj": {}, "decoders": {},
        "mask_token": jax.random.normal(keys[0], (1, 1, d_tok), jnp.float32),
        "cls_token": jax.random.normal(keys[1], (1, 1, hidden_dim), jnp.float32) * 0.02,
        "fusion_block": _init_block(keys[2], hidden_dim, 4 * hidden_dim),
        "simulator_block": _init_block(keys[3], hidden_dim, 4 * hidden_dim),
    }
    ki = 4
    for name, fdim in modality_feat_dims.items():
        params["encoder"][name] = _init_linear(keys[ki], fdim, d_tok); ki += 1
        params["fusion_proj"][name] = _init_linear(keys[ki], d_tok, hidden_dim); ki += 1
        params["decoders"][name] = _init_linear(keys[ki], hidden_dim, d_tok); ki += 1
    return params


# ----------------------------------------------------------------------------
if __name__ == "__main__":
    B = 2
    D_TOK = 128      # lane-dense token dim (multiple of 128)
    HIDDEN = 128     # lane-dense hidden dim (multiple of 128)
    modality_shapes = {"imagery": (B, 8, 24), "climate": (B, 4, 12)}

    key = jax.random.PRNGKey(0)
    k_img, k_clim = jax.random.split(key)
    inputs = {
        "imagery": jax.random.normal(k_img, modality_shapes["imagery"], jnp.float32),
        "climate": jax.random.normal(k_clim, modality_shapes["climate"], jnp.float32),
    }

    params = build_params(
        {name: shp[-1] for name, shp in modality_shapes.items()}, D_TOK, HIDDEN)

    mask_config = {"imagery": 0.75}  # mask imagery tokens, leave climate untouched
    out = deep_earth_forward(params, inputs, mask_config=mask_config)
    out = jax.block_until_ready(out)

    for name, shp in modality_shapes.items():
        rec = out["reconstructions"][name]
        assert rec.shape == (shp[0], shp[1], D_TOK), rec.shape
        assert bool(jnp.all(jnp.isfinite(rec)))

    print("KERNEL_OK")
</pallas_src>

<mosaic_0001>
module attributes {stable_mosaic.version = 11 : i64} {
  func.func @kernel(%arg0: memref<2x4x12xbf16, #tpu.memory_space<vmem>>, %arg1: memref<12x128xbf16, #tpu.memory_space<vmem>>, %arg2: memref<1x128xf32, #tpu.memory_space<vmem>>, %arg3: memref<128x128xbf16, #tpu.memory_space<vmem>>, %arg4: memref<1x128xf32, #tpu.memory_space<vmem>>, %arg5: memref<128x128xbf16, #tpu.memory_space<vmem>>, %arg6: memref<1x128xf32, #tpu.memory_space<vmem>>, %arg7: memref<128x128xbf16, #tpu.memory_space<vmem>>, %arg8: memref<1x128xf32, #tpu.memory_space<vmem>>, %arg9: memref<128x128xbf16, #tpu.memory_space<vmem>>, %arg10: memref<1x128xf32, #tpu.memory_space<vmem>>, %arg11: memref<1x1x128xf32, #tpu.memory_space<vmem>>, %arg12: memref<1x1x128xf32, #tpu.memory_space<vmem>>, %arg13: memref<128x128xbf16, #tpu.memory_space<vmem>>, %arg14: memref<128x128xbf16, #tpu.memory_space<vmem>>, %arg15: memref<128x128xbf16, #tpu.memory_space<vmem>>, %arg16: memref<128x128xbf16, #tpu.memory_space<vmem>>, %arg17: memref<1x128xf32, #tpu.memory_space<vmem>>, %arg18: memref<1x128xf32, #tpu.memory_space<vmem>>, %arg19: memref<1x128xf32, #tpu.memory_space<vmem>>, %arg20: memref<1x128xf32, #tpu.memory_space<vmem>>, %arg21: memref<128x512xbf16, #tpu.memory_space<vmem>>, %arg22: memref<1x512xf32, #tpu.memory_space<vmem>>, %arg23: memref<512x128xbf16, #tpu.memory_space<vmem>>, %arg24: memref<1x128xf32, #tpu.memory_space<vmem>>, %arg25: memref<128x128xbf16, #tpu.memory_space<vmem>>, %arg26: memref<128x128xbf16, #tpu.memory_space<vmem>>, %arg27: memref<128x128xbf16, #tpu.memory_space<vmem>>, %arg28: memref<128x128xbf16, #tpu.memory_space<vmem>>, %arg29: memref<1x128xf32, #tpu.memory_space<vmem>>, %arg30: memref<1x128xf32, #tpu.memory_space<vmem>>, %arg31: memref<1x128xf32, #tpu.memory_space<vmem>>, %arg32: memref<1x128xf32, #tpu.memory_space<vmem>>, %arg33: memref<128x512xbf16, #tpu.memory_space<vmem>>, %arg34: memref<1x512xf32, #tpu.memory_space<vmem>>, %arg35: memref<512x128xbf16, #tpu.memory_space<vmem>>, %arg36: memref<1x128xf32, #tpu.memory_space<vmem>>, %arg37: memref<2x13x128xf32, #tpu.memory_space<vmem>>, %arg38: memref<2x8x128xf32, #tpu.memory_space<vmem>>, %arg39: memref<2x4x128xf32, #tpu.memory_space<vmem>>, %arg40: memref<2x13x128xf32, #tpu.memory_space<vmem>>) attributes {dimension_semantics = [], scalar_prefetch = 0 : i64, scratch_operands = 1 : i64, tpu.core_type = #tpu.core_type<tc>} {
    %c0 = arith.constant 0 : index
    %c0_0 = arith.constant 0 : index
    %c0_1 = arith.constant 0 : index
    %0 = vector.load %arg12[%c0, %c0_0, %c0_1] : memref<1x1x128xf32, #tpu.memory_space<vmem>>, vector<1x1x128xf32>
    %1 = vector.shape_cast %0 : vector<1x1x128xf32> to vector<1x1x128xf32>
    %2 = vector.broadcast %1 : vector<1x1x128xf32> to vector<2x1x128xf32>
    %c0_2 = arith.constant 0 : index
    %c0_3 = arith.constant 0 : index
    %c0_4 = arith.constant 0 : index
    %3 = vector.load %arg40[%c0_2, %c0_3, %c0_4] : memref<2x13x128xf32, #tpu.memory_space<vmem>>, vector<2x1x128xf32>
    tpu.vector_store %arg40[%c0_2, %c0_3, %c0_4], %2 {strides = array<i32>} : memref<2x13x128xf32, #tpu.memory_space<vmem>>, vector<2x1x128xf32>,
    %c0_5 = arith.constant 0 : index
    %c0_6 = arith.constant 0 : index
    %c0_7 = arith.constant 0 : index
    %4 = vector.load %arg11[%c0_5, %c0_6, %c0_7] : memref<1x1x128xf32, #tpu.memory_space<vmem>>, vector<1x1x128xf32>
    %5 = vector.shape_cast %4 : vector<1x1x128xf32> to vector<1x128xf32>
    %6 = arith.truncf %5 : vector<1x128xf32> to vector<1x128xbf16>
    %7 = vector.shape_cast %6 : vector<1x128xbf16> to vector<1x128xbf16>
    %8 = vector.broadcast %7 : vector<1x128xbf16> to vector<16x128xbf16>
    %c0_8 = arith.constant 0 : index
    %c0_9 = arith.constant 0 : index
    %9 = vector.load %arg3[%c0_8, %c0_9] : memref<128x128xbf16, #tpu.memory_space<vmem>>, vector<128x128xbf16>
    %cst = arith.constant dense<0.000000e+00> : vector<16x128xf32>
    %10 = tpu.matmul %8, %9, %cst {dimension_numbers = #tpu.dot_dimension_numbers<[1], [0], [0], [1], [0, 0, 1, 1], [], []>} : vector<16x128xbf16>, vector<128x128xbf16>, vector<16x128xf32> -> vector<16x128xf32>
    %c0_10 = arith.constant 0 : index
    %c0_11 = arith.constant 0 : index
    %11 = vector.load %arg4[%c0_10, %c0_11] : memref<1x128xf32, #tpu.memory_space<vmem>>, vector<1x128xf32>
    %12 = vector.broadcast %11 : vector<1x128xf32> to vector<16x128xf32>
    %13 = arith.addf %10, %12 : vector<16x128xf32>
    %14 = vector.shape_cast %13 : vector<16x128xf32> to vector<2x8x128xf32>
    %c0_12 = arith.constant 0 : index
    %c1 = arith.constant 1 : index
    %c0_13 = arith.constant 0 : index
    %15 = vector.load %arg40[%c0_12, %c1, %c0_13] : memref<2x13x128xf32, #tpu.memory_space<vmem>>, vector<2x8x128xf32>
    tpu.vector_store %arg40[%c0_12, %c1, %c0_13], %14 {strides = array<i32>} : memref<2x13x128xf32, #tpu.memory_space<vmem>>, vector<2x8x128xf32>,
    %c0_14 = arith.constant 0 : index
    %c0_15 = arith.constant 0 : index
    %c0_16 = arith.constant 0 : index
    %16 = vector.load %arg0[%c0_14, %c0_15, %c0_16] : memref<2x4x12xbf16, #tpu.memory_space<vmem>>, vector<2x4x12xbf16>
    %17 = vector.shape_cast %16 : vector<2x4x12xbf16> to vector<8x12xbf16>
    %c0_17 = arith.constant 0 : index
    %c0_18 = arith.constant 0 : index
    %18 = vector.load %arg1[%c0_17, %c0_18] : memref<12x128xbf16, #tpu.memory_space<vmem>>, vector<12x128xbf16>
    %cst_19 = arith.constant dense<0.000000e+00> : vector<8x128xf32>
    %19 = tpu.matmul %17, %18, %cst_19 {dimension_numbers = #tpu.dot_dimension_numbers<[1], [0], [0], [1], [0, 0, 1, 1], [], []>} : vector<8x12xbf16>, vector<12x128xbf16>, vector<8x128xf32> -> vector<8x128xf32>
    %c0_20 = arith.constant 0 : index
    %c0_21 = arith.constant 0 : index
    %20 = vector.load %arg2[%c0_20, %c0_21] : memref<1x128xf32, #tpu.memory_space<vmem>>, vector<1x128xf32>
    %21 = vector.broadcast %20 : vector<1x128xf32> to vector<8x128xf32>
    %22 = arith.addf %19, %21 : vector<8x128xf32>
    %23 = arith.truncf %22 : vector<8x128xf32> to vector<8x128xbf16>
    %c0_22 = arith.constant 0 : index
    %c0_23 = arith.constant 0 : index
    %24 = vector.load %arg5[%c0_22, %c0_23] : memref<128x128xbf16, #tpu.memory_space<vmem>>, vector<128x128xbf16>
    %cst_24 = arith.constant dense<0.000000e+00> : vector<8x128xf32>
    %25 = tpu.matmul %23, %24, %cst_24 {dimension_numbers = #tpu.dot_dimension_numbers<[1], [0], [0], [1], [0, 0, 1, 1], [], []>} : vector<8x128xbf16>, vector<128x128xbf16>, vector<8x128xf32> -> vector<8x128xf32>
    %c0_25 = arith.constant 0 : index
    %c0_26 = arith.constant 0 : index
    %26 = vector.load %arg6[%c0_25, %c0_26] : memref<1x128xf32, #tpu.memory_space<vmem>>, vector<1x128xf32>
    %27 = vector.broadcast %26 : vector<1x128xf32> to vector<8x128xf32>
    %28 = arith.addf %25, %27 : vector<8x128xf32>
    %29 = vector.shape_cast %28 : vector<8x128xf32> to vector<2x4x128xf32>
    %c0_27 = arith.constant 0 : index
    %c9 = arith.constant 9 : index
    %c0_28 = arith.constant 0 : index
    %30 = vector.load %arg40[%c0_27, %c9, %c0_28] : memref<2x13x128xf32, #tpu.memory_space<vmem>>, vector<2x4x128xf32>
    tpu.vector_store %arg40[%c0_27, %c9, %c0_28], %29 {strides = array<i32>} : memref<2x13x128xf32, #tpu.memory_space<vmem>>, vector<2x4x128xf32>,
    %c0_29 = arith.constant 0 : index
    %c0_30 = arith.constant 0 : index
    %c0_31 = arith.constant 0 : index
    %31 = vector.load %arg40[%c0_29, %c0_30, %c0_31] : memref<2x13x128xf32, #tpu.memory_space<vmem>>, vector<2x13x128xf32>
    %c0_32 = arith.constant 0 : index
    %c0_33 = arith.constant 0 : index
    %32 = vector.load %arg17[%c0_32, %c0_33] : memref<1x128xf32, #tpu.memory_space<vmem>>, vector<1x128xf32>
    %c0_34 = arith.constant 0 : index
    %c0_35 = arith.constant 0 : index
    %33 = vector.load %arg18[%c0_34, %c0_35] : memref<1x128xf32, #tpu.memory_space<vmem>>, vector<1x128xf32>
    %cst_36 = arith.constant dense<0.000000e+00> : vector<2x13xf32>
    %34 = vector.multi_reduction <add>, %31, %cst_36 [2] : vector<2x13x128xf32> to vector<2x13xf32>
    %35 = vector.shape_cast %34 : vector<2x13xf32> to vector<2x13x1xf32>
    %cst_37 = arith.constant 1.280000e+02 : f32
    %36 = vector.broadcast %cst_37 : f32 to vector<2x13x1xf32>
    %37 = arith.divf %35, %36 : vector<2x13x1xf32>
    %38 = vector.broadcast %37 : vector<2x13x1xf32> to vector<2x13x128xf32>
    %39 = arith.subf %31, %38 : vector<2x13x128xf32>
    %40 = arith.mulf %39, %39 : vector<2x13x128xf32>
    %cst_38 = arith.constant dense<0.000000e+00> : vector<2x13xf32>
    %41 = vector.multi_reduction <add>, %40, %cst_38 [2] : vector<2x13x128xf32> to vector<2x13xf32>
    %42 = vector.shape_cast %41 : vector<2x13xf32> to vector<2x13x1xf32>
    %cst_39 = arith.constant 1.280000e+02 : f32
    %43 = vector.broadcast %cst_39 : f32 to vector<2x13x1xf32>
    %44 = arith.divf %42, %43 : vector<2x13x1xf32>
    %45 = vector.broadcast %37 : vector<2x13x1xf32> to vector<2x13x128xf32>
    %46 = arith.subf %31, %45 : vector<2x13x128xf32>
    %cst_40 = arith.constant 9.99999974E-6 : f32
    %47 = vector.broadcast %cst_40 : f32 to vector<2x13x1xf32>
    %48 = arith.addf %44, %47 : vector<2x13x1xf32>
    %49 = math.rsqrt %48 : vector<2x13x1xf32>
    %50 = vector.broadcast %49 : vector<2x13x1xf32> to vector<2x13x128xf32>
    %51 = arith.mulf %46, %50 : vector<2x13x128xf32>
    %52 = vector.shape_cast %32 : vector<1x128xf32> to vector<1x1x128xf32>
    %53 = vector.broadcast %52 : vector<1x1x128xf32> to vector<2x13x128xf32>
    %54 = arith.mulf %51, %53 : vector<2x13x128xf32>
    %55 = vector.shape_cast %33 : vector<1x128xf32> to vector<1x1x128xf32>
    %56 = vector.broadcast %55 : vector<1x1x128xf32> to vector<2x13x128xf32>
    %57 = arith.addf %54, %56 : vector<2x13x128xf32>
    %58 = vector.shape_cast %57 : vector<2x13x128xf32> to vector<26x128xf32>
    %59 = arith.truncf %58 : vector<26x128xf32> to vector<26x128xbf16>
    %c0_41 = arith.constant 0 : index
    %c0_42 = arith.constant 0 : index
    %60 = vector.load %arg13[%c0_41, %c0_42] : memref<128x128xbf16, #tpu.memory_space<vmem>>, vector<128x128xbf16>
    %cst_43 = arith.constant dense<0.000000e+00> : vector<26x128xf32>
    %61 = tpu.matmul %59, %60, %cst_43 {dimension_numbers = #tpu.dot_dimension_numbers<[1], [0], [0], [1], [0, 0, 1, 1], [], []>} : vector<26x128xbf16>, vector<128x128xbf16>, vector<26x128xf32> -> vector<26x128xf32>
    %c0_44 = arith.constant 0 : index
    %c0_45 = arith.constant 0 : index
    %62 = vector.load %arg14[%c0_44, %c0_45] : memref<128x128xbf16, #tpu.memory_space<vmem>>, vector<128x128xbf16>
    %cst_46 = arith.constant dense<0.000000e+00> : vector<26x128xf32>
    %63 = tpu.matmul %59, %62, %cst_46 {dimension_numbers = #tpu.dot_dimension_numbers<[1], [0], [0], [1], [0, 0, 1, 1], [], []>} : vector<26x128xbf16>, vector<128x128xbf16>, vector<26x128xf32> -> vector<26x128xf32>
    %c0_47 = arith.constant 0 : index
    %c0_48 = arith.constant 0 : index
    %64 = vector.load %arg15[%c0_47, %c0_48] : memref<128x128xbf16, #tpu.memory_space<vmem>>, vector<128x128xbf16>
    %cst_49 = arith.constant dense<0.000000e+00> : vector<26x128xf32>
    %65 = tpu.matmul %59, %64, %cst_49 {dimension_numbers = #tpu.dot_dimension_numbers<[1], [0], [0], [1], [0, 0, 1, 1], [], []>} : vector<26x128xbf16>, vector<128x128xbf16>, vector<26x128xf32> -> vector<26x128xf32>
    %cst_50 = arith.constant 0.0883883461 : f32
    %66 = vector.broadcast %cst_50 : f32 to vector<26x128xf32>
    %67 = arith.mulf %61, %66 : vector<26x128xf32>
    %68 = vector.shape_cast %67 : vector<26x128xf32> to vector<2x13x128xf32>
    %69 = arith.truncf %68 : vector<2x13x128xf32> to vector<2x13x128xbf16>
    %70 = vector.shape_cast %63 : vector<26x128xf32> to vector<2x13x128xf32>
    %71 = arith.truncf %70 : vector<2x13x128xf32> to vector<2x13x128xbf16>
    %72 = vector.shape_cast %65 : vector<26x128xf32> to vector<2x13x128xf32>
    %73 = arith.truncf %72 : vector<2x13x128xf32> to vector<2x13x128xbf16>
    "tpu.trace_start"() <{level = 10 : i32, message = "bqd,bkd->bqk"}> : () -> ()
    %cst_51 = arith.constant dense<0.000000e+00> : vector<2x13x13xf32>
    %74 = tpu.matmul %69, %71, %cst_51 {dimension_numbers = #tpu.dot_dimension_numbers<[2], [2], [1], [1], [0, 0, 0, 1, 1, 1], [0], [0]>} : vector<2x13x128xbf16>, vector<2x13x128xbf16>, vector<2x13x13xf32> -> vector<2x13x13xf32>
    "tpu.trace_stop"() : () -> ()
    %cst_52 = arith.constant dense<0xFF800000> : vector<2x13xf32>
    %75 = vector.multi_reduction <maximumf>, %74, %cst_52 [2] : vector<2x13x13xf32> to vector<2x13xf32>
    %76 = vector.shape_cast %75 : vector<2x13xf32> to vector<2x13x1xf32>
    %77 = vector.broadcast %76 : vector<2x13x1xf32> to vector<2x13x13xf32>
    %78 = arith.subf %74, %77 : vector<2x13x13xf32>
    %79 = math.exp %78 : vector<2x13x13xf32>
    %cst_53 = arith.constant dense<0.000000e+00> : vector<2x13xf32>
    %80 = vector.multi_reduction <add>, %79, %cst_53 [2] : vector<2x13x13xf32> to vector<2x13xf32>
    %81 = vector.shape_cast %80 : vector<2x13xf32> to vector<2x13x1xf32>
    %82 = tpu.reciprocal %81 {approx = true} : vector<2x13x1xf32> -> vector<2x13x1xf32>
    %83 = vector.broadcast %82 : vector<2x13x1xf32> to vector<2x13x13xf32>
    %84 = arith.mulf %79, %83 : vector<2x13x13xf32>
    %85 = arith.truncf %84 : vector<2x13x13xf32> to vector<2x13x13xbf16>
    "tpu.trace_start"() <{level = 10 : i32, message = "bqk,bkd->bqd"}> : () -> ()
    %cst_54 = arith.constant dense<0.000000e+00> : vector<2x13x128xf32>
    %86 = tpu.matmul %85, %73, %cst_54 {dimension_numbers = #tpu.dot_dimension_numbers<[2], [1], [1], [2], [0, 0, 0, 1, 1, 2], [0], [0]>} : vector<2x13x13xbf16>, vector<2x13x128xbf16>, vector<2x13x128xf32> -> vector<2x13x128xf32>
    "tpu.trace_stop"() : () -> ()
    %87 = vector.shape_cast %86 : vector<2x13x128xf32> to vector<26x128xf32>
    %88 = arith.truncf %87 : vector<26x128xf32> to vector<26x128xbf16>
    %c0_55 = arith.constant 0 : index
    %c0_56 = arith.constant 0 : index
    %89 = vector.load %arg16[%c0_55, %c0_56] : memref<128x128xbf16, #tpu.memory_space<vmem>>, vector<128x128xbf16>
    %cst_57 = arith.constant dense<0.000000e+00> : vector<26x128xf32>
    %90 = tpu.matmul %88, %89, %cst_57 {dimension_numbers = #tpu.dot_dimension_numbers<[1], [0], [0], [1], [0, 0, 1, 1], [], []>} : vector<26x128xbf16>, vector<128x128xbf16>, vector<26x128xf32> -> vector<26x128xf32>
    %91 = vector.shape_cast %90 : vector<26x128xf32> to vector<2x13x128xf32>
    %92 = arith.addf %31, %91 : vector<2x13x128xf32>
    %c0_58 = arith.constant 0 : index
    %c0_59 = arith.constant 0 : index
    %93 = vector.load %arg19[%c0_58, %c0_59] : memref<1x128xf32, #tpu.memory_space<vmem>>, vector<1x128xf32>
    %c0_60 = arith.constant 0 : index
    %c0_61 = arith.constant 0 : index
    %94 = vector.load %arg20[%c0_60, %c0_61] : memref<1x128xf32, #tpu.memory_space<vmem>>, vector<1x128xf32>
    %cst_62 = arith.constant dense<0.000000e+00> : vector<2x13xf32>
    %95 = vector.multi_reduction <add>, %92, %cst_62 [2] : vector<2x13x128xf32> to vector<2x13xf32>
    %96 = vector.shape_cast %95 : vector<2x13xf32> to vector<2x13x1xf32>
    %cst_63 = arith.constant 1.280000e+02 : f32
    %97 = vector.broadcast %cst_63 : f32 to vector<2x13x1xf32>
    %98 = arith.divf %96, %97 : vector<2x13x1xf32>
    %99 = vector.broadcast %98 : vector<2x13x1xf32> to vector<2x13x128xf32>
    %100 = arith.subf %92, %99 : vector<2x13x128xf32>
    %101 = arith.mulf %100, %100 : vector<2x13x128xf32>
    %cst_64 = arith.constant dense<0.000000e+00> : vector<2x13xf32>
    %102 = vector.multi_reduction <add>, %101, %cst_64 [2] : vector<2x13x128xf32> to vector<2x13xf32>
    %103 = vector.shape_cast %102 : vector<2x13xf32> to vector<2x13x1xf32>
    %cst_65 = arith.constant 1.280000e+02 : f32
    %104 = vector.broadcast %cst_65 : f32 to vector<2x13x1xf32>
    %105 = arith.divf %103, %104 : vector<2x13x1xf32>
    %106 = vector.broadcast %98 : vector<2x13x1xf32> to vector<2x13x128xf32>
    %107 = arith.subf %92, %106 : vector<2x13x128xf32>
    %cst_66 = arith.constant 9.99999974E-6 : f32
    %108 = vector.broadcast %cst_66 : f32 to vector<2x13x1xf32>
    %109 = arith.addf %105, %108 : vector<2x13x1xf32>
    %110 = math.rsqrt %109 : vector<2x13x1xf32>
    %111 = vector.broadcast %110 : vector<2x13x1xf32> to vector<2x13x128xf32>
    %112 = arith.mulf %107, %111 : vector<2x13x128xf32>
    %113 = vector.shape_cast %93 : vector<1x128xf32> to vector<1x1x128xf32>
    %114 = vector.broadcast %113 : vector<1x1x128xf32> to vector<2x13x128xf32>
    %115 = arith.mulf %112, %114 : vector<2x13x128xf32>
    %116 = vector.shape_cast %94 : vector<1x128xf32> to vector<1x1x128xf32>
    %117 = vector.broadcast %116 : vector<1x1x128xf32> to vector<2x13x128xf32>
    %118 = arith.addf %115, %117 : vector<2x13x128xf32>
    %119 = vector.shape_cast %118 : vector<2x13x128xf32> to vector<26x128xf32>
    %120 = arith.truncf %119 : vector<26x128xf32> to vector<26x128xbf16>
    %c0_67 = arith.constant 0 : index
    %c0_68 = arith.constant 0 : index
    %121 = vector.load %arg21[%c0_67, %c0_68] : memref<128x512xbf16, #tpu.memory_space<vmem>>, vector<128x512xbf16>
    %cst_69 = arith.constant dense<0.000000e+00> : vector<26x512xf32>
    %122 = tpu.matmul %120, %121, %cst_69 {dimension_numbers = #tpu.dot_dimension_numbers<[1], [0], [0], [1], [0, 0, 1, 1], [], []>} : vector<26x128xbf16>, vector<128x512xbf16>, vector<26x512xf32> -> vector<26x512xf32>
    %c0_70 = arith.constant 0 : index
    %c0_71 = arith.constant 0 : index
    %123 = vector.load %arg22[%c0_70, %c0_71] : memref<1x512xf32, #tpu.memory_space<vmem>>, vector<1x512xf32>
    %124 = vector.broadcast %123 : vector<1x512xf32> to vector<26x512xf32>
    %125 = arith.addf %122, %124 : vector<26x512xf32>
    %126 = arith.mulf %125, %125 : vector<26x512xf32>
    %127 = arith.mulf %125, %126 : vector<26x512xf32>
    %cst_72 = arith.constant 4.471500e-02 : f32
    %128 = vector.broadcast %cst_72 : f32 to vector<26x512xf32>
    %129 = arith.mulf %128, %127 : vector<26x512xf32>
    %130 = arith.addf %125, %129 : vector<26x512xf32>
    %cst_73 = arith.constant 0.797884583 : f32
    %131 = vector.broadcast %cst_73 : f32 to vector<26x512xf32>
    %132 = arith.mulf %131, %130 : vector<26x512xf32>
    %133 = math.tanh %132 : vector<26x512xf32>
    %cst_74 = arith.constant 1.000000e+00 : f32
    %134 = vector.broadcast %cst_74 : f32 to vector<26x512xf32>
    %135 = arith.addf %134, %133 : vector<26x512xf32>
    %cst_75 = arith.constant 5.000000e-01 : f32
    %136 = vector.broadcast %cst_75 : f32 to vector<26x512xf32>
    %137 = arith.mulf %136, %135 : vector<26x512xf32>
    %138 = arith.mulf %125, %137 : vector<26x512xf32>
    %139 = arith.truncf %138 : vector<26x512xf32> to vector<26x512xbf16>
    %c0_76 = arith.constant 0 : index
    %c0_77 = arith.constant 0 : index
    %140 = vector.load %arg23[%c0_76, %c0_77] : memref<512x128xbf16, #tpu.memory_space<vmem>>, vector<512x128xbf16>
    %cst_78 = arith.constant dense<0.000000e+00> : vector<26x128xf32>
    %141 = tpu.matmul %139, %140, %cst_78 {dimension_numbers = #tpu.dot_dimension_numbers<[1], [0], [0], [1], [0, 0, 1, 1], [], []>} : vector<26x512xbf16>, vector<512x128xbf16>, vector<26x128xf32> -> vector<26x128xf32>
    %c0_79 = arith.constant 0 : index
    %c0_80 = arith.constant 0 : index
    %142 = vector.load %arg24[%c0_79, %c0_80] : memref<1x128xf32, #tpu.memory_space<vmem>>, vector<1x128xf32>
    %143 = vector.broadcast %142 : vector<1x128xf32> to vector<26x128xf32>
    %144 = arith.addf %141, %143 : vector<26x128xf32>
    %145 = vector.shape_cast %144 : vector<26x128xf32> to vector<2x13x128xf32>
    %146 = arith.addf %92, %145 : vector<2x13x128xf32>
    %c0_81 = arith.constant 0 : index
    %c0_82 = arith.constant 0 : index
    %147 = vector.load %arg29[%c0_81, %c0_82] : memref<1x128xf32, #tpu.memory_space<vmem>>, vector<1x128xf32>
    %c0_83 = arith.constant 0 : index
    %c0_84 = arith.constant 0 : index
    %148 = vector.load %arg30[%c0_83, %c0_84] : memref<1x128xf32, #tpu.memory_space<vmem>>, vector<1x128xf32>
    %cst_85 = arith.constant dense<0.000000e+00> : vector<2x13xf32>
    %149 = vector.multi_reduction <add>, %146, %cst_85 [2] : vector<2x13x128xf32> to vector<2x13xf32>
    %150 = vector.shape_cast %149 : vector<2x13xf32> to vector<2x13x1xf32>
    %cst_86 = arith.constant 1.280000e+02 : f32
    %151 = vector.broadcast %cst_86 : f32 to vector<2x13x1xf32>
    %152 = arith.divf %150, %151 : vector<2x13x1xf32>
    %153 = vector.broadcast %152 : vector<2x13x1xf32> to vector<2x13x128xf32>
    %154 = arith.subf %146, %153 : vector<2x13x128xf32>
    %155 = arith.mulf %154, %154 : vector<2x13x128xf32>
    %cst_87 = arith.constant dense<0.000000e+00> : vector<2x13xf32>
    %156 = vector.multi_reduction <add>, %155, %cst_87 [2] : vector<2x13x128xf32> to vector<2x13xf32>
    %157 = vector.shape_cast %156 : vector<2x13xf32> to vector<2x13x1xf32>
    %cst_88 = arith.constant 1.280000e+02 : f32
    %158 = vector.broadcast %cst_88 : f32 to vector<2x13x1xf32>
    %159 = arith.divf %157, %158 : vector<2x13x1xf32>
    %160 = vector.broadcast %152 : vector<2x13x1xf32> to vector<2x13x128xf32>
    %161 = arith.subf %146, %160 : vector<2x13x128xf32>
    %cst_89 = arith.constant 9.99999974E-6 : f32
    %162 = vector.broadcast %cst_89 : f32 to vector<2x13x1xf32>
    %163 = arith.addf %159, %162 : vector<2x13x1xf32>
    %164 = math.rsqrt %163 : vector<2x13x1xf32>
    %165 = vector.broadcast %164 : vector<2x13x1xf32> to vector<2x13x128xf32>
    %166 = arith.mulf %161, %165 : vector<2x13x128xf32>
    %167 = vector.shape_cast %147 : vector<1x128xf32> to vector<1x1x128xf32>
    %168 = vector.broadcast %167 : vector<1x1x128xf32> to vector<2x13x128xf32>
    %169 = arith.mulf %166, %168 : vector<2x13x128xf32>
    %170 = vector.shape_cast %148 : vector<1x128xf32> to vector<1x1x128xf32>
    %171 = vector.broadcast %170 : vector<1x1x128xf32> to vector<2x13x128xf32>
    %172 = arith.addf %169, %171 : vector<2x13x128xf32>
    %173 = vector.shape_cast %172 : vector<2x13x128xf32> to vector<26x128xf32>
    %174 = arith.truncf %173 : vector<26x128xf32> to vector<26x128xbf16>
    %c0_90 = arith.constant 0 : index
    %c0_91 = arith.constant 0 : index
    %175 = vector.load %arg25[%c0_90, %c0_91] : memref<128x128xbf16, #tpu.memory_space<vmem>>, vector<128x128xbf16>
    %cst_92 = arith.constant dense<0.000000e+00> : vector<26x128xf32>
    %176 = tpu.matmul %174, %175, %cst_92 {dimension_numbers = #tpu.dot_dimension_numbers<[1], [0], [0], [1], [0, 0, 1, 1], [], []>} : vector<26x128xbf16>, vector<128x128xbf16>, vector<26x128xf32> -> vector<26x128xf32>
    %c0_93 = arith.constant 0 : index
    %c0_94 = arith.constant 0 : index
    %177 = vector.load %arg26[%c0_93, %c0_94] : memref<128x128xbf16, #tpu.memory_space<vmem>>, vector<128x128xbf16>
    %cst_95 = arith.constant dense<0.000000e+00> : vector<26x128xf32>
    %178 = tpu.matmul %174, %177, %cst_95 {dimension_numbers = #tpu.dot_dimension_numbers<[1], [0], [0], [1], [0, 0, 1, 1], [], []>} : vector<26x128xbf16>, vector<128x128xbf16>, vector<26x128xf32> -> vector<26x128xf32>
    %c0_96 = arith.constant 0 : index
    %c0_97 = arith.constant 0 : index
    %179 = vector.load %arg27[%c0_96, %c0_97] : memref<128x128xbf16, #tpu.memory_space<vmem>>, vector<128x128xbf16>
    %cst_98 = arith.constant dense<0.000000e+00> : vector<26x128xf32>
    %180 = tpu.matmul %174, %179, %cst_98 {dimension_numbers = #tpu.dot_dimension_numbers<[1], [0], [0], [1], [0, 0, 1, 1], [], []>} : vector<26x128xbf16>, vector<128x128xbf16>, vector<26x128xf32> -> vector<26x128xf32>
    %cst_99 = arith.constant 0.0883883461 : f32
    %181 = vector.broadcast %cst_99 : f32 to vector<26x128xf32>
    %182 = arith.mulf %176, %181 : vector<26x128xf32>
    %183 = vector.shape_cast %182 : vector<26x128xf32> to vector<2x13x128xf32>
    %184 = arith.truncf %183 : vector<2x13x128xf32> to vector<2x13x128xbf16>
    %185 = vector.shape_cast %178 : vector<26x128xf32> to vector<2x13x128xf32>
    %186 = arith.truncf %185 : vector<2x13x128xf32> to vector<2x13x128xbf16>
    %187 = vector.shape_cast %180 : vector<26x128xf32> to vector<2x13x128xf32>
    %188 = arith.truncf %187 : vector<2x13x128xf32> to vector<2x13x128xbf16>
    "tpu.trace_start"() <{level = 10 : i32, message = "bqd,bkd->bqk"}> : () -> ()
    %cst_100 = arith.constant dense<0.000000e+00> : vector<2x13x13xf32>
    %189 = tpu.matmul %184, %186, %cst_100 {dimension_numbers = #tpu.dot_dimension_numbers<[2], [2], [1], [1], [0, 0, 0, 1, 1, 1], [0], [0]>} : vector<2x13x128xbf16>, vector<2x13x128xbf16>, vector<2x13x13xf32> -> vector<2x13x13xf32>
    "tpu.trace_stop"() : () -> ()
    %cst_101 = arith.constant dense<0xFF800000> : vector<2x13xf32>
    %190 = vector.multi_reduction <maximumf>, %189, %cst_101 [2] : vector<2x13x13xf32> to vector<2x13xf32>
    %191 = vector.shape_cast %190 : vector<2x13xf32> to vector<2x13x1xf32>
    %192 = vector.broadcast %191 : vector<2x13x1xf32> to vector<2x13x13xf32>
    %193 = arith.subf %189, %192 : vector<2x13x13xf32>
    %194 = math.exp %193 : vector<2x13x13xf32>
    %cst_102 = arith.constant dense<0.000000e+00> : vector<2x13xf32>
    %195 = vector.multi_reduction <add>, %194, %cst_102 [2] : vector<2x13x13xf32> to vector<2x13xf32>
    %196 = vector.shape_cast %195 : vector<2x13xf32> to vector<2x13x1xf32>
    %197 = tpu.reciprocal %196 {approx = true} : vector<2x13x1xf32> -> vector<2x13x1xf32>
    %198 = vector.broadcast %197 : vector<2x13x1xf32> to vector<2x13x13xf32>
    %199 = arith.mulf %194, %198 : vector<2x13x13xf32>
    %200 = arith.truncf %199 : vector<2x13x13xf32> to vector<2x13x13xbf16>
    "tpu.trace_start"() <{level = 10 : i32, message = "bqk,bkd->bqd"}> : () -> ()
    %cst_103 = arith.constant dense<0.000000e+00> : vector<2x13x128xf32>
    %201 = tpu.matmul %200, %188, %cst_103 {dimension_numbers = #tpu.dot_dimension_numbers<[2], [1], [1], [2], [0, 0, 0, 1, 1, 2], [0], [0]>} : vector<2x13x13xbf16>, vector<2x13x128xbf16>, vector<2x13x128xf32> -> vector<2x13x128xf32>
    "tpu.trace_stop"() : () -> ()
    %202 = vector.shape_cast %201 : vector<2x13x128xf32> to vector<26x128xf32>
    %203 = arith.truncf %202 : vector<26x128xf32> to vector<26x128xbf16>
    %c0_104 = arith.constant 0 : index
    %c0_105 = arith.constant 0 : index
    %204 = vector.load %arg28[%c0_104, %c0_105] : memref<128x128xbf16, #tpu.memory_space<vmem>>, vector<128x128xbf16>
    %cst_106 = arith.constant dense<0.000000e+00> : vector<26x128xf32>
    %205 = tpu.matmul %203, %204, %cst_106 {dimension_numbers = #tpu.dot_dimension_numbers<[1], [0], [0], [1], [0, 0, 1, 1], [], []>} : vector<26x128xbf16>, vector<128x128xbf16>, vector<26x128xf32> -> vector<26x128xf32>
    %206 = vector.shape_cast %205 : vector<26x128xf32> to vector<2x13x128xf32>
    %207 = arith.addf %146, %206 : vector<2x13x128xf32>
    %c0_107 = arith.constant 0 : index
    %c0_108 = arith.constant 0 : index
    %208 = vector.load %arg31[%c0_107, %c0_108] : memref<1x128xf32, #tpu.memory_space<vmem>>, vector<1x128xf32>
    %c0_109 = arith.constant 0 : index
    %c0_110 = arith.constant 0 : index
    %209 = vector.load %arg32[%c0_109, %c0_110] : memref<1x128xf32, #tpu.memory_space<vmem>>, vector<1x128xf32>
    %cst_111 = arith.constant dense<0.000000e+00> : vector<2x13xf32>
    %210 = vector.multi_reduction <add>, %207, %cst_111 [2] : vector<2x13x128xf32> to vector<2x13xf32>
    %211 = vector.shape_cast %210 : vector<2x13xf32> to vector<2x13x1xf32>
    %cst_112 = arith.constant 1.280000e+02 : f32
    %212 = vector.broadcast %cst_112 : f32 to vector<2x13x1xf32>
    %213 = arith.divf %211, %212 : vector<2x13x1xf32>
    %214 = vector.broadcast %213 : vector<2x13x1xf32> to vector<2x13x128xf32>
    %215 = arith.subf %207, %214 : vector<2x13x128xf32>
    %216 = arith.mulf %215, %215 : vector<2x13x128xf32>
    %cst_113 = arith.constant dense<0.000000e+00> : vector<2x13xf32>
    %217 = vector.multi_reduction <add>, %216, %cst_113 [2] : vector<2x13x128xf32> to vector<2x13xf32>
    %218 = vector.shape_cast %217 : vector<2x13xf32> to vector<2x13x1xf32>
    %cst_114 = arith.constant 1.280000e+02 : f32
    %219 = vector.broadcast %cst_114 : f32 to vector<2x13x1xf32>
    %220 = arith.divf %218, %219 : vector<2x13x1xf32>
    %221 = vector.broadcast %213 : vector<2x13x1xf32> to vector<2x13x128xf32>
    %222 = arith.subf %207, %221 : vector<2x13x128xf32>
    %cst_115 = arith.constant 9.99999974E-6 : f32
    %223 = vector.broadcast %cst_115 : f32 to vector<2x13x1xf32>
    %224 = arith.addf %220, %223 : vector<2x13x1xf32>
    %225 = math.rsqrt %224 : vector<2x13x1xf32>
    %226 = vector.broadcast %225 : vector<2x13x1xf32> to vector<2x13x128xf32>
    %227 = arith.mulf %222, %226 : vector<2x13x128xf32>
    %228 = vector.shape_cast %208 : vector<1x128xf32> to vector<1x1x128xf32>
    %229 = vector.broadcast %228 : vector<1x1x128xf32> to vector<2x13x128xf32>
    %230 = arith.mulf %227, %229 : vector<2x13x128xf32>
    %231 = vector.shape_cast %209 : vector<1x128xf32> to vector<1x1x128xf32>
    %232 = vector.broadcast %231 : vector<1x1x128xf32> to vector<2x13x128xf32>
    %233 = arith.addf %230, %232 : vector<2x13x128xf32>
    %234 = vector.shape_cast %233 : vector<2x13x128xf32> to vector<26x128xf32>
    %235 = arith.truncf %234 : vector<26x128xf32> to vector<26x128xbf16>
    %c0_116 = arith.constant 0 : index
    %c0_117 = arith.constant 0 : index
    %236 = vector.load %arg33[%c0_116, %c0_117] : memref<128x512xbf16, #tpu.memory_space<vmem>>, vector<128x512xbf16>
    %cst_118 = arith.constant dense<0.000000e+00> : vector<26x512xf32>
    %237 = tpu.matmul %235, %236, %cst_118 {dimension_numbers = #tpu.dot_dimension_numbers<[1], [0], [0], [1], [0, 0, 1, 1], [], []>} : vector<26x128xbf16>, vector<128x512xbf16>, vector<26x512xf32> -> vector<26x512xf32>
    %c0_119 = arith.constant 0 : index
    %c0_120 = arith.constant 0 : index
    %238 = vector.load %arg34[%c0_119, %c0_120] : memref<1x512xf32, #tpu.memory_space<vmem>>, vector<1x512xf32>
    %239 = vector.broadcast %238 : vector<1x512xf32> to vector<26x512xf32>
    %240 = arith.addf %237, %239 : vector<26x512xf32>
    %241 = arith.mulf %240, %240 : vector<26x512xf32>
    %242 = arith.mulf %240, %241 : vector<26x512xf32>
    %cst_121 = arith.constant 4.471500e-02 : f32
    %243 = vector.broadcast %cst_121 : f32 to vector<26x512xf32>
    %244 = arith.mulf %243, %242 : vector<26x512xf32>
    %245 = arith.addf %240, %244 : vector<26x512xf32>
    %cst_122 = arith.constant 0.797884583 : f32
    %246 = vector.broadcast %cst_122 : f32 to vector<26x512xf32>
    %247 = arith.mulf %246, %245 : vector<26x512xf32>
    %248 = math.tanh %247 : vector<26x512xf32>
    %cst_123 = arith.constant 1.000000e+00 : f32
    %249 = vector.broadcast %cst_123 : f32 to vector<26x512xf32>
    %250 = arith.addf %249, %248 : vector<26x512xf32>
    %cst_124 = arith.constant 5.000000e-01 : f32
    %251 = vector.broadcast %cst_124 : f32 to vector<26x512xf32>
    %252 = arith.mulf %251, %250 : vector<26x512xf32>
    %253 = arith.mulf %240, %252 : vector<26x512xf32>
    %254 = arith.truncf %253 : vector<26x512xf32> to vector<26x512xbf16>
    %c0_125 = arith.constant 0 : index
    %c0_126 = arith.constant 0 : index
    %255 = vector.load %arg35[%c0_125, %c0_126] : memref<512x128xbf16, #tpu.memory_space<vmem>>, vector<512x128xbf16>
    %cst_127 = arith.constant dense<0.000000e+00> : vector<26x128xf32>
    %256 = tpu.matmul %254, %255, %cst_127 {dimension_numbers = #tpu.dot_dimension_numbers<[1], [0], [0], [1], [0, 0, 1, 1], [], []>} : vector<26x512xbf16>, vector<512x128xbf16>, vector<26x128xf32> -> vector<26x128xf32>
    %c0_128 = arith.constant 0 : index
    %c0_129 = arith.constant 0 : index
    %257 = vector.load %arg36[%c0_128, %c0_129] : memref<1x128xf32, #tpu.memory_space<vmem>>, vector<1x128xf32>
    %258 = vector.broadcast %257 : vector<1x128xf32> to vector<26x128xf32>
    %259 = arith.addf %256, %258 : vector<26x128xf32>
    %260 = vector.shape_cast %259 : vector<26x128xf32> to vector<2x13x128xf32>
    %261 = arith.addf %207, %260 : vector<2x13x128xf32>
    %c0_130 = arith.constant 0 : index
    %c0_131 = arith.constant 0 : index
    %c0_132 = arith.constant 0 : index
    %262 = vector.load %arg37[%c0_130, %c0_131, %c0_132] : memref<2x13x128xf32, #tpu.memory_space<vmem>>, vector<2x13x128xf32>
    tpu.vector_store %arg37[%c0_130, %c0_131, %c0_132], %261 {strides = array<i32>} : memref<2x13x128xf32, #tpu.memory_space<vmem>>, vector<2x13x128xf32>,
    %c0_133 = arith.constant 0 : index
    %c0_134 = arith.constant 0 : index
    %c0_135 = arith.constant 0 : index
    %263 = vector.load %arg40[%c0_133, %c0_134, %c0_135] : memref<2x13x128xf32, #tpu.memory_space<vmem>>, vector<2x13x128xf32>
    tpu.vector_store %arg40[%c0_133, %c0_134, %c0_135], %261 {strides = array<i32>} : memref<2x13x128xf32, #tpu.memory_space<vmem>>, vector<2x13x128xf32>,
    %c0_136 = arith.constant 0 : index
    %c1_137 = arith.constant 1 : index
    %c0_138 = arith.constant 0 : index
    %264 = vector.load %arg40[%c0_136, %c1_137, %c0_138] : memref<2x13x128xf32, #tpu.memory_space<vmem>>, vector<2x8x128xf32>
    %265 = vector.shape_cast %264 : vector<2x8x128xf32> to vector<16x128xf32>
    %266 = arith.truncf %265 : vector<16x128xf32> to vector<16x128xbf16>
    %c0_139 = arith.constant 0 : index
    %c0_140 = arith.constant 0 : index
    %267 = vector.load %arg7[%c0_139, %c0_140] : memref<128x128xbf16, #tpu.memory_space<vmem>>, vector<128x128xbf16>
    %cst_141 = arith.constant dense<0.000000e+00> : vector<16x128xf32>
    %268 = tpu.matmul %266, %267, %cst_141 {dimension_numbers = #tpu.dot_dimension_numbers<[1], [0], [0], [1], [0, 0, 1, 1], [], []>} : vector<16x128xbf16>, vector<128x128xbf16>, vector<16x128xf32> -> vector<16x128xf32>
    %c0_142 = arith.constant 0 : index
    %c0_143 = arith.constant 0 : index
    %269 = vector.load %arg8[%c0_142, %c0_143] : memref<1x128xf32, #tpu.memory_space<vmem>>, vector<1x128xf32>
    %270 = vector.broadcast %269 : vector<1x128xf32> to vector<16x128xf32>
    %271 = arith.addf %268, %270 : vector<16x128xf32>
    %272 = vector.shape_cast %271 : vector<16x128xf32> to vector<2x8x128xf32>
    %c0_144 = arith.constant 0 : index
    %c0_145 = arith.constant 0 : index
    %c0_146 = arith.constant 0 : index
    %273 = vector.load %arg38[%c0_144, %c0_145, %c0_146] : memref<2x8x128xf32, #tpu.memory_space<vmem>>, vector<2x8x128xf32>
    tpu.vector_store %arg38[%c0_144, %c0_145, %c0_146], %272 {strides = array<i32>} : memref<2x8x128xf32, #tpu.memory_space<vmem>>, vector<2x8x128xf32>,
    %c0_147 = arith.constant 0 : index
    %c1_148 = arith.constant 1 : index
    %c0_149 = arith.constant 0 : index
    %274 = vector.load %arg40[%c0_147, %c1_148, %c0_149] : memref<2x13x128xf32, #tpu.memory_space<vmem>>, vector<2x4x128xf32>
    %275 = vector.shape_cast %274 : vector<2x4x128xf32> to vector<8x128xf32>
    %276 = arith.truncf %275 : vector<8x128xf32> to vector<8x128xbf16>
    %c0_150 = arith.constant 0 : index
    %c0_151 = arith.constant 0 : index
    %277 = vector.load %arg9[%c0_150, %c0_151] : memref<128x128xbf16, #tpu.memory_space<vmem>>, vector<128x128xbf16>
    %cst_152 = arith.constant dense<0.000000e+00> : vector<8x128xf32>
    %278 = tpu.matmul %276, %277, %cst_152 {dimension_numbers = #tpu.dot_dimension_numbers<[1], [0], [0], [1], [0, 0, 1, 1], [], []>} : vector<8x128xbf16>, vector<128x128xbf16>, vector<8x128xf32> -> vector<8x128xf32>
    %c0_153 = arith.constant 0 : index
    %c0_154 = arith.constant 0 : index
    %279 = vector.load %arg10[%c0_153, %c0_154] : memref<1x128xf32, #tpu.memory_space<vmem>>, vector<1x128xf32>
    %280 = vector.broadcast %279 : vector<1x128xf32> to vector<8x128xf32>
    %281 = arith.addf %278, %280 : vector<8x128xf32>
    %282 = vector.shape_cast %281 : vector<8x128xf32> to vector<2x4x128xf32>
    %c0_155 = arith.constant 0 : index
    %c0_156 = arith.constant 0 : index
    %c0_157 = arith.constant 0 : index
    %283 = vector.load %arg39[%c0_155, %c0_156, %c0_157] : memref<2x4x128xf32, #tpu.memory_space<vmem>>, vector<2x4x128xf32>
    tpu.vector_store %arg39[%c0_155, %c0_156, %c0_157], %282 {strides = array<i32>} : memref<2x4x128xf32, #tpu.memory_space<vmem>>, vector<2x4x128xf32>,
    return
  }
}

</mosaic_0001>

<bundles_post_ra>
// kernel: tpu_custom_call.1
= control target key start
LH: loop header
LB: loop body
LE: loop exit
PB: predicated region body
PF: predicated region fallthrough
CT: control target
= control target key end

     0   :  { %s11735_s6 = smov 1   ;;  %s11736_s10 = smov 2   ;;  %s13614_s0 = inlined_call_operand.smem [shape: u32[40], index: -1, kind: input, shape index: {}] }
   0x1   :  { %s11815_s5 = sld [smem:[%s13614_s0]]   ;;  %s11737_s14 = smov 3  }
   0x2   :  { %s11820_s9 = sld [smem:[%s13614_s0 + %s11735_s6]]   ;;  %s11738_s18 = smov 4  }
   0x3   :  { %s11825_s13 = sld [smem:[%s13614_s0 + %s11736_s10]]   ;;  %s11739_s22 = smov 5  }
   0x4   :  { %s11830_s17 = sld [smem:[%s13614_s0 + %s11737_s14]]   ;;  %s11740_s26 = smov 6  }
   0x5   :  { %s11835_s21 = sld [smem:[%s13614_s0 + %s11738_s18]]   ;;  %s11741_s30 = smov 7  }
   0x6   :  { %s11840_s25 = sld [smem:[%s13614_s0 + %s11739_s22]]   ;;  %s11742_s4 = smov 8  }
   0x7   :  { %s11845_s29 = sld [smem:[%s13614_s0 + %s11740_s26]]   ;;  %s11743_s10 = smov 9  }
   0x8   :  { %s11850_s3 = sld [smem:[%s13614_s0 + %s11741_s30]]   ;;  %s11744_s15 = smov 10  }
   0x9   :  { %13619 = sst [smem:[#allocation44_spill]] %s11825_s13  ;;  %s11745_s20 = smov 11  }
   0xa   :  { %s11855_s8 = sld [smem:[%s13614_s0 + %s11742_s4]]   ;;  %s11746_s26 = smov 12  }
   0xb   :  { %13620 = sst [smem:[#allocation45_spill]] %s11835_s21  ;;  %s11747_s1 = smov 13  }
   0xc   :  { %s11860_s14 = sld [smem:[%s13614_s0 + %s11743_s10]]   ;;  %s11748_s7 = smov 14  }
   0xd   :  { %13621 = sst [smem:[#allocation46_spill]] %s11845_s29  ;;  %s11750_s22 = smov 16  }
   0xe   :  { %s11865_s19 = sld [smem:[%s13614_s0 + %s11744_s15]]   ;;  %s11749_s15 = smov 15  }
   0xf   :  { %s11870_s24 = sld [smem:[%s13614_s0 + %s11745_s20]]   ;;  %s11751_s28 = smov 17  }
  0x10   :  { %13622 = sst [smem:[#allocation47_spill]] %s11855_s8 }
  0x11   :  { %s11875_s30 = sld [smem:[%s13614_s0 + %s11746_s26]]  }
  0x12   :  { %s11880_s6 = sld [smem:[%s13614_s0 + %s11747_s1]]  }
  0x13   :  { %s11885_s12 = sld [smem:[%s13614_s0 + %s11748_s7]]   ;;  %s11752_s7 = smov 18  }
  0x14   :  { %13623 = sst [smem:[#allocation48_spill]] %s11865_s19 }
  0x15   :  { %13624 = sst [smem:[#allocation49_spill]] %s11870_s24 }
  0x16   :  { %s11890_s20 = sld [smem:[%s13614_s0 + %s11749_s15]]   ;;  %s11753_s15 = smov 19  }
  0x17   :  { %13625 = sst [smem:[#allocation50_spill]] %s11875_s30 }
  0x18   :  { %s11895_s27 = sld [smem:[%s13614_s0 + %s11750_s22]]   ;;  %s11754_s22 = smov 20  }
  0x19   :  { %s11900_s4 = sld [smem:[%s13614_s0 + %s11751_s28]]   ;;  %s11755_s28 = smov 21  }
  0x1a   :  { %s11905_s8 = sld [smem:[%s13614_s0 + %s11752_s7]]   ;;  %s11756_s7 = smov 22  }
  0x1b   :  { %s11910_s19 = sld [smem:[%s13614_s0 + %s11753_s15]]   ;;  %s11757_s15 = smov 23  }
  0x1c   :  { %s11915_s29 = sld [smem:[%s13614_s0 + %s11754_s22]]   ;;  %s11758_s22 = smov 24  }
  0x1f   :  { %13626 = sst [smem:[#allocation51_spill]] %s11900_s4 }
  0x20   :  { %13627 = sst [smem:[#allocation52_spill]] %s11905_s8 }
  0x21   :  { %13628 = sst [smem:[#allocation53_spill]] %s11910_s19 }
  0x22   :  { %13629 = sst [smem:[#allocation54_spill]] %s11915_s29 }
  0x23   :  { %s11920_s4 = sld [smem:[%s13614_s0 + %s11755_s28]]   ;;  %s11759_s28 = smov 25  }
  0x24   :  { %s11925_s8 = sld [smem:[%s13614_s0 + %s11756_s7]]   ;;  %s11760_s7 = smov 26  }
  0x25   :  { %s11930_s19 = sld [smem:[%s13614_s0 + %s11757_s15]]   ;;  %s11761_s15 = smov 27  }
  0x26   :  { %s11935_s29 = sld [smem:[%s13614_s0 + %s11758_s22]]   ;;  %s11762_s22 = smov 28  }
  0x27   :  { %s11940_s21 = sld [smem:[%s13614_s0 + %s11759_s28]]   ;;  %s11763_s28 = smov 29  }
  0x28   :  { %s11950_s13 = sld [smem:[%s13614_s0 + %s11761_s15]]   ;;  %s11765_s15 = smov 31  }
  0x29   :  { %s11970_s24 = sld [smem:[%s13614_s0 + %s11765_s15]]   ;;  %s11769_s15 = smov 35  }
  0x2a   :  { %13630 = sst [smem:[#allocation55_spill]] %s11925_s8 }
  0x2b   :  { %s11945_s8 = sld [smem:[%s13614_s0 + %s11760_s7]]   ;;  %s11764_s7 = smov 30  }
  0x2c   :  { %13631 = sst [smem:[#allocation56_spill]] %s11935_s29 }
  0x2d   :  { %13632 = sst [smem:[#allocation57_spill]] %s11940_s21 }
  0x2e   :  { %s11955_s29 = sld [smem:[%s13614_s0 + %s11762_s22]]   ;;  %s11766_s22 = smov 32  }
  0x2f   :  { %s11960_s21 = sld [smem:[%s13614_s0 + %s11763_s28]]   ;;  %s11767_s28 = smov 33  }
  0x30   :  { %s11965_s30 = sld [smem:[%s13614_s0 + %s11764_s7]]   ;;  %s11768_s7 = smov 34  }
  0x31   :  { %13633 = sst [smem:[#allocation58_spill]] %s11945_s8 }
  0x32   :  { %13637 = sst [smem:[#allocation62_spill]] %s11970_s24 }
  0x33   :  { %s11990_s24 = sld [smem:[%s13614_s0 + %s11769_s15]]   ;;  %s11773_s15 = smov 39  }
  0x34   :  { %13634 = sst [smem:[#allocation59_spill]] %s11955_s29 }
  0x35   :  { %13635 = sst [smem:[#allocation60_spill]] %s11960_s21 }
  0x36   :  { %13636 = sst [smem:[#allocation61_spill]] %s11965_s30 }
  0x37   :  { %s11975_s29 = sld [smem:[%s13614_s0 + %s11766_s22]]   ;;  %s11770_s22 = smov 36  }
  0x38   :  { %s11980_s21 = sld [smem:[%s13614_s0 + %s11767_s28]]   ;;  %s11771_s28 = smov 37  }
  0x39   :  { %s11985_s30 = sld [smem:[%s13614_s0 + %s11768_s7]]   ;;  %s11772_s7 = smov 38  }
  0x3a   :  { %13640 = sst [smem:[#allocation65_spill]] %s11990_s24 }
  0x3b   :  { %s12000_s8 = sld [smem:[%s13614_s0 + %s11771_s28]]  }
  0x3c   :  { %s12010_s24 = sld [smem:[%s13614_s0 + %s11773_s15]]  }
  0x3d   :  { %13638 = sst [smem:[#allocation63_spill]] %s11975_s29 }
  0x3e   :  { %s11995_s29 = sld [smem:[%s13614_s0 + %s11770_s22]]  }
  0x3f   :  { %13639 = sst [smem:[#allocation64_spill]] %s11985_s30 }
  0x40   :  { %s12005_s30 = sld [smem:[%s13614_s0 + %s11772_s7]]  }
  0x41   :  { %85 = vsyncpa [#allocation4], 0 }
  0x42   :  { %86 = vsyncpa [#allocation7], 0 }
  0x43   :  { %87 = vsyncpa [#allocation10], 0 }
  0x44   :  { %88 = vsyncpa [#allocation13], 0 }
  0x45   :  { %89 = vsyncpa [#allocation16], 0 }
  0x46   :  { %90 = vsyncpa [#allocation19], 0 }
  0x47   :  { %91 = vsyncpa [#allocation22], 0 }
  0x48   :  { %92 = vsyncpa [#allocation25], 0 }
  0x49   :  { %93 = vsyncpa [#allocation28], 0 }
  0x4a   :  { %94 = vsyncpa [#allocation5], 0 }
  0x4b   :  { %95 = vsyncpa [#allocation32], 0  ;;  %s11774_s22 = smov [#allocation6]   ;;  %s11295_s26 = scalar_lea.hbm %s11820_s9, 128 }
  0x4c   :  { %s113_s23 = sshll.u32 %s11774_s22, 4  ;;  %p11296_p0 = scmp.ne.s32.totalorder %s11820_s9, %s11295_s26  ;;  %s114_s23 = int_to_ptr.vmem [resolvable:$true] %s113_s23 }
  0x4d   :  { %p11299_p1 = scmp.lt.u32.totalorder %s11295_s26, %s11820_s9 }
  0x4f   :  { %p11301_p2 = pnand %p11299_p1, %p11296_p0 }
  0x51   :  { %11304 = shalt.err (!%p11301_p2)
}
  0x52   :  { %s11305_s0 = scalar_lea.vmem %s114_s23, 128  ;;  %p11310_p4 = scmp.lt.s32.totalorder %s114_s23, %s114_s23 }
  0x53   :  { %p11306_p3 = scmp.ne.s32.totalorder %s114_s23, %s11305_s0  ;;  %p11311_p5 = scmp.lt.s32.totalorder %s11305_s0, %s11305_s0 }
  0x55   :  { %p11312_p6 = por %p11311_p5, %p11310_p4 }
  0x57   :  { %p11313_p7 = pnand %p11312_p6, %p11306_p3 }
  0x59   :  { %11316 = shalt.err (!%p11313_p7)
}
  0x5a   :  { %s11775_s28 = smov 64   ;;  %s11776_s1 = smov 4  }
  0x5b   :  { %119 = dma.hbm_to_vmem [thread:$0]  %s11820_s9, 128, %s114_s23, [#allocation7], %s11775_s28, %s11775_s28, %s11776_s1  }
  0x5c   :  { %s11777_s2 = smov [#allocation9]   ;;  %s11778_s10 = smov [#allocation12]  }
  0x5d   :  { %s141_s7 = sshll.u32 %s11777_s2, 4  ;;  %s169_s11 = sshll.u32 %s11778_s10, 4  ;;  %s142_s7 = int_to_ptr.vmem [resolvable:$true] %s141_s7  ;;  %s170_s11 = int_to_ptr.vmem [resolvable:$true] %s169_s11 }
  0x5e   :  { %s11317_s15 = scalar_lea.hbm %s11840_s25, 1024 }
  0x5f   :  { %p11318_p8 = scmp.ne.s32.totalorder %s11840_s25, %s11317_s15  ;;  %p11321_p9 = scmp.lt.u32.totalorder %s11317_s15, %s11840_s25 }
  0x61   :  { %p11323_p10 = pnand %p11321_p9, %p11318_p8 }
  0x63   :  { %11326 = shalt.err (!%p11323_p10)
}
  0x64   :  { %s11327_s16 = scalar_lea.vmem %s142_s7, 1024  ;;  %p11332_p12 = scmp.lt.s32.totalorder %s142_s7, %s142_s7 }
  0x65   :  { %p11328_p11 = scmp.ne.s32.totalorder %s142_s7, %s11327_s16  ;;  %p11333_p13 = scmp.lt.s32.totalorder %s11327_s16, %s11327_s16 }
  0x67   :  { %p11334_p0 = por %p11333_p13, %p11332_p12 }
  0x69   :  { %p11335_p1 = pnand %p11334_p0, %p11328_p11 }
  0x6b   :  { %11338 = shalt.err (!%p11335_p1)
}
  0x6c   :  { %147 = dma.hbm_to_vmem [thread:$0]  %s11840_s25, 1024, %s142_s7, [#allocation10], %s11775_s28, %s11775_s28, %s11776_s1  }
  0x6d   :  { %s11339_s9 = scalar_lea.hbm %s11860_s14, 1024 }
  0x6e   :  { %p11340_p2 = scmp.ne.s32.totalorder %s11860_s14, %s11339_s9  ;;  %p11343_p3 = scmp.lt.u32.totalorder %s11339_s9, %s11860_s14 }
  0x70   :  { %p11345_p4 = pnand %p11343_p3, %p11340_p2 }
  0x72   :  { %11348 = shalt.err (!%p11345_p4)
}
  0x73   :  { %s11349_s18 = scalar_lea.vmem %s170_s11, 1024  ;;  %p11354_p6 = scmp.lt.s32.totalorder %s170_s11, %s170_s11 }
  0x74   :  { %p11350_p5 = scmp.ne.s32.totalorder %s170_s11, %s11349_s18  ;;  %p11355_p7 = scmp.lt.s32.totalorder %s11349_s18, %s11349_s18 }
  0x76   :  { %p11356_p8 = por %p11355_p7, %p11354_p6 }
  0x78   :  { %p11357_p9 = pnand %p11356_p8, %p11350_p5 }
  0x7a   :  { %11360 = shalt.err (!%p11357_p9)
}
  0x7b   :  { %175 = dma.hbm_to_vmem [thread:$0]  %s11860_s14, 1024, %s170_s11, [#allocation13], %s11775_s28, %s11775_s28, %s11776_s1  }
  0x7c   :  { %s11779_s25 = smov [#allocation15]   ;;  %s11780_s23 = smov [#allocation18]  }
  0x7d   :  { %s199_s22 = sshll.u32 %s11779_s25, 4  ;;  %s223_s26 = sshll.u32 %s11780_s23, 4  ;;  %s200_s22 = int_to_ptr.vmem [resolvable:$true] %s199_s22  ;;  %s224_s26 = int_to_ptr.vmem [resolvable:$true] %s223_s26 }
  0x7e   :  { %s11361_s0 = scalar_lea.hbm %s11885_s12, 1024 }
  0x7f   :  { %p11362_p10 = scmp.ne.s32.totalorder %s11885_s12, %s11361_s0  ;;  %p11365_p11 = scmp.lt.u32.totalorder %s11361_s0, %s11885_s12 }
  0x81   :  { %p11367_p12 = pnand %p11365_p11, %p11362_p10 }
  0x83   :  { %11370 = shalt.err (!%p11367_p12)
}
  0x84   :  { %s11371_s2 = scalar_lea.vmem %s200_s22, 1024  ;;  %p11376_p0 = scmp.lt.s32.totalorder %s200_s22, %s200_s22 }
  0x85   :  { %p11372_p13 = scmp.ne.s32.totalorder %s200_s22, %s11371_s2  ;;  %p11377_p1 = scmp.lt.s32.totalorder %s11371_s2, %s11371_s2 }
  0x87   :  { %p11378_p2 = por %p11377_p1, %p11376_p0 }
  0x89   :  { %p11379_p3 = pnand %p11378_p2, %p11372_p13 }
  0x8b   :  { %11382 = shalt.err (!%p11379_p3)
}
  0x8c   :  { %205 = dma.hbm_to_vmem [thread:$0]  %s11885_s12, 1024, %s200_s22, [#allocation16], %s11775_s28, %s11775_s28, %s11776_s1  }
  0x8d   :  { %s11383_s14 = scalar_lea.hbm %s11895_s27, 1024 }
  0x8e   :  { %p11384_p4 = scmp.ne.s32.totalorder %s11895_s27, %s11383_s14  ;;  %p11387_p5 = scmp.lt.u32.totalorder %s11383_s14, %s11895_s27 }
  0x90   :  { %p11389_p6 = pnand %p11387_p5, %p11384_p4 }
  0x92   :  { %11392 = shalt.err (!%p11389_p6)
}
  0x93   :  { %s11393_s7 = scalar_lea.vmem %s224_s26, 1024  ;;  %p11398_p8 = scmp.lt.s32.totalorder %s224_s26, %s224_s26 }
  0x94   :  { %p11394_p7 = scmp.ne.s32.totalorder %s224_s26, %s11393_s7  ;;  %p11399_p9 = scmp.lt.s32.totalorder %s11393_s7, %s11393_s7 }
  0x96   :  { %p11400_p10 = por %p11399_p9, %p11398_p8 }
  0x98   :  { %p11401_p11 = pnand %p11400_p10, %p11394_p7 }
  0x9a   :  { %11404 = shalt.err (!%p11401_p11)
}
  0x9b   :  { %229 = dma.hbm_to_vmem [thread:$0]  %s11895_s27, 1024, %s224_s26, [#allocation19], %s11775_s28, %s11775_s28, %s11776_s1  }
  0x9c   :  { %s11781_s12 = smov [#allocation21]   ;;  %s11782_s11 = smov [#allocation24]  }
  0x9d   :  { %s257_s10 = sshll.u32 %s11781_s12, 4  ;;  %s285_s15 = sshll.u32 %s11782_s11, 4  ;;  %s258_s10 = int_to_ptr.vmem [resolvable:$true] %s257_s10  ;;  %s286_s15 = int_to_ptr.vmem [resolvable:$true] %s285_s15 }
  0x9e   :  { %s11405_s16 = scalar_lea.hbm %s11930_s19, 4096 }
  0x9f   :  { %p11406_p12 = scmp.ne.s32.totalorder %s11930_s19, %s11405_s16  ;;  %p11409_p13 = scmp.lt.u32.totalorder %s11405_s16, %s11930_s19 }
  0xa1   :  { %p11411_p0 = pnand %p11409_p13, %p11406_p12 }
  0xa3   :  { %11414 = shalt.err (!%p11411_p0)
}
  0xa4   :  { %s11415_s9 = scalar_lea.vmem %s258_s10, 4096  ;;  %p11420_p2 = scmp.lt.s32.totalorder %s258_s10, %s258_s10 }
  0xa5   :  { %p11416_p1 = scmp.ne.s32.totalorder %s258_s10, %s11415_s9  ;;  %p11421_p3 = scmp.lt.s32.totalorder %s11415_s9, %s11415_s9 }
  0xa7   :  { %p11422_p4 = por %p11421_p3, %p11420_p2 }
  0xa9   :  { %p11423_p5 = pnand %p11422_p4, %p11416_p1 }
  0xab   :  { %11426 = shalt.err (!%p11423_p5)
}
  0xac   :  { %263 = dma.hbm_to_vmem [thread:$0]  %s11930_s19, 4096, %s258_s10, [#allocation22], %s11775_s28, %s11775_s28, %s11776_s1  }
  0xad   :  { %s11427_s27 = scalar_lea.hbm %s11950_s13, 1024 }
  0xae   :  { %p11428_p6 = scmp.ne.s32.totalorder %s11950_s13, %s11427_s27  ;;  %p11431_p7 = scmp.lt.u32.totalorder %s11427_s27, %s11950_s13 }
  0xb0   :  { %p11433_p8 = pnand %p11431_p7, %p11428_p6 }
  0xb2   :  { %11436 = shalt.err (!%p11433_p8)
}
  0xb3   :  { %s11437_s18 = scalar_lea.vmem %s286_s15, 1024  ;;  %p11442_p10 = scmp.lt.s32.totalorder %s286_s15, %s286_s15 }
  0xb4   :  { %p11438_p9 = scmp.ne.s32.totalorder %s286_s15, %s11437_s18  ;;  %p11443_p11 = scmp.lt.s32.totalorder %s11437_s18, %s11437_s18 }
  0xb6   :  { %p11444_p12 = por %p11443_p11, %p11442_p10 }
  0xb8   :  { %p11445_p13 = pnand %p11444_p12, %p11438_p9 }
  0xba   :  { %11448 = shalt.err (!%p11445_p13)
}
  0xbb   :  { %291 = dma.hbm_to_vmem [thread:$0]  %s11950_s13, 1024, %s286_s15, [#allocation25], %s11775_s28, %s11775_s28, %s11776_s1  }
  0xbc   :  { %s11783_s19 = smov [#allocation27]   ;;  %s11784_s22 = smov [#allocation3]  }
  0xbd   :  { %s317_s25 = sshll.u32 %s11783_s19, 4  ;;  %s101_s23 = sshll.u32 %s11784_s22, 4  ;;  %s318_s25 = int_to_ptr.vmem [resolvable:$true] %s317_s25  ;;  %s102_s23 = int_to_ptr.vmem [resolvable:$true] %s101_s23 }
  0xbe   :  { %s11449_s26 = scalar_lea.hbm %s11980_s21, 4096 }
  0xbf   :  { %p11450_p0 = scmp.ne.s32.totalorder %s11980_s21, %s11449_s26  ;;  %p11453_p1 = scmp.lt.u32.totalorder %s11449_s26, %s11980_s21 }
  0xc1   :  { %p11455_p2 = pnand %p11453_p1, %p11450_p0 }
  0xc3   :  { %11458 = shalt.err (!%p11455_p2)
}
  0xc4   :  { %s11459_s0 = scalar_lea.vmem %s318_s25, 4096  ;;  %p11464_p4 = scmp.lt.s32.totalorder %s318_s25, %s318_s25 }
  0xc5   :  { %p11460_p3 = scmp.ne.s32.totalorder %s318_s25, %s11459_s0  ;;  %p11465_p5 = scmp.lt.s32.totalorder %s11459_s0, %s11459_s0 }
  0xc7   :  { %p11466_p6 = por %p11465_p5, %p11464_p4 }
  0xc9   :  { %p11467_p7 = pnand %p11466_p6, %p11460_p3 }
  0xcb   :  { %11470 = shalt.err (!%p11467_p7)
}
  0xcc   :  { %s11785_s2 = smov 256   ;;  %s11786_s13 = smov 16  }
  0xcd   :  { %323 = dma.hbm_to_vmem [thread:$0]  %s11980_s21, 4096, %s318_s25, [#allocation28], %s11785_s2, %s11785_s2, %s11786_s13  }
  0xce   :  { %s11471_s14 = scalar_lea.hbm %s11815_s5, 64 }
  0xcf   :  { %p11472_p8 = scmp.ne.s32.totalorder %s11815_s5, %s11471_s14  ;;  %p11475_p9 = scmp.lt.u32.totalorder %s11471_s14, %s11815_s5 }
  0xd1   :  { %p11477_p10 = pnand %p11475_p9, %p11472_p8 }
  0xd3   :  { %11480 = shalt.err (!%p11477_p10)
}
  0xd4   :  { %s11481_s7 = scalar_lea.vmem %s102_s23, 64  ;;  %p11486_p12 = scmp.lt.s32.totalorder %s102_s23, %s102_s23 }
  0xd5   :  { %p11482_p11 = scmp.ne.s32.totalorder %s102_s23, %s11481_s7  ;;  %p11487_p13 = scmp.lt.s32.totalorder %s11481_s7, %s11481_s7 }
  0xd7   :  { %p11488_p0 = por %p11487_p13, %p11486_p12 }
  0xd9   :  { %p11489_p1 = pnand %p11488_p0, %p11482_p11 }
  0xdb   :  { %11492 = shalt.err (!%p11489_p1)
}
  0xdc   :  { %s11787_s12 = smov 32   ;;  %s11788_s10 = smov 2  }
  0xdd   :  { %107 = dma.hbm_to_vmem [thread:$0]  %s11815_s5, 64, %s102_s23, [#allocation4], %s11787_s12, %s11787_s12, %s11788_s10  }
  0xde   :  { %s11789_s21 = smov [#allocation8]   ;;  %s11790_s15 = smov [#allocation11]  }
  0xdf   :  { %s127_s11 = sshll.u32 %s11789_s21, 4  ;;  %s155_s16 = sshll.u32 %s11790_s15, 4  ;;  %s128_s11 = int_to_ptr.vmem [resolvable:$true] %s127_s11  ;;  %s156_s16 = int_to_ptr.vmem [resolvable:$true] %s155_s16 }
  0xe0   :  { %s11493_s9 = scalar_lea.hbm %s11830_s17, 1024 }
  0xe1   :  { %p11494_p2 = scmp.ne.s32.totalorder %s11830_s17, %s11493_s9  ;;  %p11497_p3 = scmp.lt.u32.totalorder %s11493_s9, %s11830_s17 }
  0xe3   :  { %p11499_p4 = pnand %p11497_p3, %p11494_p2 }
  0xe5   :  { %11502 = shalt.err (!%p11499_p4)
}
  0xe6   :  { %s11503_s27 = scalar_lea.vmem %s128_s11, 1024  ;;  %p11508_p6 = scmp.lt.s32.totalorder %s128_s11, %s128_s11 }
  0xe7   :  { %p11504_p5 = scmp.ne.s32.totalorder %s128_s11, %s11503_s27  ;;  %p11509_p7 = scmp.lt.s32.totalorder %s11503_s27, %s11503_s27 }
  0xe9   :  { %p11510_p8 = por %p11509_p7, %p11508_p6 }
  0xeb   :  { %p11511_p9 = pnand %p11510_p8, %p11504_p5 }
  0xed   :  { %11514 = shalt.err (!%p11511_p9)
}
  0xee   :  { %133 = dma.hbm_to_vmem [thread:$0]  %s11830_s17, 1024, %s128_s11, [#allocation7], %s11775_s28, %s11775_s28, %s11776_s1  }
  0xef   :  { %s11515_s5 = scalar_lea.hbm %s11850_s3, 1024 }
  0xf0   :  { %p11516_p10 = scmp.ne.s32.totalorder %s11850_s3, %s11515_s5  ;;  %p11519_p11 = scmp.lt.u32.totalorder %s11515_s5, %s11850_s3 }
  0xf2   :  { %p11521_p12 = pnand %p11519_p11, %p11516_p10 }
  0xf4   :  { %11524 = shalt.err (!%p11521_p12)
}
  0xf5   :  { %s11525_s18 = scalar_lea.vmem %s156_s16, 1024  ;;  %p11530_p0 = scmp.lt.s32.totalorder %s156_s16, %s156_s16 }
  0xf6   :  { %p11526_p13 = scmp.ne.s32.totalorder %s156_s16, %s11525_s18  ;;  %p11531_p1 = scmp.lt.s32.totalorder %s11525_s18, %s11525_s18 }
  0xf8   :  { %p11532_p2 = por %p11531_p1, %p11530_p0 }
  0xfa   :  { %p11533_p3 = pnand %p11532_p2, %p11526_p13 }
  0xfc   :  { %11536 = shalt.err (!%p11533_p3)
}
  0xfd   :  { %161 = dma.hbm_to_vmem [thread:$0]  %s11850_s3, 1024, %s156_s16, [#allocation10], %s11775_s28, %s11775_s28, %s11776_s1  }
  0xfe   :  { %s11791_s17 = smov [#allocation14]   ;;  %s11792_s25 = smov [#allocation17]  }
  0xff   :  { %s187_s19 = sshll.u32 %s11791_s17, 4  ;;  %s211_s22 = sshll.u32 %s11792_s25, 4  ;;  %s188_s19 = int_to_ptr.vmem [resolvable:$true] %s187_s19  ;;  %s212_s22 = int_to_ptr.vmem [resolvable:$true] %s211_s22 }
 0x100   :  { %s11537_s23 = scalar_lea.hbm %s11880_s6, 1024 }
 0x101   :  { %p11538_p4 = scmp.ne.s32.totalorder %s11880_s6, %s11537_s23  ;;  %p11541_p5 = scmp.lt.u32.totalorder %s11537_s23, %s11880_s6 }
 0x103   :  { %p11543_p6 = pnand %p11541_p5, %p11538_p4 }
 0x105   :  { %11546 = shalt.err (!%p11543_p6)
}
 0x106   :  { %s11547_s26 = scalar_lea.vmem %s188_s19, 1024  ;;  %p11552_p8 = scmp.lt.s32.totalorder %s188_s19, %s188_s19 }
 0x107   :  { %p11548_p7 = scmp.ne.s32.totalorder %s188_s19, %s11547_s26  ;;  %p11553_p9 = scmp.lt.s32.totalorder %s11547_s26, %s11547_s26 }
 0x109   :  { %p11554_p10 = por %p11553_p9, %p11552_p8 }
 0x10b   :  { %p11555_p11 = pnand %p11554_p10, %p11548_p7 }
 0x10d   :  { %11558 = shalt.err (!%p11555_p11)
}
 0x10e   :  { %193 = dma.hbm_to_vmem [thread:$0]  %s11880_s6, 1024, %s188_s19, [#allocation13], %s11775_s28, %s11775_s28, %s11776_s1  }
 0x10f   :  { %s11559_s3 = scalar_lea.hbm %s11890_s20, 1024 }
 0x110   :  { %p11560_p12 = scmp.ne.s32.totalorder %s11890_s20, %s11559_s3  ;;  %p11563_p13 = scmp.lt.u32.totalorder %s11559_s3, %s11890_s20 }
 0x112   :  { %p11565_p0 = pnand %p11563_p13, %p11560_p12 }
 0x114   :  { %11568 = shalt.err (!%p11565_p0)
}
 0x115   :  { %s11569_s0 = scalar_lea.vmem %s212_s22, 1024  ;;  %p11574_p2 = scmp.lt.s32.totalorder %s212_s22, %s212_s22 }
 0x116   :  { %p11570_p1 = scmp.ne.s32.totalorder %s212_s22, %s11569_s0  ;;  %p11575_p3 = scmp.lt.s32.totalorder %s11569_s0, %s11569_s0 }
 0x118   :  { %p11576_p4 = por %p11575_p3, %p11574_p2 }
 0x11a   :  { %p11577_p5 = pnand %p11576_p4, %p11570_p1 }
 0x11c   :  { %11580 = shalt.err (!%p11577_p5)
}
 0x11d   :  { %217 = dma.hbm_to_vmem [thread:$0]  %s11890_s20, 1024, %s212_s22, [#allocation16], %s11775_s28, %s11775_s28, %s11776_s1  }
 0x11e   :  { %s11793_s6 = smov [#allocation20]   ;;  %s11794_s7 = smov [#allocation23]  }
 0x11f   :  { %s243_s14 = sshll.u32 %s11793_s6, 4  ;;  %s273_s12 = sshll.u32 %s11794_s7, 4  ;;  %s244_s14 = int_to_ptr.vmem [resolvable:$true] %s243_s14  ;;  %s274_s12 = int_to_ptr.vmem [resolvable:$true] %s273_s12 }
 0x120   :  { %s11581_s10 = scalar_lea.hbm %s11920_s4, 4096 }
 0x121   :  { %p11582_p6 = scmp.ne.s32.totalorder %s11920_s4, %s11581_s10  ;;  %p11585_p7 = scmp.lt.u32.totalorder %s11581_s10, %s11920_s4 }
 0x123   :  { %p11587_p8 = pnand %p11585_p7, %p11582_p6 }
 0x125   :  { %11590 = shalt.err (!%p11587_p8)
}
 0x126   :  { %s11591_s21 = scalar_lea.vmem %s244_s14, 4096  ;;  %p11596_p10 = scmp.lt.s32.totalorder %s244_s14, %s244_s14 }
 0x127   :  { %p11592_p9 = scmp.ne.s32.totalorder %s244_s14, %s11591_s21  ;;  %p11597_p11 = scmp.lt.s32.totalorder %s11591_s21, %s11591_s21 }
 0x129   :  { %p11598_p12 = por %p11597_p11, %p11596_p10 }
 0x12b   :  { %p11599_p13 = pnand %p11598_p12, %p11592_p9 }
 0x12d   :  { %11602 = shalt.err (!%p11599_p13)
}
 0x12e   :  { %s13641_s20 = sld [smem:[#allocation58_spill]] }
 0x12f   :  { %249 = dma.hbm_to_vmem [thread:$0]  %s11920_s4, 4096, %s244_s14, [#allocation19], %s11785_s2, %s11785_s2, %s11786_s13  }
 0x134   :  { %s11603_s11 = scalar_lea.hbm %s13641_s20, 1024 }
 0x135   :  { %p11604_p0 = scmp.ne.s32.totalorder %s13641_s20, %s11603_s11  ;;  %p11607_p1 = scmp.lt.u32.totalorder %s11603_s11, %s13641_s20 }
 0x137   :  { %p11609_p2 = pnand %p11607_p1, %p11604_p0 }
 0x139   :  { %11612 = shalt.err (!%p11609_p2)
}
 0x13a   :  { %s11613_s15 = scalar_lea.vmem %s274_s12, 1024  ;;  %p11618_p4 = scmp.lt.s32.totalorder %s274_s12, %s274_s12 }
 0x13b   :  { %p11614_p3 = scmp.ne.s32.totalorder %s274_s12, %s11613_s15  ;;  %p11619_p5 = scmp.lt.s32.totalorder %s11613_s15, %s11613_s15 }
 0x13d   :  { %p11620_p6 = por %p11619_p5, %p11618_p4 }
 0x13f   :  { %p11621_p7 = pnand %p11620_p6, %p11614_p3 }
 0x141   :  { %11624 = shalt.err (!%p11621_p7)
}
 0x142   :  { %s13642_s16 = sld [smem:[#allocation59_spill]]  ;;  %s11795_s4 = smov [#allocation26]  }
 0x143   :  { %279 = dma.hbm_to_vmem [thread:$0]  %s13641_s20, 1024, %s274_s12, [#allocation22], %s11775_s28, %s11775_s28, %s11776_s1  }
 0x144   :  { %s297_s2 = sshll.u32 %s11795_s4, 4  ;;  %s11796_s13 = smov [#allocation29]   ;;  %s298_s2 = int_to_ptr.vmem [resolvable:$true] %s297_s2 }
 0x145   :  { %s331_s9 = sshll.u32 %s11796_s13, 4  ;;  %s332_s9 = int_to_ptr.vmem [resolvable:$true] %s331_s9 }
 0x148   :  { %s11625_s27 = scalar_lea.hbm %s13642_s16, 1024 }
 0x149   :  { %p11626_p8 = scmp.ne.s32.totalorder %s13642_s16, %s11625_s27  ;;  %p11629_p9 = scmp.lt.u32.totalorder %s11625_s27, %s13642_s16 }
 0x14b   :  { %p11631_p10 = pnand %p11629_p9, %p11626_p8 }
 0x14d   :  { %11634 = shalt.err (!%p11631_p10)
}
 0x14e   :  { %s11635_s5 = scalar_lea.vmem %s298_s2, 1024  ;;  %p11640_p12 = scmp.lt.s32.totalorder %s298_s2, %s298_s2 }
 0x14f   :  { %p11636_p11 = scmp.ne.s32.totalorder %s298_s2, %s11635_s5  ;;  %p11641_p13 = scmp.lt.s32.totalorder %s11635_s5, %s11635_s5 }
 0x151   :  { %p11642_p0 = por %p11641_p13, %p11640_p12 }
 0x153   :  { %p11643_p1 = pnand %p11642_p0, %p11636_p11 }
 0x155   :  { %11646 = shalt.err (!%p11643_p1)
}
 0x156   :  { %s13643_s18 = sld [smem:[#allocation65_spill]] }
 0x157   :  { %303 = dma.hbm_to_vmem [thread:$0]  %s13642_s16, 1024, %s298_s2, [#allocation25], %s11775_s28, %s11775_s28, %s11776_s1  }
 0x15c   :  { %s11647_s17 = scalar_lea.hbm %s13643_s18, 4096 }
 0x15d   :  { %p11648_p2 = scmp.ne.s32.totalorder %s13643_s18, %s11647_s17  ;;  %p11651_p3 = scmp.lt.u32.totalorder %s11647_s17, %s13643_s18 }
 0x15f   :  { %p11653_p4 = pnand %p11651_p3, %p11648_p2 }
 0x161   :  { %11656 = shalt.err (!%p11653_p4)
}
 0x162   :  { %s11657_s19 = scalar_lea.vmem %s332_s9, 4096  ;;  %p11662_p6 = scmp.lt.s32.totalorder %s332_s9, %s332_s9 }
 0x163   :  { %p11658_p5 = scmp.ne.s32.totalorder %s332_s9, %s11657_s19  ;;  %p11663_p7 = scmp.lt.s32.totalorder %s11657_s19, %s11657_s19 }
 0x165   :  { %p11664_p8 = por %p11663_p7, %p11662_p6 }
 0x167   :  { %p11665_p9 = pnand %p11664_p8, %p11658_p5 }
 0x169   :  { %11668 = shalt.err (!%p11665_p9)
}
 0x16a   :  { %337 = dma.hbm_to_vmem [thread:$0]  %s13643_s18, 4096, %s332_s9, [#allocation28], %s11775_s28, %s11775_s28, %s11776_s1  }
 0x16b   :  { %11713 = dma.done.wait [#allocation4], 64  }
 0x16c   :  { %11714 = vsyncadd [#allocation4], 4294967232 }
 0x16d   :  { %11715 = dma.done.wait [#allocation7], 1152  }
 0x16e   :  { %11716 = vsyncadd [#allocation7], 4294966144 }
 0x16f   :  { %11717 = dma.done.wait [#allocation10], 2048  }
 0x170   :  { %11718 = vsyncadd [#allocation10], 4294965248 }
 0x171   :  { %11719 = dma.done.wait [#allocation13], 2048  }
 0x172   :  { %11720 = vsyncadd [#allocation13], 4294965248 }
 0x173   :  { %11721 = dma.done.wait [#allocation16], 2048  }
 0x174   :  { %11722 = vsyncadd [#allocation16], 4294965248 }
 0x175   :  { %11723 = dma.done.wait [#allocation19], 5120  }
 0x176   :  { %11724 = vsyncadd [#allocation19], 4294962176 }
 0x177   :  { %11725 = dma.done.wait [#allocation22], 5120  }
 0x178   :  { %11726 = vsyncadd [#allocation22], 4294962176 }
 0x179   :  { %11727 = dma.done.wait [#allocation25], 2048  }
 0x17a   :  { %11728 = vsyncadd [#allocation25], 4294965248 }
 0x17b   :  { %11729 = dma.done.wait [#allocation28], 8192  }
 0x17c   :  { %11730 = vsyncadd [#allocation28], 4294959104  ;;  %v11797_v0 = vmov 0.0   ;;  %v400_v1 = vlaneseq  ;;  %vm11798_vm0 = vmmov 0   ;;  %v11799_v2 = vmov 1983009808  }
 0x17d   :  { %10539 = vmatprep.subr.bf16.mxu0 %v11797_v0  ;;  %10559 = vmatprep.subr.bf16.mxu1 %v11797_v0  ;;  %v533_v3 = vunpack.c.l.s4 %v11799_v2  ;;  %v10905_v6 = vld [vmem:[#allocation8] sm:$0xff]   ;;  %vm548_vm1 = vcmask 1045504   ;;  %v10906_v7 = vld [vmem:[#allocation6] sm:$0x3f]   ;;  %v10907_v8 = vld [vmem:[#allocation8 + $0x8] sm:$0xff]   ;;  %vm544_vm2 = vcmask 97280  }
 0x17e   :  { %10561 = vmatprep.mubr.msk.bf16.mxu1 %vm11798_vm0, %v11797_v0  ;;  %10555 = vmatprep.mubr.msk.bf16.mxu0 %vm11798_vm0, %v11797_v0  ;;  %v12134_v4 = vshrl.u32 %v400_v1, 7  ;;  %v550_v10 = vsel %vm548_vm1, %v10906_v7, 0  ;;  %v518_v11 = vld [vmem:[#allocation3] sm:$0x3]  ;;  %v519_v12 = vld [vmem:[#allocation3 + $0x2] sm:$0x3] }
 0x17f   :  { %v534_v5 = vunpack.c.0.s8 %v533_v3  ;;  %10540 = vmatpush3.bf16.msra.mxu0 %v10905_v6  ;;  %10560 = vmatpush3.bf16.msra.mxu1 %v550_v10  ;;  %v531_v13 = vcombine.low %v518_v11, %v519_v12  ;;  %v10908_v15 = vld [vmem:[#allocation8 + $0x10] sm:$0xff]   ;;  %s13644_s25 = sld [smem:[#allocation49_spill]]  ;;  %v10909_v16 = vld [vmem:[#allocation8 + $0x18] sm:$0xff]   ;;  %v10914_v17 = vld [vmem:[#allocation9] sm:$0xff]   ;;  %s13645_s22 = sld [smem:[#allocation50_spill]]  ;;  %vm717_vm3 = vcmask 1044480  }
 0x180   :  { %10541 = vmatprep.subr.bf16.mxu0 %v11797_v0  ;;  %10565 = vmatprep.subr.bf16.mxu1 %v11797_v0  ;;  %v10915_v18 = vld [vmem:[#allocation9 + $0x8] sm:$0xff]   ;;  %v10910_v19 = vld [vmem:[#allocation8 + $0x20] sm:$0xff]   ;;  %v12147_v21 = vsub.s32 0, %v12134_v4  ;;  %v10916_v22 = vld [vmem:[#allocation9 + $0x10] sm:$0xff]   ;;  %s13646_s23 = sld [smem:[#allocation44_spill]]  ;;  %s13647_s26 = sld [smem:[#allocation45_spill]] }
 0x181   :  { %v537_v9 = vsub.s32 %v534_v5, %v12134_v4  ;;  %v10911_v20 = vld [vmem:[#allocation8 + $0x28] sm:$0xff]   ;;  %v10917_v24 = vld [vmem:[#allocation9 + $0x18] sm:$0xff]   ;;  %v10912_v25 = vld [vmem:[#allocation8 + $0x30] sm:$0xff]   ;;  %s13648_s3 = sld [smem:[#allocation46_spill]]  ;;  %s13649_s0 = sld [smem:[#allocation51_spill]]  ;;  %vm2674_vm4 = vcmask 1046528  }
 0x182   :  { %v10918_v27 = vld [vmem:[#allocation9 + $0x20] sm:$0xff]   ;;  %v10913_v28 = vld [vmem:[#allocation8 + $0x38] sm:$0xff]   ;;  %v10919_v30 = vld [vmem:[#allocation9 + $0x28] sm:$0xff]   ;;  %s13650_s6 = sld [smem:[#allocation52_spill]]  ;;  %vm2623_vm5 = vcmask 105472   ;;  %vm2627_vm6 = vcmask 102400  }
 0x183   :  { %10542 = vmatpush3.bf16.msra.mxu0 %v10907_v8  ;;  %v538_v14 = vrot.slane %v531_v13, %v537_v9  ;;  %v10920_v32 = vld [vmem:[#allocation9 + $0x30] sm:$0xff]   ;;  %v10921_v33 = vld [vmem:[#allocation9 + $0x38] sm:$0xff]   ;;  %s13651_s14 = sld [smem:[#allocation53_spill]]  ;;  %s13652_s7 = sld [smem:[#allocation54_spill]] }
 0x184   :  { %10543 = vmatprep.subr.bf16.mxu0 %v11797_v0  ;;  %s13653_s12 = sld [smem:[#allocation55_spill]]  ;;  %s13654_s10 = sld [smem:[#allocation56_spill]] }
 0x185   :  { %10562 = vmatmul.mubr.msk.bf16.vlgmr.msra.gmra.mrb[0].mxu1 %vm544_vm2, %v538_v14  ;;  %v395_v23 = vld [vmem:[%s13644_s25] sm:$0x1]  ;;  %s13655_s21 = sld [smem:[#allocation57_spill]]  ;;  %s13656_s20 = sld [smem:[#allocation60_spill]] }
 0x186   :  { %10581 = vmatprep.mubr.msk.bf16.mxu1 %vm11798_vm0, %v11797_v0  ;;  %10566 = vmatpush3.bf16.msra.mxu1 %v10914_v17  ;;  %v396_v26 = vpack.c.bf16 %v395_v23, %v395_v23  ;;  %v392_v34 = vld [vmem:[%s13645_s22] sm:$0x1]  ;;  %s13657_s11 = sld [smem:[#allocation61_spill]]  ;;  %s13658_s15 = sld [smem:[#allocation62_spill]] }
 0x187   :  { %10544 = vmatpush3.bf16.msra.mxu0 %v10908_v15  ;;  %10567 = vmatprep.subr.bf16.mxu1 %v11797_v0  ;;  %394 = vst [vmem:[#allocation2 + $0x10] sm:$0x1] %v392_v34  ;;  %393 = vst [vmem:[#allocation2] sm:$0x1] %v392_v34  ;;  %v10009_v35 = vld [vmem:[%s13646_s23] ss:$0 sm:$0xff] }
 0x188   :  { %10545 = vmatprep.subr.bf16.mxu0 %v11797_v0  ;;  %v398_v29 = vpack.i.b16 %v396_v26, %v396_v26  ;;  %v10000_v42 = vld [vmem:[%s13647_s26] ss:$0 sm:$0xff]  ;;  %v10929_v26 = vld [vmem:[#allocation15 + $0x18] sm:$0xff]   ;;  %s13659_s16 = sld [smem:[#allocation63_spill]]  ;;  %s13660_s4 = sld [smem:[#allocation64_spill]] }
 0x189   :  { %v10012_v55 = vld [vmem:[%s13648_s3] ss:$0 sm:$0xff]  ;;  %v10937_v34 = vld [vmem:[#allocation15 + $0x38] sm:$0xff]   ;;  %s13662_s2 = sld [smem:[#allocation47_spill]]  ;;  %s11803_s13 = smov [#allocation31]  }
 0x18a   :  { %10568 = vmatpush3.bf16.msra.mxu1 %v10915_v18  ;;  %v403_v31 = vrot.slane %v398_v29, %v12147_v21  ;;  %v10922_v18 = vld [vmem:[#allocation14] sm:$0xff]   ;;  %v10926_v23 = vld [vmem:[#allocation14 + $0x10] sm:$0xff]   ;;  %v10932_v29 = vld [vmem:[#allocation14 + $0x28] sm:$0xff]   ;;  %s9935_s9 = sshll.u32 %s11803_s13, 4  ;;  %s11804_s27 = smov [#allocation30]   ;;  %s9936_s9 = int_to_ptr.vmem [resolvable:$true] %s9935_s9 }
 0x18b   :  { %10546 = vmatpush3.bf16.msra.mxu0 %v10909_v16  ;;  %10569 = vmatprep.subr.bf16.mxu1 %v11797_v0  ;;  %s9923_s5 = sshll.u32 %s11804_s27, 4  ;;  %p11674_p11 = scmp.lt.s32.totalorder %s9936_s9, %s9936_s9  ;;  %s13596_s5 = int_to_ptr.vmem [resolvable:$true] %s9923_s5 }
 0x18c   :  { %10547 = vmatprep.subr.bf16.mxu0 %v11797_v0 }
 0x18e   :  { %10570 = vmatpush3.bf16.msra.mxu1 %v10916_v22  ;;  %v10925_v22 = vld [vmem:[#allocation15 + $0x8] sm:$0xff]  }
 0x18f   :  { %10548 = vmatpush3.bf16.msra.mxu0 %v10910_v19  ;;  %10571 = vmatprep.subr.bf16.mxu1 %v11797_v0  ;;  %v10923_v19 = vld [vmem:[#allocation15] sm:$0xff]  }
 0x190   :  { %10549 = vmatprep.subr.bf16.mxu0 %v11797_v0 }
 0x192   :  { %10572 = vmatpush3.bf16.msra.mxu1 %v10917_v24  ;;  %v10927_v24 = vld [vmem:[#allocation15 + $0x10] sm:$0xff]  }
 0x193   :  { %10550 = vmatpush3.bf16.msra.mxu0 %v10911_v20  ;;  %10573 = vmatprep.subr.bf16.mxu1 %v11797_v0  ;;  %v10924_v20 = vld [vmem:[#allocation14 + $0x8] sm:$0xff]  }
 0x194   :  { %10551 = vmatprep.subr.bf16.mxu0 %v11797_v0 }
 0x196   :  { %10574 = vmatpush3.bf16.msra.mxu1 %v10918_v27  ;;  %v10930_v27 = vld [vmem:[#allocation14 + $0x20] sm:$0xff]  }
 0x197   :  { %10552 = vmatpush3.bf16.msra.mxu0 %v10912_v25  ;;  %10575 = vmatprep.subr.bf16.mxu1 %v11797_v0  ;;  %v10928_v25 = vld [vmem:[#allocation14 + $0x18] sm:$0xff]  }
 0x198   :  { %10553 = vmatprep.subr.bf16.mxu0 %v11797_v0 }
 0x19a   :  { %10576 = vmatpush3.bf16.msra.mxu1 %v10919_v30  ;;  %v10933_v30 = vld [vmem:[#allocation15 + $0x28] sm:$0xff]  }
 0x19b   :  { %10554 = vmatpush3.bf16.msra.mxu0 %v10913_v28  ;;  %10577 = vmatprep.subr.bf16.mxu1 %v11797_v0  ;;  %v10931_v28 = vld [vmem:[#allocation15 + $0x20] sm:$0xff]  }
 0x19c   :  { %10585 = vmatprep.subr.bf16.mxu0 %v10922_v18 }
 0x19e   :  { %10556 = vmatmul.mubr.bf16.vlgmr.msra.gmra.mrb[0].mxu0 %v403_v31  ;;  %10578 = vmatpush3.bf16.msra.mxu1 %v10920_v32  ;;  %v10934_v31 = vld [vmem:[#allocation14 + $0x30] sm:$0xff]  }
 0x19f   :  { %10579 = vmatprep.subr.bf16.mxu1 %v11797_v0  ;;  %10586 = vmatpush3.bf16.msra.mxu0 %v10922_v18  ;;  %v10935_v32 = vld [vmem:[#allocation15 + $0x30] sm:$0xff]  }
 0x1a0   :  { %10587 = vmatprep.subr.bf16.mxu0 %v10924_v20 }
 0x1a2   :  { %10580 = vmatpush3.bf16.msra.mxu1 %v10921_v33  ;;  %v10936_v33 = vld [vmem:[#allocation14 + $0x38] sm:$0xff]  }
 0x1a3   :  { %10605 = vmatprep.subr.bf16.mxu1 %v10923_v19  ;;  %10588 = vmatpush3.bf16.msra.mxu0 %v10924_v20 }
 0x1a4   :  { %10589 = vmatprep.subr.bf16.mxu0 %v10926_v23 }
 0x1a7   :  { %10590 = vmatpush3.bf16.msra.mxu0 %v10926_v23 }
 0x1a8   :  { %10591 = vmatprep.subr.bf16.mxu0 %v10928_v25 }
 0x1ab   :  { %10592 = vmatpush3.bf16.msra.mxu0 %v10928_v25 }
 0x1ac   :  { %10593 = vmatprep.subr.bf16.mxu0 %v10930_v27 }
 0x1af   :  { %10594 = vmatpush3.bf16.msra.mxu0 %v10930_v27 }
 0x1b0   :  { %10595 = vmatprep.subr.bf16.mxu0 %v10932_v29 }
 0x1b3   :  { %10596 = vmatpush3.bf16.msra.mxu0 %v10932_v29 }
 0x1b4   :  { %10597 = vmatprep.subr.bf16.mxu0 %v10934_v31 }
 0x1b7   :  { %10598 = vmatpush3.bf16.msra.mxu0 %v10934_v31 }
 0x1b8   :  { %10599 = vmatprep.subr.bf16.mxu0 %v10936_v33 }
 0x1bb   :  { %10600 = vmatpush3.bf16.msra.mxu0 %v10936_v33 }
 0x258   :  { %v586_v36 = vpop.f32.mrb[0].mxu1 }
 0x259   :  { %v587_v37 = vadd.f32 %v10009_v35, %v586_v36  ;;  %v10563_v38 = vpop.f32.mrb[1].mxu1  ;;  %v12184_v35 = vld [vmem:[#allocation17] sm:$0xff]  }
 0x25a   :  { %v589_v39 = vpop.f32.mrb[2].mxu1  ;;  %10625 = vmatprep.subr.bf16.mxu0 %v12184_v35 }
 0x25b   :  { %v592_v40 = vpack.c.bf16 %v587_v37, %v587_v37  ;;  %v10564_v41 = vpop.f32.mrb[3].mxu1 }
 0x25d   :  { %10582 = vmatmul.mubr.bf16.vlgmr.msra.gmra.mrb[4].mxu1 %v592_v40 }
 0x25e   :  { %10606 = vmatpush3.bf16.msra.mxu1 %v10923_v19 }
 0x25f   :  { %10607 = vmatprep.subr.bf16.mxu1 %v10925_v22 }
 0x262   :  { %10608 = vmatpush3.bf16.msra.mxu1 %v10925_v22 }
 0x263   :  { %10609 = vmatprep.subr.bf16.mxu1 %v10927_v24 }
 0x266   :  { %10610 = vmatpush3.bf16.msra.mxu1 %v10927_v24 }
 0x267   :  { %10611 = vmatprep.subr.bf16.mxu1 %v10929_v26 }
 0x26a   :  { %10612 = vmatpush3.bf16.msra.mxu1 %v10929_v26 }
 0x26b   :  { %10613 = vmatprep.subr.bf16.mxu1 %v10931_v28 }
 0x26e   :  { %10614 = vmatpush3.bf16.msra.mxu1 %v10931_v28 }
 0x26f   :  { %10615 = vmatprep.subr.bf16.mxu1 %v10933_v30 }
 0x271   :  { %v509_v43 = vpop.f32.mrb[0].mxu0 }
 0x272   :  { %v510_v44 = vadd.f32 %v10000_v42, %v509_v43  ;;  %v10557_v45 = vpop.f32.mrb[1].mxu0  ;;  %10616 = vmatpush3.bf16.msra.mxu1 %v10933_v30 }
 0x273   :  { %v512_v46 = vpop.f32.mrb[2].mxu0  ;;  %10617 = vmatprep.subr.bf16.mxu1 %v10935_v32  ;;  %v10021_v45 = vld [vmem:[%s13649_s0] ss:$0 sm:$0xff] }
 0x274   :  { %516 = vst [vmem:[#allocation2 + $0x1] sm:$0xff] %v510_v44  ;;  %v513_v47 = vadd.f32 %v10000_v42, %v512_v46  ;;  %v10558_v48 = vpop.f32.mrb[3].mxu0 }
 0x276   :  { %517 = vst [vmem:[#allocation2 + $0x11] sm:$0xff] %v513_v47  ;;  %10618 = vmatpush3.bf16.msra.mxu1 %v10935_v32  ;;  %v11800_v47 = vmov 1966171168  }
 0x277   :  { %10619 = vmatprep.subr.bf16.mxu1 %v10937_v34  ;;  %v791_v48 = vunpack.c.l.s4 %v11800_v47 }
 0x27a   :  { %10620 = vmatpush3.bf16.msra.mxu1 %v10937_v34 }
 0x27b   :  { %v709_v50 = vld [vmem:[#allocation2] sm:$0xff]  ;;  %10645 = vmatprep.subr.bf16.mxu1 %v11797_v0 }
 0x27d   :  { %v711_v49 = vld [vmem:[#allocation2 + $0x10] sm:$0xff] }
 0x27e   :  { %721 = vadd.xlane.f32.xlu0 %v711_v49 }
 0x282   :  { %715 = vadd.xlane.f32.xlu0 %v709_v50 }
 0x30b   :  { %v722_v51 = vpop.xlane.xlu0 %721 }
 0x30c   :  { %v729_v52 = vmul.f32 0.0078125, %v722_v51 }
 0x30e   :  { %v12163_v53 = vsub.f32 %v711_v49, %v729_v52 }
 0x30f   :  { %v716_v62 = vpop.xlane.xlu0 %715 }
 0x310   :  { %v737_v54 = vmul.f32 %v12163_v53, %v12163_v53  ;;  %v727_v63 = vmul.f32 0.0078125, %v716_v62 }
 0x312   :  { %744 = vadd.xlane.f32.xlu0 %v737_v54  ;;  %v12169_v5 = vsub.f32 %v709_v50, %v727_v63  ;;  %v10022_v50 = vld [vmem:[%s13650_s6] ss:$0 sm:$0xff]  ;;  %v792_v54 = vunpack.c.0.s8 %v791_v48 }
 0x314   :  { %v735_v7 = vmul.f32 %v12169_v5, %v12169_v5 }
 0x330   :  { %v698_v56 = vpop.f32.mrb[4].mxu1 }
 0x331   :  { %v699_v57 = vadd.f32 %v10012_v55, %v698_v56  ;;  %v10583_v58 = vpop.f32.mrb[5].mxu1 }
 0x332   :  { %v701_v59 = vpop.f32.mrb[6].mxu1 }
 0x333   :  { %v705_v60 = vcombine.high %v699_v57, %v699_v57  ;;  %707 = vst [vmem:[#allocation2 + $0x9] sm:$0xf] %v699_v57  ;;  %v10584_v61 = vpop.f32.mrb[7].mxu1 }
 0x335   :  { %708 = vst [vmem:[#allocation2 + $0x19] sm:$0xf] %v705_v60  ;;  %v12193_v60 = vsub.s32 %v792_v54, %v12134_v4 }
 0x33a   :  { %v710_v1 = vld [vmem:[#allocation2 + $0x8] sm:$0x1f] }
 0x33b   :  { %v718_v2 = vsel %vm717_vm3, %v710_v1, 0.0 }
 0x33c   :  { %719 = vadd.xlane.f32.xlu1 %v718_v2  ;;  %v712_v3 = vld [vmem:[#allocation2 + $0x18] sm:$0x1f] }
 0x33d   :  { %v723_v6 = vsel %vm717_vm3, %v712_v3, 0.0 }
 0x340   :  { %724 = vadd.xlane.f32.xlu1 %v723_v6 }
 0x344   :  { %739 = vadd.xlane.f32.xlu1 %v735_v7 }
 0x39f   :  { %v745_v38 = vpop.xlane.xlu0 %744 }
 0x3a0   :  { %v751_v40 = vmul.f32 0.0078125, %v745_v38 }
 0x3a2   :  { %v755_v41 = vadd.f32 1e-05, %v751_v40 }
 0x3c9   :  { %v720_v8 = vpop.xlane.xlu1 %719 }
 0x3ca   :  { %v728_v9 = vmul.f32 0.0078125, %v720_v8 }
 0x3cc   :  { %v12174_v10 = vsub.f32 %v710_v1, %v728_v9 }
 0x3cd   :  { %v725_v11 = vpop.xlane.xlu1 %724 }
 0x3ce   :  { %v730_v12 = vmul.f32 0.0078125, %v725_v11  ;;  %v736_v13 = vmul.f32 %v12174_v10, %v12174_v10 }
 0x3d0   :  { %v12178_v14 = vsub.f32 %v712_v3, %v730_v12  ;;  %v741_v15 = vsel %vm717_vm3, %v736_v13, 0.0 }
 0x3d1   :  { %742 = vadd.xlane.f32.xlu0 %v741_v15  ;;  %v740_v36 = vpop.xlane.xlu1 %739 }
 0x3d2   :  { %v738_v16 = vmul.f32 %v12178_v14, %v12178_v14  ;;  %v749_v37 = vmul.f32 0.0078125, %v740_v36 }
 0x3d4   :  { %v746_v17 = vsel %vm717_vm3, %v738_v16, 0.0  ;;  %v753_v39 = vadd.f32 1e-05, %v749_v37 }
 0x3d5   :  { %747 = vadd.xlane.f32.xlu1 %v746_v17 }
 0x3d6   :  { %11163 = vrsqrt.f32 %v753_v39 }
 0x3d7   :  { %11165 = vrsqrt.f32 %v755_v41 }
 0x3e0   :  { %v11164_v42 = vpop.eup %11163 }
 0x3e1   :  { %v761_v43 = vmul.f32 %v11164_v42, %v12169_v5  ;;  %v11166_v44 = vpop.eup %11165 }
 0x3e2   :  { %v763_v49 = vmul.f32 %v11166_v44, %v12163_v53 }
 0x3e3   :  { %v771_v46 = vmul.f32 %v10021_v45, %v761_v43 }
 0x3e4   :  { %v773_v55 = vmul.f32 %v10021_v45, %v763_v49 }
 0x3e5   :  { %v781_v51 = vadd.f32 %v10022_v50, %v771_v46 }
 0x3e6   :  { %v783_v61 = vadd.f32 %v10022_v50, %v773_v55 }
 0x3e7   :  { %v789_v57 = vcombine.high %v781_v51, %v781_v51  ;;  %v796_v53 = vrot.slane %v781_v51, %v12193_v60 }
 0x3e8   :  { %v884_v2 = vrot.slane %v783_v61, %v12193_v60  ;;  %v877_v3 = vcombine.high %v783_v61, %v783_v61 }
 0x3e9   :  { %v803_v1 = vrot.slane %v789_v57, %v12193_v60  ;;  %v804_v6 = vcombine.high %v796_v53, %v796_v53  ;;  %v812_v22 = vrot.slane %v796_v53, %v12193_v60 }
 0x3ea   :  { %v892_v7 = vcombine.high %v884_v2, %v884_v2  ;;  %v900_v8 = vrot.slane %v884_v2, %v12193_v60  ;;  %v891_v11 = vrot.slane %v877_v3, %v12193_v60 }
 0x3eb   :  { %v805_v5 = vcombine.high %v803_v1, %v803_v1  ;;  %v819_v15 = vrot.slane %v803_v1, %v12193_v60  ;;  %v826_v16 = vrot.slane %v804_v6, %v12193_v60 }
 0x3ec   :  { %v914_v17 = vrot.slane %v892_v7, %v12193_v60  ;;  %v922_v19 = vcombine.high %v900_v8, %v900_v8  ;;  %v893_v24 = vcombine.high %v891_v11, %v891_v11  ;;  %v907_v25 = vrot.slane %v891_v11, %v12193_v60 }
 0x3ed   :  { %v833_v12 = vrot.slane %v805_v5, %v12193_v60  ;;  %v965_v29 = vcombine.low %v812_v22, %v826_v16  ;;  %v10023_v30 = vcombine.high %v812_v22, %v826_v16 }
 0x3ee   :  { %v1017_v36 = vcombine.low %v914_v17, %v922_v19  ;;  %v921_v37 = vrot.slane %v893_v24, %v12193_v60  ;;  %v923_v38 = vcombine.high %v907_v25, %v907_v25 }
 0x3ef   :  { %v967_v23 = vcombine.low %v819_v15, %v833_v12  ;;  %v10024_v28 = vcombine.high %v819_v15, %v833_v12  ;;  %v975_v43 = vrot.slane %v965_v29, %v12193_v60  ;;  %v982_v44 = vrot.slane %v10023_v30, %v12193_v60 }
 0x3f0   :  { %v925_v51 = vcombine.high %v921_v37, %v921_v37 }
 0x3f1   :  { %v989_v34 = vrot.slane %v967_v23, %v12193_v60 }
 0x45e   :  { %v743_v52 = vpop.xlane.xlu0 %742 }
 0x45f   :  { %v750_v56 = vmul.f32 0.0078125, %v743_v52  ;;  %v1064_v52 = vcombine.low %v921_v37, %v923_v38  ;;  %v10942_v37 = vld [vmem:[#allocation17 + $0x20] sm:$0xff]   ;;  %v10943_v38 = vld [vmem:[#allocation17 + $0x28] sm:$0xff]  }
 0x461   :  { %v754_v58 = vadd.f32 1e-05, %v750_v56  ;;  %v1080_v7 = vrot.slane %v1064_v52, %v12193_v60 }
 0x462   :  { %v748_v59 = vpop.xlane.xlu1 %747 }
 0x463   :  { %11167 = vrsqrt.f32 %v754_v58  ;;  %v752_v62 = vmul.f32 0.0078125, %v748_v59 }
 0x465   :  { %v756_v63 = vadd.f32 1e-05, %v752_v62 }
 0x467   :  { %11169 = vrsqrt.f32 %v756_v63  ;;  %v997_v63 = vcombine.low %v975_v43, %v982_v44 }
 0x469   :  { %v1005_v16 = vrot.slane %v997_v63, %v12193_v60 }
 0x46d   :  { %v11168_v9 = vpop.eup %11167 }
 0x46e   :  { %v762_v13 = vmul.f32 %v11168_v9, %v12174_v10  ;;  %v924_v10 = vcombine.high %v914_v17, %v914_v17 }
 0x470   :  { %v772_v18 = vmul.f32 %v10021_v45, %v762_v13 }
 0x471   :  { %v11170_v20 = vpop.eup %11169 }
 0x472   :  { %v782_v26 = vadd.f32 %v10022_v50, %v772_v18  ;;  %v764_v27 = vmul.f32 %v11170_v20, %v12178_v14  ;;  %v996_v14 = vrot.slane %v10024_v28, %v12193_v60 }
 0x474   :  { %v838_v31 = vcombine.high %v782_v26, %v782_v26  ;;  %v774_v32 = vmul.f32 %v10021_v45, %v764_v27  ;;  %v845_v33 = vrot.slane %v782_v26, %v12193_v60  ;;  %v1063_v45 = vcombine.low %v924_v10, %v907_v25 }
 0x475   :  { %v998_v54 = vcombine.low %v989_v34, %v996_v14  ;;  %v10940_v34 = vld [vmem:[#allocation17 + $0x10] sm:$0xff]  }
 0x476   :  { %v784_v39 = vadd.f32 %v10022_v50, %v774_v32  ;;  %v852_v40 = vrot.slane %v838_v31, %v12193_v60  ;;  %v853_v41 = vcombine.high %v845_v33, %v845_v33  ;;  %v860_v42 = vrot.slane %v845_v33, %v12193_v60  ;;  %v10939_v33 = vld [vmem:[#allocation17 + $0x8] sm:$0xff]  }
 0x477   :  { %v1045_v50 = vrot.slane %v1017_v36, %v12193_v60  ;;  %v1073_v62 = vrot.slane %v1063_v45, %v12193_v60  ;;  %v10941_v36 = vld [vmem:[#allocation17 + $0x18] sm:$0xff]  }
 0x478   :  { %v926_v46 = vcombine.high %v784_v39, %v784_v39  ;;  %v933_v47 = vrot.slane %v784_v39, %v12193_v60  ;;  %v867_v48 = vrot.slane %v852_v40, %v12193_v60  ;;  %v874_v49 = vrot.slane %v853_v41, %v12193_v60  ;;  %v10944_v39 = vld [vmem:[#allocation17 + $0x30] sm:$0xff]  }
 0x479   :  { %v1095_v22 = vcombine.low %v1073_v62, %v1080_v7 }
 0x47a   :  { %v1014_v55 = vcombine.low %v860_v42, %v874_v49  ;;  %v10025_v56 = vcombine.high %v860_v42, %v874_v49  ;;  %v1016_v57 = vcombine.low %v867_v48, %v900_v8  ;;  %v940_v58 = vrot.slane %v926_v46, %v12193_v60 }
 0x47b   :  { %v941_v59 = vcombine.high %v933_v47, %v933_v47  ;;  %v948_v61 = vrot.slane %v933_v47, %v12193_v60  ;;  %v1012_v8 = vrot.slane %v998_v54, %v12193_v60  ;;  %v1103_v10 = vrot.slane %v1095_v22, %v12193_v60 }
 0x47c   :  { %v1024_v1 = vrot.slane %v1014_v55, %v12193_v60  ;;  %v1031_v53 = vrot.slane %v10025_v56, %v12193_v60  ;;  %v1038_v2 = vrot.slane %v1016_v57, %v12193_v60  ;;  %v955_v12 = vrot.slane %v940_v58, %v12193_v60 }
 0x47d   :  { %v962_v3 = vrot.slane %v941_v59, %v12193_v60  ;;  %v963_v5 = vcombine.high %v948_v61, %v948_v61  ;;  %v1065_v6 = vcombine.low %v925_v51, %v948_v61  ;;  %v1013_v24 = vcombine.low %v1005_v16, %v1012_v8 }
 0x47e   :  { %v1046_v9 = vcombine.low %v1024_v1, %v1031_v53  ;;  %v1047_v11 = vcombine.low %v1038_v2, %v1045_v50 }
 0x47f   :  { %v964_v13 = vcombine.high %v962_v3, %v962_v3  ;;  %v1066_v15 = vcombine.low %v962_v3, %v963_v5  ;;  %v1087_v19 = vrot.slane %v1065_v6, %v12193_v60 }
 0x480   :  { %v1054_v17 = vrot.slane %v1046_v9, %v12193_v60  ;;  %v1061_v18 = vrot.slane %v1047_v11, %v12193_v60 }
 0x481   :  { %v1094_v20 = vrot.slane %v1066_v15, %v12193_v60  ;;  %v1112_v23 = vcombine.low %v964_v13, %v955_v12 }
 0x482   :  { %v1062_v25 = vcombine.low %v1054_v17, %v1061_v18 }
 0x483   :  { %v1096_v26 = vcombine.low %v1087_v19, %v1094_v20  ;;  %v1119_v27 = vrot.slane %v1112_v23, %v12193_v60 }
 0x484   :  { %v1131_v28 = vpack.c.bf16 %v1062_v25, %v1013_v24 }
 0x485   :  { %v1110_v29 = vrot.slane %v1096_v26, %v12193_v60  ;;  %v1126_v31 = vrot.slane %v1119_v27, %v12193_v60 }
 0x486   :  { %10601 = vmatprep.mubr.bf16.mxu0 %v1131_v28  ;;  %10621 = vmatprep.mubr.bf16.mxu1 %v1131_v28 }
 0x487   :  { %v1111_v30 = vcombine.low %v1103_v10, %v1110_v29 }
 0x489   :  { %v1132_v32 = vpack.c.bf16 %v1126_v31, %v1111_v30 }
 0x48b   :  { %10602 = vmatmul.mubr.bf16.vlgmr.msra.gmra.mrb[4].mxu0 %v1132_v32  ;;  %10622 = vmatmul.mubr.bf16.vlgmr.msra.gmra.mrb[8].mxu1 %v1132_v32 }
 0x48c   :  { %10626 = vmatpush3.bf16.msra.mxu0 %v12184_v35  ;;  %10641 = vmatprep.mubr.bf16.mxu0 %v1131_v28  ;;  %v10945_v35 = vld [vmem:[#allocation17 + $0x38] sm:$0xff]  }
 0x48d   :  { %10627 = vmatprep.subr.bf16.mxu0 %v10939_v33  ;;  %10647 = vmatprep.mubr.msk.bf16.mxu1 %vm11798_vm0, %v11797_v0 }
 0x490   :  { %10628 = vmatpush3.bf16.msra.mxu0 %v10939_v33 }
 0x491   :  { %10629 = vmatprep.subr.bf16.mxu0 %v10940_v34 }
 0x494   :  { %10630 = vmatpush3.bf16.msra.mxu0 %v10940_v34 }
 0x495   :  { %10631 = vmatprep.subr.bf16.mxu0 %v10941_v36 }
 0x498   :  { %10632 = vmatpush3.bf16.msra.mxu0 %v10941_v36 }
 0x499   :  { %10633 = vmatprep.subr.bf16.mxu0 %v10942_v37 }
 0x49c   :  { %10634 = vmatpush3.bf16.msra.mxu0 %v10942_v37 }
 0x49d   :  { %10635 = vmatprep.subr.bf16.mxu0 %v10943_v38 }
 0x4a0   :  { %10636 = vmatpush3.bf16.msra.mxu0 %v10943_v38 }
 0x4a1   :  { %10637 = vmatprep.subr.bf16.mxu0 %v10944_v39 }
 0x4a4   :  { %10638 = vmatpush3.bf16.msra.mxu0 %v10944_v39 }
 0x4a5   :  { %10639 = vmatprep.subr.bf16.mxu0 %v10945_v35 }
 0x4a8   :  { %10640 = vmatpush3.bf16.msra.mxu0 %v10945_v35 }
 0x4ab   :  { %10642 = vmatmul.mubr.bf16.vlgmr.msra.gmra.mrb[8].mxu0 %v1132_v32 }
 0x55e   :  { %v10603_v40 = vpop.f32.mrb[4].mxu0  ;;  %v10623_v41 = vpop.f32.mrb[8].mxu1 }
 0x55f   :  { %v1474_v14 = vmul.f32 0.088388346, %v10603_v40  ;;  %v1933_v42 = vcombine.high %v10623_v41, %v10623_v41  ;;  %v1940_v43 = vrot.slane %v10623_v41, %v12193_v60  ;;  %v1231_v44 = vpop.f32.mrb[5].mxu0  ;;  %v1344_v45 = vpop.f32.mrb[9].mxu1 }
 0x560   :  { %v1472_v46 = vmul.f32 0.088388346, %v1231_v44  ;;  %v10604_v47 = vpop.f32.mrb[6].mxu0  ;;  %v12243_v48 = vpop.f32.mrb[10].mxu1  ;;  %v1835_v62 = vcombine.high %v1344_v45, %v1344_v45  ;;  %v1842_v13 = vrot.slane %v1344_v45, %v12193_v60 }
 0x561   :  { %v1578_v49 = vcombine.high %v1474_v14, %v1474_v14  ;;  %v1585_v50 = vrot.slane %v1474_v14, %v12193_v60  ;;  %v1947_v51 = vrot.slane %v1933_v42, %v12193_v60  ;;  %v1948_v52 = vcombine.high %v1940_v43, %v1940_v43  ;;  %v12247_v54 = vpop.f32.mrb[7].mxu0  ;;  %v12249_v55 = vpop.f32.mrb[11].mxu1 }
 0x562   :  { %v12252_v56 = vrot.slane %v1940_v43, %v12193_v60  ;;  %v1480_v57 = vcombine.high %v1472_v46, %v1472_v46  ;;  %v1487_v2 = vrot.slane %v1472_v46, %v12193_v60  ;;  %v1849_v15 = vrot.slane %v1835_v62, %v12193_v60 }
 0x563   :  { %v1592_v58 = vrot.slane %v1578_v49, %v12193_v60  ;;  %v1593_v59 = vcombine.high %v1585_v50, %v1585_v50  ;;  %v12256_v61 = vrot.slane %v1585_v50, %v12193_v60  ;;  %v1949_v63 = vcombine.high %v1947_v51, %v1947_v51 }
 0x564   :  { %v1963_v1 = vrot.slane %v1947_v51, %v12193_v60  ;;  %v1970_v53 = vrot.slane %v1948_v52, %v12193_v60  ;;  %v1494_v7 = vrot.slane %v1480_v57, %v12193_v60  ;;  %v1978_v9 = vcombine.high %v12252_v56, %v12252_v56 }
 0x565   :  { %v1594_v3 = vcombine.high %v1592_v58, %v1592_v58  ;;  %v1608_v5 = vrot.slane %v1592_v58, %v12193_v60  ;;  %v1615_v6 = vrot.slane %v1593_v59, %v12193_v60  ;;  %v1623_v8 = vcombine.high %v12256_v61, %v12256_v61 }
 0x566   :  { %v1980_v11 = vcombine.high %v1970_v53, %v1970_v53  ;;  %v1495_v19 = vcombine.high %v1487_v2, %v1487_v2  ;;  %v1977_v22 = vrot.slane %v1949_v63, %v12193_v60  ;;  %v1979_v23 = vcombine.high %v1963_v1, %v1963_v1 }
 0x567   :  { %v1625_v12 = vcombine.high %v1615_v6, %v1615_v6  ;;  %v1622_v16 = vrot.slane %v1594_v3, %v12193_v60  ;;  %v1624_v17 = vcombine.high %v1608_v5, %v1608_v5  ;;  %v1496_v24 = vcombine.high %v1494_v7, %v1494_v7 }
 0x568   :  { %v2095_v18 = vcombine.low %v1980_v11, %v1963_v1  ;;  %v1739_v25 = vcombine.low %v1615_v6, %v1623_v8  ;;  %v2094_v26 = vcombine.low %v1970_v53, %v1978_v9  ;;  %v1503_v27 = vrot.slane %v1487_v2, %v12193_v60 }
 0x569   :  { %v1740_v20 = vcombine.low %v1625_v12, %v1608_v5  ;;  %v1517_v28 = vrot.slane %v1495_v19, %v12193_v60  ;;  %v1510_v10 = vrot.slane %v1494_v7, %v12193_v60  ;;  %v1524_v29 = vrot.slane %v1496_v24, %v12193_v60 }
 0x56a   :  { %v1850_v30 = vcombine.high %v1842_v13, %v1842_v13  ;;  %v1851_v31 = vcombine.high %v1849_v15, %v1849_v15  ;;  %v1786_v32 = vcombine.low %v1622_v16, %v1624_v17  ;;  %v2123_v33 = vrot.slane %v2095_v18, %v12193_v60 }
 0x56b   :  { %v1649_v34 = vcombine.low %v1503_v27, %v1517_v28  ;;  %v10050_v36 = vcombine.high %v1503_v27, %v1517_v28  ;;  %v1768_v37 = vrot.slane %v1740_v20, %v12193_v60  ;;  %v1651_v38 = vcombine.low %v1510_v10, %v1524_v29 }
 0x56c   :  { %v10051_v39 = vcombine.high %v1510_v10, %v1524_v29  ;;  %v1858_v35 = vrot.slane %v1842_v13, %v12193_v60  ;;  %v1872_v14 = vrot.slane %v1850_v30, %v12193_v60  ;;  %v1879_v42 = vrot.slane %v1851_v31, %v12193_v60 }
 0x56d   :  { %v12280_v40 = vrot.slane %v1649_v34, %v12193_v60  ;;  %v12283_v41 = vrot.slane %v10050_v36, %v12193_v60  ;;  %v12288_v43 = vrot.slane %v1651_v38, %v12193_v60  ;;  %v1865_v45 = vrot.slane %v1849_v15, %v12193_v60 }
 0x56e   :  { %v12291_v44 = vrot.slane %v10051_v39, %v12193_v60  ;;  %v1475_v46 = vmul.f32 0.088388346, %v10604_v47  ;;  %v1761_v49 = vrot.slane %v1739_v25, %v12193_v60  ;;  %v2116_v50 = vrot.slane %v2094_v26, %v12193_v60 }
 0x56f   :  { %v2141_v51 = vcombine.low %v1977_v22, %v1979_v23  ;;  %v2004_v52 = vcombine.low %v1858_v35, %v1872_v14  ;;  %v10053_v57 = vcombine.high %v1858_v35, %v1872_v14  ;;  %v2006_v58 = vcombine.low %v1865_v45, %v1879_v42 }
 0x570   :  { %v1626_v59 = vcombine.high %v1622_v16, %v1622_v16  ;;  %v1633_v62 = vrot.slane %v1475_v46, %v12193_v60  ;;  %v12297_v63 = vcombine.low %v1761_v49, %v1768_v37  ;;  %v12299_v1 = vcombine.low %v2116_v50, %v2123_v33 }
 0x571   :  { %v1681_v53 = vcombine.low %v12280_v40, %v12283_v41  ;;  %v1682_v47 = vcombine.low %v12288_v43, %v12291_v44  ;;  %v10054_v2 = vcombine.high %v1865_v45, %v1879_v42  ;;  %v1794_v5 = vrot.slane %v1786_v32, %v12193_v60 }
 0x572   :  { %v1641_v3 = vrot.slane %v1633_v62, %v12193_v60  ;;  %v1988_v6 = vrot.slane %v12243_v48, %v12193_v60  ;;  %v12310_v7 = vrot.slane %v2004_v52, %v12193_v60  ;;  %v1981_v8 = vcombine.high %v1977_v22, %v1977_v22 }
 0x573   :  { %v1473_v9 = vmul.f32 0.088388346, %v12247_v54  ;;  %v1884_v11 = vcombine.high %v12249_v55, %v12249_v55  ;;  %v2021_v12 = vrot.slane %v10053_v57, %v12193_v60  ;;  %v12317_v13 = vrot.slane %v2006_v58, %v12193_v60 }
 0x574   :  { %v1787_v15 = vcombine.low %v1626_v59, %v1641_v3  ;;  %v1989_v16 = vcombine.high %v1988_v6, %v1988_v6  ;;  %v1996_v17 = vrot.slane %v1988_v6, %v12193_v60  ;;  %v1891_v19 = vrot.slane %v12249_v55, %v12193_v60 }
 0x575   :  { %v1529_v18 = vcombine.high %v1473_v9, %v1473_v9  ;;  %v1536_v48 = vrot.slane %v1473_v9, %v12193_v60  ;;  %v2035_v54 = vrot.slane %v10054_v2, %v12193_v60  ;;  %v1898_v23 = vrot.slane %v1884_v11, %v12193_v60 }
 0x576   :  { %v1801_v20 = vrot.slane %v1787_v15, %v12193_v60  ;;  %v2003_v22 = vrot.slane %v1989_v16, %v12193_v60  ;;  %v1634_v24 = vcombine.high %v1633_v62, %v1633_v62  ;;  %v2142_v25 = vcombine.low %v1981_v8, %v1996_v17 }
 0x577   :  { %v1543_v26 = vrot.slane %v1529_v18, %v12193_v60  ;;  %v1544_v27 = vcombine.high %v1536_v48, %v1536_v48  ;;  %v2149_v10 = vrot.slane %v2141_v51, %v12193_v60  ;;  %v1552_v29 = vrot.slane %v1536_v48, %v12193_v60 }
 0x578   :  { %v12328_v28 = vcombine.low %v1794_v5, %v1801_v20  ;;  %v1899_v55 = vcombine.high %v1891_v19, %v1891_v19  ;;  %v2156_v30 = vrot.slane %v2142_v25, %v12193_v60  ;;  %v2036_v34 = vcombine.low %v12310_v7, %v2021_v12 }
 0x579   :  { %v1545_v31 = vcombine.high %v1543_v26, %v1543_v26  ;;  %v12334_v32 = vrot.slane %v1543_v26, %v12193_v60  ;;  %v1566_v33 = vrot.slane %v1544_v27, %v12193_v60  ;;  %v2163_v36 = vrot.slane %v2003_v22, %v12193_v60 }
 0x57a   :  { %v1900_v37 = vcombine.high %v1898_v23, %v1898_v23  ;;  %v1914_v38 = vrot.slane %v1898_v23, %v12193_v60  ;;  %v2037_v39 = vcombine.low %v12317_v13, %v2035_v54  ;;  %v2164_v35 = vcombine.low %v2149_v10, %v2156_v30 }
 0x57b   :  { %v12342_v14 = vrot.slane %v1545_v31, %v12193_v60  ;;  %v1698_v42 = vcombine.low %v1552_v29, %v1566_v33  ;;  %v12345_v45 = vrot.slane %v1634_v24, %v12193_v60  ;;  %v10052_v46 = vcombine.high %v1552_v29, %v1566_v33 }
 0x57c   :  { %v1921_v49 = vrot.slane %v1899_v55, %v12193_v60  ;;  %v1928_v50 = vrot.slane %v1900_v37, %v12193_v60  ;;  %v1720_v57 = vrot.slane %v12334_v32, %v12193_v60  ;;  %v1907_v58 = vrot.slane %v1891_v19, %v12193_v60 }
 0x57d   :  { %v1577_v51 = vcombine.high %v12342_v14, %v12342_v14  ;;  %v1706_v52 = vrot.slane %v1698_v42, %v12193_v60  ;;  %v2178_v62 = vrot.slane %v2163_v36, %v12193_v60  ;;  %v1713_v2 = vrot.slane %v10052_v46, %v12193_v60 }
 0x57e   :  { %v10643_v59 = vpop.f32.mrb[8].mxu0  ;;  %v1930_v3 = vcombine.high %v1914_v38, %v1914_v38  ;;  %v1932_v5 = vcombine.high %v1928_v50, %v1928_v50  ;;  %v2171_v7 = vrot.slane %v2164_v35, %v12193_v60  ;;  %v2053_v9 = vcombine.low %v1907_v58, %v1921_v49 }
 0x57f   :  { %v1457_v6 = vpop.f32.mrb[9].mxu0  ;;  %v12359_v8 = vcombine.low %v1577_v51, %v12256_v61  ;;  %v10055_v11 = vcombine.high %v1907_v58, %v1921_v49  ;;  %v1721_v13 = vcombine.low %v1706_v52, %v1713_v2  ;;  %v2075_v15 = vrot.slane %v1914_v38, %v12193_v60 }
 0x580   :  { %v10644_v12 = vpop.f32.mrb[10].mxu0  ;;  %v2092_v16 = vcombine.low %v1928_v50, %v1930_v3  ;;  %v2093_v17 = vcombine.low %v1932_v5, %v12252_v56  ;;  %v1735_v48 = vrot.slane %v1720_v57, %v12193_v60  ;;  %v2061_v19 = vrot.slane %v2053_v9, %v12193_v60 }
 0x581   :  { %v12363_v18 = vpop.f32.mrb[11].mxu0  ;;  %v2068_v54 = vrot.slane %v10055_v11, %v12193_v60  ;;  %v2044_v61 = vrot.slane %v2036_v34, %v12193_v60  ;;  %v2090_v20 = vrot.slane %v2075_v15, %v12193_v60  ;;  %v2051_v24 = vrot.slane %v2037_v39, %v12193_v60 }
 0x582   :  { %v2102_v22 = vrot.slane %v2092_v16, %v12193_v60  ;;  %v2109_v23 = vrot.slane %v2093_v17, %v12193_v60  ;;  %v1689_v56 = vrot.slane %v1681_v53, %v12193_v60  ;;  %v1696_v26 = vrot.slane %v1682_v47, %v12193_v60 }
 0x583   :  { %v2076_v25 = vcombine.low %v2061_v19, %v2068_v54  ;;  %v1728_v27 = vrot.slane %v1721_v13, %v12193_v60  ;;  %v2052_v10 = vcombine.low %v2044_v61, %v2051_v24  ;;  %v2139_v55 = vrot.slane %v12299_v1, %v12193_v60 }
 0x584   :  { %v2124_v29 = vcombine.low %v2102_v22, %v2109_v23  ;;  %v2179_v30 = vcombine.low %v2171_v7, %v2178_v62  ;;  %v1697_v33 = vcombine.low %v1689_v56, %v1696_v26  ;;  %v2288_v36 = vcombine.high %v10643_v59, %v10643_v59 }
 0x585   :  { %v2083_v31 = vrot.slane %v2076_v25, %v12193_v60  ;;  %v1736_v34 = vcombine.low %v1728_v27, %v1735_v48  ;;  %v2295_v41 = vrot.slane %v10643_v59, %v12193_v60  ;;  %v2190_v53 = vcombine.high %v1457_v6, %v1457_v6 }
 0x586   :  { %v2132_v40 = vrot.slane %v2124_v29, %v12193_v60  ;;  %v2197_v43 = vrot.slane %v1457_v6, %v12193_v60  ;;  %v1575_v44 = vcombine.high %v12334_v32, %v12334_v32  ;;  %v2302_v1 = vrot.slane %v2288_v36, %v12193_v60 }
 0x587   :  { %v2091_v47 = vcombine.low %v2083_v31, %v2090_v20  ;;  %v1829_v37 = vpack.c.bf16 %v1736_v34, %v1697_v33  ;;  %v2303_v39 = vcombine.high %v2295_v41, %v2295_v41  ;;  %v2204_v35 = vrot.slane %v2190_v53, %v12193_v60 }
 0x588   :  { %v2140_v38 = vcombine.low %v2132_v40, %v2139_v55  ;;  %v2343_v42 = vrot.slane %v10644_v12, %v12193_v60  ;;  %v2304_v49 = vcombine.high %v2302_v1, %v2302_v1  ;;  %v2318_v50 = vrot.slane %v2302_v1, %v12193_v60 }
 0x589   :  { %v2184_v46 = vpack.c.bf16 %v2091_v47, %v2052_v10  ;;  %v2205_v51 = vcombine.high %v2197_v43, %v2197_v43  ;;  %v12395_v57 = vrot.slane %v2295_v41, %v12193_v60  ;;  %v2325_v32 = vrot.slane %v2303_v39, %v12193_v60 }
 0x58a   :  { %v2185_v52 = vpack.c.bf16 %v2179_v30, %v2140_v38  ;;  %v2206_v58 = vcombine.high %v2204_v35, %v2204_v35  ;;  %v1808_v59 = vrot.slane %v12345_v45, %v12193_v60  ;;  %v1737_v62 = vcombine.low %v12342_v14, %v1575_v44 }
 0x58b   :  { %10646 = vmatpush3.bf16.xpose.msra.mxu1 %v2184_v46  ;;  %v2332_v2 = vrot.slane %v2304_v49, %v12193_v60  ;;  %v2334_v3 = vcombine.high %v2318_v50, %v2318_v50  ;;  %v2213_v5 = vrot.slane %v2197_v43, %v12193_v60  ;;  %v2220_v6 = vrot.slane %v2204_v35, %v12193_v60 }
 0x58c   :  { %10651 = vmatprep.subr.bf16.mxu1 %v11797_v0  ;;  %v2227_v7 = vrot.slane %v2205_v51, %v12193_v60  ;;  %v2234_v9 = vrot.slane %v2206_v58, %v12193_v60  ;;  %v2344_v13 = vcombine.high %v2343_v42, %v2343_v42  ;;  %v2351_v45 = vrot.slane %v2343_v42, %v12193_v60 }
 0x58d   :  { %v2496_v11 = vcombine.low %v2332_v2, %v2334_v3  ;;  %v2336_v12 = vcombine.high %v2332_v2, %v2332_v2  ;;  %v2333_v14 = vcombine.high %v12395_v57, %v12395_v57  ;;  %v2335_v15 = vcombine.high %v2325_v32, %v2325_v32 }
 0x58e   :  { %v2359_v16 = vcombine.low %v2213_v5, %v2227_v7  ;;  %v10056_v17 = vcombine.high %v2213_v5, %v2227_v7  ;;  %v2361_v48 = vcombine.low %v2220_v6, %v2234_v9  ;;  %v10057_v19 = vcombine.high %v2220_v6, %v2234_v9 }
 0x58f   :  { %v2358_v54 = vrot.slane %v2344_v13, %v12193_v60  ;;  %v2497_v61 = vcombine.low %v2336_v12, %v2351_v45  ;;  %v1754_v20 = vrot.slane %v12359_v8, %v12193_v60  ;;  %v2504_v24 = vrot.slane %v2496_v11, %v12193_v60 }
 0x590   :  { %v2369_v22 = vrot.slane %v2359_v16, %v12193_v60  ;;  %v2376_v23 = vrot.slane %v10056_v17, %v12193_v60  ;;  %v2383_v25 = vrot.slane %v2361_v48, %v12193_v60  ;;  %v2390_v56 = vrot.slane %v10057_v19, %v12193_v60 }
 0x591   :  { %v2511_v26 = vrot.slane %v2497_v61, %v12193_v60  ;;  %v2518_v27 = vrot.slane %v2358_v54, %v12193_v60  ;;  %v1823_v10 = vrot.slane %v1808_v59, %v12193_v60  ;;  %v1747_v29 = vrot.slane %v1737_v62, %v12193_v60 }
 0x592   :  { %10648 = vmatmul.mubr.bf16.vlgmr.msra.gmra.mrb[12].mxu1 %v1829_v37  ;;  %v2239_v8 = vcombine.high %v12363_v18, %v12363_v18  ;;  %v2246_v55 = vrot.slane %v12363_v18, %v12193_v60  ;;  %v2449_v30 = vcombine.low %v2325_v32, %v2333_v14  ;;  %v2450_v31 = vcombine.low %v2335_v15, %v2318_v50 }
 0x593   :  { %10652 = vmatpush3.bf16.xpose.msra.mxu1 %v2185_v52  ;;  %v2519_v33 = vcombine.low %v2504_v24, %v2511_v26  ;;  %10653 = vmatprep.mubr.msk.bf16.mxu1 %vm11798_vm0, %v11797_v0  ;;  %v2391_v34 = vcombine.low %v2369_v22, %v2376_v23  ;;  %v2392_v36 = vcombine.low %v2383_v25, %v2390_v56  ;;  %v11801_v12 = vmov 65535  }
 0x594   :  { %v2253_v40 = vrot.slane %v2239_v8, %v12193_v60  ;;  %v2254_v41 = vcombine.high %v2246_v55, %v2246_v55  ;;  %10657 = vmatprep.subr.bf16.mxu1 %v11797_v0  ;;  %v2533_v43 = vrot.slane %v2518_v27, %v12193_v60  ;;  %v1769_v44 = vcombine.low %v1747_v29, %v1754_v20 }
 0x595   :  { %v2526_v53 = vrot.slane %v2519_v33, %v12193_v60  ;;  %v1816_v18 = vrot.slane %v12328_v28, %v12193_v60  ;;  %v2262_v37 = vrot.slane %v2246_v55, %v12193_v60  ;;  %v1784_v42 = vrot.slane %v12297_v63, %v12193_v60 }
 0x596   :  { %v2255_v47 = vcombine.high %v2253_v40, %v2253_v40  ;;  %v2269_v1 = vrot.slane %v2253_v40, %v12193_v60  ;;  %v2276_v38 = vrot.slane %v2254_v41, %v12193_v60  ;;  %v1777_v35 = vrot.slane %v1769_v44, %v12193_v60 }
 0x597   :  { %v12437_v39 = vcombine.low %v2526_v53, %v2533_v43  ;;  %v1824_v46 = vcombine.low %v1816_v18, %v1823_v10  ;;  %v2478_v52 = vrot.slane %v2450_v31, %v12193_v60  ;;  %v2406_v59 = vrot.slane %v2392_v36, %v12193_v60 }
 0x598   :  { %v2283_v49 = vrot.slane %v2255_v47, %v12193_v60  ;;  %v2285_v50 = vcombine.high %v2269_v1, %v2269_v1  ;;  %v2408_v51 = vcombine.low %v2262_v37, %v2276_v38  ;;  %v10058_v28 = vcombine.high %v2262_v37, %v2276_v38 }
 0x599   :  { %v2430_v32 = vrot.slane %v2269_v1, %v12193_v60  ;;  %v1785_v58 = vcombine.low %v1777_v35, %v1784_v42  ;;  %v2471_v63 = vrot.slane %v2449_v30, %v12193_v60  ;;  %v2399_v6 = vrot.slane %v2391_v34, %v12193_v60 }
 0x59a   :  { %v2287_v62 = vcombine.high %v2283_v49, %v2283_v49  ;;  %v2416_v2 = vrot.slane %v2408_v51, %v12193_v60  ;;  %v2423_v3 = vrot.slane %v10058_v28, %v12193_v60  ;;  %v2447_v5 = vcombine.low %v2283_v49, %v2285_v50 }
 0x59b   :  { %v1830_v7 = vpack.c.bf16 %v1824_v46, %v1785_v58  ;;  %v2675_v13 = vsel %vm548_vm1, 4294967295, %v11801_v12  ;;  %v2480_v45 = vcombine.low %v2471_v63, %v2478_v52  ;;  %v2407_v14 = vcombine.low %v2399_v6, %v2406_v59  ;;  %v10946_v59 = vld [vmem:[#allocation18] sm:$0xff]  }
 0x59c   :  { %v2431_v9 = vcombine.low %v2416_v2, %v2423_v3  ;;  %v2448_v11 = vcombine.low %v2287_v62, %v12395_v57  ;;  %v2445_v16 = vrot.slane %v2430_v32, %v12193_v60  ;;  %v2457_v17 = vrot.slane %v2447_v5, %v12193_v60  ;;  %10669 = vmatprep.subr.bf16.mxu0 %v10946_v59 }
 0x59d   :  { %10654 = vmatmul.mubr.bf16.vlgmr.msra.gmra.mrb[16].mxu1 %v1830_v7  ;;  %v12458_v54 = vsel %vm2674_vm4, %v2675_v13, 0  ;;  %v2494_v22 = vrot.slane %v2480_v45, %v12193_v60  ;;  %10670 = vmatpush3.bf16.msra.mxu0 %v10946_v59 }
 0x59e   :  { %v2438_v15 = vrot.slane %v2431_v9, %v12193_v60  ;;  %v2464_v48 = vrot.slane %v2448_v11, %v12193_v60  ;;  %10659 = vmatprep.mubr.msk.bf16.mxu1 %vm11798_vm0, %v11797_v0 }
 0x5a0   :  { %v2479_v19 = vcombine.low %v2457_v17, %v2464_v48  ;;  %v2446_v57 = vcombine.low %v2438_v15, %v2445_v16  ;;  %v10947_v17 = vld [vmem:[#allocation18 + $0x8] sm:$0xff]   ;;  %v10948_v48 = vld [vmem:[#allocation18 + $0x10] sm:$0xff]  }
 0x5a1   :  { %10671 = vmatprep.subr.bf16.mxu0 %v10947_v17 }
 0x5a2   :  { %v2539_v61 = vpack.c.bf16 %v2446_v57, %v2407_v14  ;;  %v2487_v20 = vrot.slane %v2479_v19, %v12193_v60  ;;  %10672 = vmatpush3.bf16.msra.mxu0 %v10947_v17  ;;  %v10950_v19 = vld [vmem:[#allocation18 + $0x20] sm:$0xff]   ;;  %v10951_v57 = vld [vmem:[#allocation18 + $0x28] sm:$0xff]  }
 0x5a3   :  { %10673 = vmatprep.subr.bf16.mxu0 %v10948_v48 }
 0x5a4   :  { %v2678_v23 = vand.u32 %v12458_v54, %v2539_v61  ;;  %v12463_v24 = vcombine.low %v2487_v20, %v2494_v22  ;;  %v10952_v61 = vld [vmem:[#allocation18 + $0x30] sm:$0xff]   ;;  %v10953_v20 = vld [vmem:[#allocation18 + $0x38] sm:$0xff]  }
 0x5a6   :  { %10658 = vmatpush3.bf16.msra.mxu1 %v2678_v23  ;;  %v2540_v25 = vpack.c.bf16 %v12437_v39, %v12463_v24  ;;  %10674 = vmatpush3.bf16.msra.mxu0 %v10948_v48  ;;  %v10949_v39 = vld [vmem:[#allocation18 + $0x18] sm:$0xff]  }
 0x5a7   :  { %10663 = vmatprep.subr.bf16.mxu1 %v11797_v0  ;;  %10675 = vmatprep.subr.bf16.mxu0 %v10949_v39 }
 0x5a8   :  { %v2725_v12 = vand.u32 %v12458_v54, %v2540_v25 }
 0x5aa   :  { %10676 = vmatpush3.bf16.msra.mxu0 %v10949_v39 }
 0x5ab   :  { %10677 = vmatprep.subr.bf16.mxu0 %v10950_v19 }
 0x5ae   :  { %10678 = vmatpush3.bf16.msra.mxu0 %v10950_v19 }
 0x5af   :  { %10679 = vmatprep.subr.bf16.mxu0 %v10951_v57 }
 0x5b2   :  { %10680 = vmatpush3.bf16.msra.mxu0 %v10951_v57 }
 0x5b3   :  { %10681 = vmatprep.subr.bf16.mxu0 %v10952_v61 }
 0x5b6   :  { %10682 = vmatpush3.bf16.msra.mxu0 %v10952_v61 }
 0x5b7   :  { %10683 = vmatprep.subr.bf16.mxu0 %v10953_v20 }
 0x5ba   :  { %10684 = vmatpush3.bf16.msra.mxu0 %v10953_v20 }
 0x665   :  { %v2575_v56 = vpop.f32.mrb[12].mxu1 }
 0x666   :  { %v10649_v26 = vpop.f32.mrb[13].mxu1  ;;  %v2624_v27 = vsel %vm2623_vm5, %v2575_v56, -inf }
 0x667   :  { %2625 = vmax.xlane.f32.xlu0 %v2624_v27  ;;  %v2578_v10 = vpop.f32.mrb[14].mxu1 }
 0x668   :  { %v10650_v29 = vpop.f32.mrb[15].mxu1  ;;  %v2628_v8 = vsel %vm2627_vm6, %v2578_v10, -inf }
 0x669   :  { %2629 = vmax.xlane.f32.xlu1 %v2628_v8 }
 0x670   :  { %v2616_v55 = vpop.f32.mrb[16].mxu1 }
 0x671   :  { %v10655_v30 = vpop.f32.mrb[17].mxu1  ;;  %v2631_v31 = vsel %vm2623_vm5, %v2616_v55, -inf }
 0x672   :  { %2632 = vmax.xlane.f32.xlu0 %v2631_v31  ;;  %v2619_v33 = vpop.f32.mrb[18].mxu1 }
 0x673   :  { %v10656_v34 = vpop.f32.mrb[19].mxu1  ;;  %v2634_v36 = vsel %vm2627_vm6, %v2619_v33, -inf }
 0x674   :  { %2635 = vmax.xlane.f32.xlu1 %v2634_v36 }
 0x6f4   :  { %v2626_v40 = vpop.xlane.xlu0 %2625 }
 0x6f5   :  { %v2637_v41 = vsub.f32 %v2575_v56, %v2626_v40 }
 0x6f6   :  { %v2630_v53 = vpop.xlane.xlu1 %2629 }
 0x6f7   :  { %v2641_v43 = vmul.f32 1.442695, %v2637_v41  ;;  %v2638_v44 = vsub.f32 %v2578_v10, %v2630_v53 }
 0x6f9   :  { %11171 = vpow2.f32 %v2641_v43  ;;  %v2643_v18 = vmul.f32 1.442695, %v2638_v44 }
 0x6fb   :  { %11173 = vpow2.f32 %v2643_v18 }
 0x6ff   :  { %v2633_v47 = vpop.xlane.xlu0 %2632 }
 0x700   :  { %v2639_v37 = vsub.f32 %v2616_v55, %v2633_v47 }
 0x701   :  { %v2636_v1 = vpop.xlane.xlu1 %2635 }
 0x702   :  { %v2645_v38 = vmul.f32 1.442695, %v2639_v37  ;;  %v2640_v35 = vsub.f32 %v2619_v33, %v2636_v1 }
 0x703   :  { %v11172_v42 = vpop.eup %11171 }
 0x704   :  { %11175 = vpow2.f32 %v2645_v38  ;;  %v2647_v46 = vmul.f32 1.442695, %v2640_v35  ;;  %v2649_v49 = vsel %vm2623_vm5, %v11172_v42, 0.0 }
 0x705   :  { %v11174_v50 = vpop.eup %11173  ;;  %2650 = vadd.xlane.f32.xlu0 %v2649_v49 }
 0x706   :  { %11177 = vpow2.f32 %v2647_v46  ;;  %v2652_v51 = vsel %vm2627_vm6, %v11174_v50, 0.0 }
 0x707   :  { %2653 = vadd.xlane.f32.xlu1 %v2652_v51 }
 0x70e   :  { %v11176_v28 = vpop.eup %11175 }
 0x70f   :  { %v2655_v52 = vsel %vm2623_vm5, %v11176_v28, 0.0 }
 0x710   :  { %v11178_v32 = vpop.eup %11177  ;;  %2656 = vadd.xlane.f32.xlu0 %v2655_v52 }
 0x711   :  { %v2658_v58 = vsel %vm2627_vm6, %v11178_v32, 0.0 }
 0x712   :  { %2659 = vadd.xlane.f32.xlu1 %v2658_v58 }
 0x792   :  { %v2651_v62 = vpop.xlane.xlu0 %2650 }
 0x793   :  { %11179 = vrcp.f32 %v2651_v62 }
 0x794   :  { %v2654_v2 = vpop.xlane.xlu1 %2653 }
 0x795   :  { %11181 = vrcp.f32 %v2654_v2 }
 0x79d   :  { %v11180_v3 = vpop.eup %11179  ;;  %v2657_v5 = vpop.xlane.xlu0 %2656 }
 0x79e   :  { %11183 = vrcp.f32 %v2657_v5  ;;  %v2665_v7 = vmul.f32 %v11180_v3, %v11172_v42 }
 0x79f   :  { %v11182_v63 = vpop.eup %11181  ;;  %v2660_v6 = vpop.xlane.xlu1 %2659 }
 0x7a0   :  { %v2666_v9 = vmul.f32 %v11182_v63, %v11174_v50  ;;  %11185 = vrcp.f32 %v2660_v6 }
 0x7a2   :  { %v2669_v11 = vpack.c.bf16 %v2666_v9, %v2665_v7 }
 0x7a4   :  { %10660 = vmatmul.mubr.msk.bf16.vlgmr.msra.gmra.mrb[20].mxu1 %vm2623_vm5, %v2669_v11 }
 0x7a5   :  { %10664 = vmatpush3.bf16.msra.mxu1 %v2725_v12  ;;  %10665 = vmatprep.mubr.msk.bf16.mxu1 %vm11798_vm0, %v11797_v0 }
 0x7a8   :  { %v11184_v13 = vpop.eup %11183 }
 0x7a9   :  { %v2667_v14 = vmul.f32 %v11184_v13, %v11176_v28 }
 0x7aa   :  { %v11186_v45 = vpop.eup %11185 }
 0x7ab   :  { %v2668_v15 = vmul.f32 %v11186_v45, %v11178_v32 }
 0x7ad   :  { %v2670_v16 = vpack.c.bf16 %v2668_v15, %v2667_v14 }
 0x7af   :  { %10666 = vmatmul.mubr.msk.bf16.vlgmr.msra.gmra.mrb[24].mxu1 %vm2623_vm5, %v2670_v16 }
 0x877   :  { %v2714_v22 = vpop.f32.mrb[20].mxu1 }
 0x878   :  { %v2772_v23 = vcombine.high %v2714_v22, %v2714_v22  ;;  %v2779_v24 = vrot.slane %v2714_v22, %v12193_v60  ;;  %v10661_v25 = vpop.f32.mrb[21].mxu1 }
 0x879   :  { %v2717_v56 = vpop.f32.mrb[22].mxu1 }
 0x87a   :  { %v2786_v26 = vrot.slane %v2772_v23, %v12193_v60  ;;  %v2787_v27 = vcombine.high %v2779_v24, %v2779_v24  ;;  %v10662_v10 = vpop.f32.mrb[23].mxu1  ;;  %v2821_v29 = vcombine.high %v2717_v56, %v2717_v56  ;;  %v2828_v8 = vrot.slane %v2717_v56, %v12193_v60 }
 0x87b   :  { %v2795_v30 = vrot.slane %v2779_v24, %v12193_v60 }
 0x87c   :  { %v2788_v55 = vcombine.high %v2786_v26, %v2786_v26  ;;  %v2809_v31 = vrot.slane %v2787_v27, %v12193_v60  ;;  %v2836_v33 = vcombine.high %v2828_v8, %v2828_v8  ;;  %v2802_v34 = vrot.slane %v2786_v26, %v12193_v60 }
 0x87d   :  { %v2835_v53 = vrot.slane %v2821_v29, %v12193_v60  ;;  %v2843_v43 = vrot.slane %v2828_v8, %v12193_v60 }
 0x87e   :  { %v2816_v36 = vrot.slane %v2788_v55, %v12193_v60  ;;  %v2948_v40 = vcombine.low %v2795_v30, %v2809_v31  ;;  %v10061_v41 = vcombine.high %v2795_v30, %v2809_v31  ;;  %v2857_v44 = vrot.slane %v2836_v33, %v12193_v60 }
 0x87f   :  { %v2850_v32 = vrot.slane %v2835_v53, %v12193_v60 }
 0x880   :  { %v2950_v18 = vcombine.low %v2802_v34, %v2816_v36  ;;  %v10062_v47 = vcombine.high %v2802_v34, %v2816_v36  ;;  %v2958_v37 = vrot.slane %v2948_v40, %v12193_v60  ;;  %v2965_v1 = vrot.slane %v10061_v41, %v12193_v60 }
 0x881   :  { %v2997_v38 = vcombine.low %v2843_v43, %v2857_v44  ;;  %v10063_v46 = vcombine.high %v2843_v43, %v2857_v44 }
 0x882   :  { %v2972_v35 = vrot.slane %v2950_v18, %v12193_v60  ;;  %v2979_v42 = vrot.slane %v10062_v47, %v12193_v60  ;;  %v2761_v49 = vpop.f32.mrb[24].mxu1  ;;  %v2980_v52 = vcombine.low %v2958_v37, %v2965_v1 }
 0x883   :  { %v2860_v50 = vcombine.high %v2761_v49, %v2761_v49  ;;  %v2867_v51 = vrot.slane %v2761_v49, %v12193_v60  ;;  %v10667_v28 = vpop.f32.mrb[25].mxu1  ;;  %v3007_v59 = vrot.slane %v2997_v38, %v12193_v60  ;;  %v3014_v63 = vrot.slane %v10063_v46, %v12193_v60 }
 0x884   :  { %v2764_v58 = vpop.f32.mrb[26].mxu1  ;;  %v2981_v9 = vcombine.low %v2972_v35, %v2979_v42  ;;  %v2988_v36 = vrot.slane %v2980_v52, %v12193_v60 }
 0x885   :  { %v2874_v62 = vrot.slane %v2860_v50, %v12193_v60  ;;  %v2875_v2 = vcombine.high %v2867_v51, %v2867_v51  ;;  %v2883_v3 = vrot.slane %v2867_v51, %v12193_v60  ;;  %v10668_v5 = vpop.f32.mrb[27].mxu1  ;;  %v2909_v6 = vcombine.high %v2764_v58, %v2764_v58 }
 0x886   :  { %v2916_v7 = vrot.slane %v2764_v58, %v12193_v60  ;;  %v3029_v61 = vcombine.low %v3007_v59, %v3014_v63  ;;  %v2995_v8 = vrot.slane %v2981_v9, %v12193_v60 }
 0x887   :  { %v2876_v11 = vcombine.high %v2874_v62, %v2874_v62  ;;  %v2890_v12 = vrot.slane %v2874_v62, %v12193_v60  ;;  %v2897_v13 = vrot.slane %v2875_v2, %v12193_v60  ;;  %v2905_v45 = vcombine.high %v2883_v3, %v2883_v3 }
 0x888   :  { %v2999_v14 = vcombine.low %v2850_v32, %v2883_v3  ;;  %v2923_v15 = vrot.slane %v2909_v6, %v12193_v60  ;;  %v2924_v16 = vcombine.high %v2916_v7, %v2916_v7  ;;  %v2931_v17 = vrot.slane %v2916_v7, %v12193_v60 }
 0x889   :  { %v2904_v48 = vrot.slane %v2876_v11, %v12193_v60  ;;  %v2906_v39 = vcombine.high %v2890_v12, %v2890_v12  ;;  %v2907_v19 = vcombine.high %v2897_v13, %v2897_v13  ;;  %v3000_v57 = vcombine.low %v2897_v13, %v2905_v45 }
 0x88a   :  { %v3021_v20 = vrot.slane %v2999_v14, %v12193_v60  ;;  %v2945_v22 = vrot.slane %v2924_v16, %v12193_v60  ;;  %v2946_v23 = vcombine.high %v2931_v17, %v2931_v17  ;;  %v2938_v27 = vrot.slane %v2923_v15, %v12193_v60 }
 0x88b   :  { %v3028_v24 = vrot.slane %v3000_v57, %v12193_v60  ;;  %v3046_v25 = vcombine.low %v2907_v19, %v2890_v12  ;;  %v3047_v56 = vcombine.low %v2904_v48, %v2906_v39  ;;  %v2908_v26 = vcombine.high %v2904_v48, %v2904_v48 }
 0x88c   :  { %v2947_v10 = vcombine.high %v2945_v22, %v2945_v22  ;;  %v3049_v29 = vcombine.low %v2945_v22, %v2946_v23  ;;  %v3037_v40 = vrot.slane %v3029_v61, %v12193_v60  ;;  %v2996_v37 = vcombine.low %v2988_v36, %v2995_v8 }
 0x88d   :  { %v3030_v55 = vcombine.low %v3021_v20, %v3028_v24  ;;  %v3056_v30 = vrot.slane %v3046_v25, %v12193_v60  ;;  %v3063_v31 = vrot.slane %v3047_v56, %v12193_v60  ;;  %v3048_v33 = vcombine.low %v2908_v26, %v2931_v17 }
 0x88e   :  { %v3095_v34 = vcombine.low %v2947_v10, %v2938_v27  ;;  %v3077_v43 = vrot.slane %v3049_v29, %v12193_v60 }
 0x88f   :  { %v3078_v41 = vcombine.low %v3056_v30, %v3063_v31  ;;  %v3070_v53 = vrot.slane %v3048_v33, %v12193_v60  ;;  %v3044_v44 = vrot.slane %v3030_v55, %v12193_v60 }
 0x890   :  { %v3102_v47 = vrot.slane %v3095_v34, %v12193_v60 }
 0x891   :  { %v3079_v18 = vcombine.low %v3070_v53, %v3077_v43  ;;  %v3045_v1 = vcombine.low %v3037_v40, %v3044_v44  ;;  %v3086_v35 = vrot.slane %v3078_v41, %v12193_v60 }
 0x892   :  { %v3109_v49 = vrot.slane %v3102_v47, %v12193_v60 }
 0x893   :  { %v3114_v38 = vpack.c.bf16 %v3045_v1, %v2996_v37  ;;  %v3093_v42 = vrot.slane %v3079_v18, %v12193_v60 }
 0x895   :  { %10685 = vmatprep.mubr.bf16.mxu0 %v3114_v38  ;;  %v3094_v46 = vcombine.low %v3086_v35, %v3093_v42 }
 0x897   :  { %v3115_v50 = vpack.c.bf16 %v3109_v49, %v3094_v46 }
 0x899   :  { %10686 = vmatmul.mubr.bf16.vlgmr.msra.gmra.mrb[12].mxu0 %v3115_v50 }
 0x96c   :  { %v10687_v51 = vpop.f32.mrb[12].mxu0 }
 0x96d   :  { %v3331_v28 = vcombine.high %v10687_v51, %v10687_v51  ;;  %v3338_v52 = vrot.slane %v10687_v51, %v12193_v60  ;;  %v3214_v32 = vpop.f32.mrb[13].mxu0 }
 0x96e   :  { %v3233_v58 = vcombine.high %v3214_v32, %v3214_v32  ;;  %v3240_v59 = vrot.slane %v3214_v32, %v12193_v60  ;;  %v10688_v62 = vpop.f32.mrb[14].mxu0 }
 0x96f   :  { %v3345_v2 = vrot.slane %v3331_v28, %v12193_v60  ;;  %v3346_v3 = vcombine.high %v3338_v52, %v3338_v52  ;;  %v3386_v5 = vrot.slane %v10688_v62, %v12193_v60  ;;  %v3217_v63 = vpop.f32.mrb[15].mxu0  ;;  %v3354_v11 = vrot.slane %v3338_v52, %v12193_v60 }
 0x970   :  { %v3247_v6 = vrot.slane %v3233_v58, %v12193_v60  ;;  %v3248_v7 = vcombine.high %v3240_v59, %v3240_v59  ;;  %v3256_v45 = vrot.slane %v3240_v59, %v12193_v60  ;;  %v3282_v15 = vcombine.high %v3217_v63, %v3217_v63 }
 0x971   :  { %v3347_v9 = vcombine.high %v3345_v2, %v3345_v2  ;;  %v3361_v12 = vrot.slane %v3345_v2, %v12193_v60  ;;  %v3368_v16 = vrot.slane %v3346_v3, %v12193_v60  ;;  %v3387_v39 = vcombine.high %v3386_v5, %v3386_v5 }
 0x972   :  { %v3249_v13 = vcombine.high %v3247_v6, %v3247_v6  ;;  %v3270_v14 = vrot.slane %v3248_v7, %v12193_v60  ;;  %v3263_v19 = vrot.slane %v3247_v6, %v12193_v60  ;;  %v3376_v22 = vcombine.high %v3354_v11, %v3354_v11 }
 0x973   :  { %v3375_v17 = vrot.slane %v3347_v9, %v12193_v60  ;;  %v3377_v48 = vcombine.high %v3361_v12, %v3361_v12  ;;  %v3394_v25 = vrot.slane %v3386_v5, %v12193_v60  ;;  %v3378_v29 = vcombine.high %v3368_v16, %v3368_v16  ;;  %v11291_v9 = vld [vmem:[#allocation2] sm:$0xff] }
 0x974   :  { %v3277_v57 = vrot.slane %v3249_v13, %v12193_v60  ;;  %v3402_v61 = vcombine.low %v3256_v45, %v3270_v14  ;;  %v10072_v20 = vcombine.high %v3256_v45, %v3270_v14  ;;  %v3401_v8 = vrot.slane %v3387_v39, %v12193_v60 }
 0x975   :  { %v3539_v23 = vcombine.low %v3375_v17, %v3377_v48  ;;  %v3379_v24 = vcombine.high %v3375_v17, %v3375_v17  ;;  %v3289_v34 = vrot.slane %v3217_v63, %v12193_v60  ;;  %v3296_v53 = vrot.slane %v3282_v15, %v12193_v60 }
 0x976   :  { %v3404_v56 = vcombine.low %v3263_v19, %v3277_v57  ;;  %v10073_v26 = vcombine.high %v3263_v19, %v3277_v57  ;;  %v3412_v27 = vrot.slane %v3402_v61, %v12193_v60  ;;  %v3419_v10 = vrot.slane %v10072_v20, %v12193_v60 }
 0x977   :  { %v3540_v55 = vcombine.low %v3379_v24, %v3394_v25  ;;  %v3547_v36 = vrot.slane %v3539_v23, %v12193_v60  ;;  %v3561_v41 = vrot.slane %v3401_v8, %v12193_v60  ;;  %v3492_v43 = vcombine.low %v3368_v16, %v3376_v22  ;;  %v11292_v22 = vld [vmem:[#allocation2 + $0x8] sm:$0x1f]  ;;  %v11293_v25 = vld [vmem:[#allocation2 + $0x18] sm:$0x1f] }
 0x978   :  { %v3426_v30 = vrot.slane %v3404_v56, %v12193_v60  ;;  %v3433_v31 = vrot.slane %v10073_v26, %v12193_v60  ;;  %v3434_v33 = vcombine.low %v3412_v27, %v3419_v10  ;;  %v3297_v44 = vcombine.high %v3289_v34, %v3289_v34  ;;  %v11294_v26 = vld [vmem:[#allocation2 + $0x10] sm:$0xff] }
 0x979   :  { %v3554_v40 = vrot.slane %v3540_v55, %v12193_v60  ;;  %v3493_v47 = vcombine.low %v3378_v29, %v3361_v12  ;;  %v3298_v1 = vcombine.high %v3296_v53, %v3296_v53  ;;  %v3312_v38 = vrot.slane %v3296_v53, %v12193_v60 }
 0x97a   :  { %v3435_v18 = vcombine.low %v3426_v30, %v3433_v31  ;;  %v3305_v35 = vrot.slane %v3289_v34, %v12193_v60  ;;  %v3319_v42 = vrot.slane %v3297_v44, %v12193_v60  ;;  %v3442_v46 = vrot.slane %v3434_v33, %v12193_v60 }
 0x97b   :  { %v3562_v37 = vcombine.low %v3547_v36, %v3554_v40  ;;  %v3576_v50 = vrot.slane %v3561_v41, %v12193_v60  ;;  %v3326_v51 = vrot.slane %v3298_v1, %v12193_v60  ;;  %v3328_v28 = vcombine.high %v3312_v38, %v3312_v38 }
 0x97c   :  { %v3449_v49 = vrot.slane %v3435_v18, %v12193_v60  ;;  %v3451_v32 = vcombine.low %v3305_v35, %v3319_v42  ;;  %v10074_v58 = vcombine.high %v3305_v35, %v3319_v42  ;;  %v3521_v62 = vrot.slane %v3493_v47, %v12193_v60  ;;  %v10956_v35 = vld [vmem:[#allocation20 + $0x4] ss:$16 sps:$4 sm:$0xff]   ;;  %v10959_v42 = vld [vmem:[#allocation20 + $0xc] ss:$16 sps:$4 sm:$0xff]  }
 0x97d   :  { %v3569_v52 = vrot.slane %v3562_v37, %v12193_v60  ;;  %v3330_v2 = vcombine.high %v3326_v51, %v3326_v51  ;;  %v3490_v3 = vcombine.low %v3326_v51, %v3328_v28  ;;  %v3473_v7 = vrot.slane %v3312_v38, %v12193_v60  ;;  %4218 = vmatprep.subr.bf16.mxu1 %v10956_v35  ;;  %v10965_v51 = vld [vmem:[#allocation20 + $0x2c] ss:$16 sps:$4 sm:$0xff]   ;;  %v10960_v28 = vld [vmem:[#allocation20 + $0x20] ss:$16 sps:$4 sm:$0xff]  }
 0x97e   :  { %v3450_v59 = vcombine.low %v3442_v46, %v3449_v49  ;;  %v3459_v63 = vrot.slane %v3451_v32, %v12193_v60  ;;  %v3466_v6 = vrot.slane %v10074_v58, %v12193_v60  ;;  %v3514_v13 = vrot.slane %v3492_v43, %v12193_v60  ;;  %v10954_v46 = vld [vmem:[#allocation20] ss:$16 sps:$4 sm:$0xff]   ;;  %v10957_v49 = vld [vmem:[#allocation20 + $0x8] ss:$16 sps:$4 sm:$0xff]   ;;  %4271 = vmatprep.subr.bf16.mxu0 %v10959_v42  ;;  %v10968_v32 = vld [vmem:[#allocation20 + $0x44] ss:$16 sps:$4 sm:$0xff]  }
 0x97f   :  { %v3577_v5 = vcombine.low %v3569_v52, %v3576_v50  ;;  %v3491_v45 = vcombine.low %v3330_v2, %v3354_v11  ;;  %v3500_v15 = vrot.slane %v3490_v3, %v12193_v60  ;;  %v3488_v39 = vrot.slane %v3473_v7, %v12193_v60  ;;  %4219 = vmatpush1.bf16.msra.mxu1 %v10954_v46  ;;  %v10962_v50 = vld [vmem:[#allocation20 + $0x24] ss:$16 sps:$4 sm:$0xff]   ;;  %v10963_v52 = vld [vmem:[#allocation20 + $0x28] ss:$16 sps:$4 sm:$0xff]   ;;  %v10971_v58 = vld [vmem:[#allocation20 + $0x4c] ss:$16 sps:$4 sm:$0xff]  }
 0x980   :  { %v12562_v12 = vadd.f32 %v11291_v9, %v3450_v59  ;;  %v3474_v14 = vcombine.low %v3459_v63, %v3466_v6  ;;  %v3523_v17 = vcombine.low %v3514_v13, %v3521_v62  ;;  %4272 = vmatpush1.bf16.msra.mxu0 %v10957_v49  ;;  %4220 = vmatprep.subr.bf16.mxu1 %v10962_v50  ;;  %v10966_v59 = vld [vmem:[#allocation20 + $0x40] ss:$16 sps:$4 sm:$0xff]   ;;  %v10969_v62 = vld [vmem:[#allocation20 + $0x48] ss:$16 sps:$4 sm:$0xff]   ;;  %v10974_v2 = vld [vmem:[#allocation20 + $0x64] ss:$16 sps:$4 sm:$0xff]  }
 0x981   :  { %v3507_v16 = vrot.slane %v3491_v45, %v12193_v60  ;;  %v12576_v56 = vadd.f32 %v11293_v25, %v3577_v5  ;;  %4273 = vmatprep.subr.bf16.mxu0 %v10965_v51  ;;  %v10977_v3 = vld [vmem:[#allocation20 + $0x6c] ss:$16 sps:$4 sm:$0xff]   ;;  %v10972_v5 = vld [vmem:[#allocation20 + $0x60] ss:$16 sps:$4 sm:$0xff]   ;;  %v10975_v63 = vld [vmem:[#allocation20 + $0x68] ss:$16 sps:$4 sm:$0xff]  }
 0x982   :  { %3588 = vadd.xlane.f32.xlu0 %v12562_v12  ;;  %v3481_v48 = vrot.slane %v3474_v14, %v12193_v60  ;;  %v3537_v20 = vrot.slane %v3523_v17, %v12193_v60  ;;  %v10980_v6 = vld [vmem:[#allocation20 + $0x84] ss:$16 sps:$4 sm:$0xff]   ;;  %v10983_v7 = vld [vmem:[#allocation20 + $0x8c] ss:$16 sps:$4 sm:$0xff]   ;;  %v10978_v9 = vld [vmem:[#allocation20 + $0x80] ss:$16 sps:$4 sm:$0xff]  }
 0x983   :  { %v3522_v19 = vcombine.low %v3500_v15, %v3507_v16  ;;  %v3595_v10 = vsel %vm717_vm3, %v12576_v56, 0.0  ;;  %4221 = vmatpush1.bf16.msra.mxu1 %v10960_v28  ;;  %v10981_v13 = vld [vmem:[#allocation20 + $0x88] ss:$16 sps:$4 sm:$0xff]   ;;  %v10986_v45 = vld [vmem:[#allocation20 + $0xa4] ss:$16 sps:$4 sm:$0xff]  }
 0x984   :  { %v3489_v57 = vcombine.low %v3481_v48, %v3488_v39  ;;  %4274 = vmatpush1.bf16.msra.mxu0 %v10963_v52  ;;  %4222 = vmatprep.subr.bf16.mxu1 %v10968_v32  ;;  %v10989_v14 = vld [vmem:[#allocation20 + $0xac] ss:$16 sps:$4 sm:$0xff]   ;;  %v10984_v15 = vld [vmem:[#allocation20 + $0xa0] ss:$16 sps:$4 sm:$0xff]   ;;  %v10987_v16 = vld [vmem:[#allocation20 + $0xa8] ss:$16 sps:$4 sm:$0xff]  }
 0x985   :  { %v3530_v61 = vrot.slane %v3522_v19, %v12193_v60  ;;  %4275 = vmatprep.subr.bf16.mxu0 %v10971_v58  ;;  %v10992_v17 = vld [vmem:[#allocation20 + $0xc4] ss:$16 sps:$4 sm:$0xff]   ;;  %v10995_v48 = vld [vmem:[#allocation20 + $0xcc] ss:$16 sps:$4 sm:$0xff]   ;;  %v11802_v39 = vmov 0  }
 0x986   :  { %v12572_v11 = vadd.f32 %v11292_v22, %v3489_v57  ;;  %4250 = vmatprep.mubr.bf16.mxu1 %v11802_v39  ;;  %4303 = vmatprep.mubr.bf16.mxu0 %v11802_v39  ;;  %v10990_v19 = vld [vmem:[#allocation20 + $0xc0] ss:$16 sps:$4 sm:$0xff]   ;;  %v10993_v57 = vld [vmem:[#allocation20 + $0xc8] ss:$16 sps:$4 sm:$0xff]  }
 0x987   :  { %v3538_v23 = vcombine.low %v3530_v61, %v3537_v20  ;;  %4223 = vmatpush1.bf16.msra.mxu1 %v10966_v59  ;;  %v10998_v61 = vld [vmem:[#allocation20 + $0xe4] ss:$16 sps:$4 sm:$0xff]   ;;  %v11001_v20 = vld [vmem:[#allocation20 + $0xec] ss:$16 sps:$4 sm:$0xff]   ;;  %v10996_v22 = vld [vmem:[#allocation20 + $0xe0] ss:$16 sps:$4 sm:$0xff]  }
 0x988   :  { %v3590_v24 = vsel %vm717_vm3, %v12572_v11, 0.0  ;;  %4276 = vmatpush1.bf16.msra.mxu0 %v10969_v62  ;;  %4224 = vmatprep.subr.bf16.mxu1 %v10974_v2 }
 0x989   :  { %3591 = vadd.xlane.f32.xlu1 %v3590_v24  ;;  %v12578_v27 = vadd.f32 %v11294_v26, %v3538_v23  ;;  %4277 = vmatprep.subr.bf16.mxu0 %v10977_v3  ;;  %v10999_v23 = vld [vmem:[#allocation20 + $0xe8] ss:$16 sps:$4 sm:$0xff]  }
 0x98b   :  { %3593 = vadd.xlane.f32.xlu0 %v12578_v27  ;;  %4225 = vmatpush1.bf16.msra.mxu1 %v10972_v5 }
 0x98c   :  { %4278 = vmatpush1.bf16.msra.mxu0 %v10975_v63  ;;  %4226 = vmatprep.subr.bf16.mxu1 %v10980_v6 }
 0x98d   :  { %3596 = vadd.xlane.f32.xlu1 %v3595_v10  ;;  %4279 = vmatprep.subr.bf16.mxu0 %v10983_v7 }
 0x98f   :  { %4227 = vmatpush1.bf16.msra.mxu1 %v10978_v9 }
 0x990   :  { %4280 = vmatpush1.bf16.msra.mxu0 %v10981_v13  ;;  %4228 = vmatprep.subr.bf16.mxu1 %v10986_v45 }
 0x991   :  { %4281 = vmatprep.subr.bf16.mxu0 %v10989_v14 }
 0x993   :  { %4229 = vmatpush1.bf16.msra.mxu1 %v10984_v15 }
 0x994   :  { %4282 = vmatpush1.bf16.msra.mxu0 %v10987_v16  ;;  %4230 = vmatprep.subr.bf16.mxu1 %v10992_v17 }
 0x995   :  { %4283 = vmatprep.subr.bf16.mxu0 %v10995_v48 }
 0x997   :  { %4231 = vmatpush1.bf16.msra.mxu1 %v10990_v19 }
 0x998   :  { %4284 = vmatpush1.bf16.msra.mxu0 %v10993_v57  ;;  %4232 = vmatprep.subr.bf16.mxu1 %v10998_v61 }
 0x999   :  { %4285 = vmatprep.subr.bf16.mxu0 %v11001_v20 }
 0x99b   :  { %4233 = vmatpush1.bf16.msra.mxu1 %v10996_v22 }
 0x99c   :  { %4286 = vmatpush1.bf16.msra.mxu0 %v10999_v23 }
 0xa0f   :  { %v3589_v29 = vpop.xlane.xlu0 %3588 }
 0xa10   :  { %v3598_v8 = vmul.f32 0.0078125, %v3589_v29 }
 0xa12   :  { %v12584_v55 = vsub.f32 %v12562_v12, %v3598_v8 }
 0xa14   :  { %v3606_v30 = vmul.f32 %v12584_v55, %v12584_v55 }
 0xa16   :  { %3610 = vadd.xlane.f32.xlu0 %v3606_v30  ;;  %v3592_v31 = vpop.xlane.xlu1 %3591 }
 0xa17   :  { %v3599_v33 = vmul.f32 0.0078125, %v3592_v31 }
 0xa18   :  { %v3594_v34 = vpop.xlane.xlu0 %3593 }
 0xa19   :  { %v12589_v36 = vsub.f32 %v12572_v11, %v3599_v33  ;;  %v3600_v40 = vmul.f32 0.0078125, %v3594_v34 }
 0xa1a   :  { %v3597_v41 = vpop.xlane.xlu1 %3596 }
 0xa1b   :  { %v12592_v53 = vsub.f32 %v12578_v27, %v3600_v40  ;;  %v3601_v43 = vmul.f32 0.0078125, %v3597_v41  ;;  %v3607_v44 = vmul.f32 %v12589_v36, %v12589_v36  ;;  %v10075_v41 = vld [vmem:[%s13651_s14] ss:$0 sm:$0xff] }
 0xa1d   :  { %v12597_v18 = vsub.f32 %v12576_v56, %v3601_v43  ;;  %v3612_v47 = vsel %vm717_vm3, %v3607_v44, 0.0  ;;  %v3608_v37 = vmul.f32 %v12592_v53, %v12592_v53 }
 0xa1e   :  { %3613 = vadd.xlane.f32.xlu1 %v3612_v47  ;;  %v10076_v47 = vld [vmem:[%s13652_s7] ss:$0 sm:$0xff] }
 0xa1f   :  { %3615 = vadd.xlane.f32.xlu0 %v3608_v37  ;;  %v3609_v1 = vmul.f32 %v12597_v18, %v12597_v18 }
 0xa21   :  { %v3617_v38 = vsel %vm717_vm3, %v3609_v1, 0.0 }
 0xa22   :  { %3618 = vadd.xlane.f32.xlu1 %v3617_v38 }
 0xaa3   :  { %v3611_v24 = vpop.xlane.xlu0 %3610 }
 0xaa4   :  { %v3620_v25 = vmul.f32 0.0078125, %v3611_v24 }
 0xaa6   :  { %v3624_v26 = vadd.f32 1e-05, %v3620_v25 }
 0xaa8   :  { %11187 = vrsqrt.f32 %v3624_v26 }
 0xaab   :  { %v3614_v10 = vpop.xlane.xlu1 %3613 }
 0xaac   :  { %v3621_v29 = vmul.f32 0.0078125, %v3614_v10  ;;  %v3616_v8 = vpop.xlane.xlu0 %3615 }
 0xaad   :  { %v3622_v30 = vmul.f32 0.0078125, %v3616_v8 }
 0xaae   :  { %v3625_v31 = vadd.f32 1e-05, %v3621_v29 }
 0xaaf   :  { %v3626_v33 = vadd.f32 1e-05, %v3622_v30  ;;  %v3619_v34 = vpop.xlane.xlu1 %3618 }
 0xab0   :  { %11189 = vrsqrt.f32 %v3625_v31  ;;  %v3623_v43 = vmul.f32 0.0078125, %v3619_v34 }
 0xab1   :  { %11191 = vrsqrt.f32 %v3626_v33 }
 0xab2   :  { %v11188_v40 = vpop.eup %11187  ;;  %v3627_v37 = vadd.f32 1e-05, %v3623_v43 }
 0xab3   :  { %v3632_v44 = vmul.f32 %v11188_v40, %v12584_v55 }
 0xab4   :  { %11193 = vrsqrt.f32 %v3627_v37 }
 0xab5   :  { %v3642_v1 = vmul.f32 %v10075_v41, %v3632_v44 }
 0xab7   :  { %v3652_v38 = vadd.f32 %v10076_v47, %v3642_v1 }
 0xab9   :  { %v3660_v35 = vcombine.high %v3652_v38, %v3652_v38  ;;  %v3667_v42 = vrot.slane %v3652_v38, %v12193_v60 }
 0xaba   :  { %v11190_v50 = vpop.eup %11189 }
 0xabb   :  { %v3674_v46 = vrot.slane %v3660_v35, %v12193_v60  ;;  %v3675_v49 = vcombine.high %v3667_v42, %v3667_v42  ;;  %v11192_v51 = vpop.eup %11191  ;;  %v3633_v28 = vmul.f32 %v11190_v50, %v12589_v36  ;;  %v3683_v32 = vrot.slane %v3667_v42, %v12193_v60 }
 0xabc   :  { %v3634_v58 = vmul.f32 %v11192_v51, %v12592_v53 }
 0xabd   :  { %v3676_v52 = vcombine.high %v3674_v46, %v3674_v46  ;;  %v3697_v55 = vrot.slane %v3675_v49, %v12193_v60  ;;  %v3690_v59 = vrot.slane %v3674_v46, %v12193_v60  ;;  %v3643_v62 = vmul.f32 %v10075_v41, %v3633_v28 }
 0xabe   :  { %v11194_v63 = vpop.eup %11193  ;;  %v3644_v6 = vmul.f32 %v10075_v41, %v3634_v58 }
 0xabf   :  { %v3704_v2 = vrot.slane %v3676_v52, %v12193_v60  ;;  %v3836_v3 = vcombine.low %v3683_v32, %v3697_v55  ;;  %v10077_v5 = vcombine.high %v3683_v32, %v3697_v55  ;;  %v3653_v7 = vadd.f32 %v10076_v47, %v3643_v62 }
 0xac0   :  { %v3635_v9 = vmul.f32 %v11194_v63, %v12597_v18  ;;  %v3654_v45 = vadd.f32 %v10076_v47, %v3644_v6 }
 0xac1   :  { %v3838_v36 = vcombine.low %v3690_v59, %v3704_v2  ;;  %v10078_v13 = vcombine.high %v3690_v59, %v3704_v2  ;;  %v3846_v14 = vrot.slane %v3836_v3, %v12193_v60  ;;  %v3853_v15 = vrot.slane %v10077_v5, %v12193_v60 }
 0xac2   :  { %v3709_v53 = vcombine.high %v3653_v7, %v3653_v7  ;;  %v3716_v16 = vrot.slane %v3653_v7, %v12193_v60  ;;  %v3645_v17 = vmul.f32 %v10075_v41, %v3635_v9  ;;  %v3748_v19 = vcombine.high %v3654_v45, %v3654_v45 }
 0xac3   :  { %v3860_v48 = vrot.slane %v3838_v36, %v12193_v60  ;;  %v3755_v57 = vrot.slane %v3654_v45, %v12193_v60  ;;  %v3867_v61 = vrot.slane %v10078_v13, %v12193_v60  ;;  %v3868_v26 = vcombine.low %v3846_v14, %v3853_v15 }
 0xac4   :  { %v3723_v18 = vrot.slane %v3709_v53, %v12193_v60  ;;  %v3724_v20 = vcombine.high %v3716_v16, %v3716_v16  ;;  %v3655_v22 = vadd.f32 %v10076_v47, %v3645_v17  ;;  %v3731_v24 = vrot.slane %v3716_v16, %v12193_v60 }
 0xac5   :  { %v3763_v23 = vcombine.high %v3755_v57, %v3755_v57  ;;  %v3771_v25 = vrot.slane %v3755_v57, %v12193_v60  ;;  %v3869_v8 = vcombine.low %v3860_v48, %v3867_v61  ;;  %v3762_v30 = vrot.slane %v3748_v19, %v12193_v60 }
 0xac6   :  { %v3738_v10 = vrot.slane %v3723_v18, %v12193_v60  ;;  %v3745_v29 = vrot.slane %v3724_v20, %v12193_v60  ;;  %v3797_v34 = vcombine.high %v3655_v22, %v3655_v22  ;;  %v3804_v40 = vrot.slane %v3655_v22, %v12193_v60 }
 0xac7   :  { %v3785_v31 = vrot.slane %v3763_v23, %v12193_v60  ;;  %v3793_v33 = vcombine.high %v3771_v25, %v3771_v25  ;;  %v3764_v47 = vcombine.high %v3762_v30, %v3762_v30  ;;  %v3876_v37 = vrot.slane %v3868_v26, %v12193_v60 }
 0xac8   :  { %v3885_v41 = vcombine.low %v3731_v24, %v3745_v29  ;;  %v10079_v43 = vcombine.high %v3731_v24, %v3745_v29  ;;  %v3887_v44 = vcombine.low %v3738_v10, %v3771_v25  ;;  %v3778_v38 = vrot.slane %v3762_v30, %v12193_v60  ;;  %v11002_v29 = vld [vmem:[#allocation21 + $0x40] sm:$0xff]  }
 0xac9   :  { %v3888_v1 = vcombine.low %v3785_v31, %v3793_v33  ;;  %v3795_v35 = vcombine.high %v3785_v31, %v3785_v31  ;;  %v3792_v50 = vrot.slane %v3764_v47, %v12193_v60  ;;  %v3811_v52 = vrot.slane %v3797_v34, %v12193_v60  ;;  %v11004_v30 = vld [vmem:[#allocation21] sm:$0xff]   ;;  %10361 = vmatprep.subr.bf16.mxu1 %v11002_v29  ;;  %v11006_v33 = vld [vmem:[#allocation21 + $0x48] sm:$0xff]   ;;  %v11012_v47 = vld [vmem:[#allocation21 + $0x10] sm:$0xff]  }
 0xaca   :  { %v3895_v42 = vrot.slane %v3885_v41, %v12193_v60  ;;  %v3902_v46 = vrot.slane %v10079_v43, %v12193_v60  ;;  %v3909_v49 = vrot.slane %v3887_v44, %v12193_v60  ;;  %v3794_v28 = vcombine.high %v3778_v38, %v3778_v38  ;;  %v11005_v31 = vld [vmem:[#allocation21 + $0x80] sm:$0xff]   ;;  %v11007_v34 = vld [vmem:[#allocation21 + $0xc8] sm:$0xff]   ;;  %v11010_v43 = vld [vmem:[#allocation21 + $0x50] sm:$0xff]  }
 0xacb   :  { %v3916_v51 = vrot.slane %v3888_v1, %v12193_v60  ;;  %v3812_v32 = vcombine.high %v3804_v40, %v3804_v40  ;;  %v3796_v58 = vcombine.high %v3792_v50, %v3792_v50  ;;  %v3819_v59 = vrot.slane %v3804_v40, %v12193_v60  ;;  %v11008_v40 = vld [vmem:[#allocation21 + $0x8] sm:$0xff]   ;;  %v11011_v44 = vld [vmem:[#allocation21 + $0xd0] sm:$0xff]   ;;  %v11014_v1 = vld [vmem:[#allocation21 + $0x58] sm:$0xff]  }
 0xacc   :  { %v3917_v55 = vcombine.low %v3895_v42, %v3902_v46  ;;  %v3934_v62 = vcombine.low %v3795_v35, %v3778_v38  ;;  %v3883_v2 = vrot.slane %v3869_v8, %v12193_v60  ;;  %v3935_v63 = vcombine.low %v3792_v50, %v3794_v28  ;;  %v11003_v8 = vld [vmem:[#allocation21 + $0xc0] sm:$0xff]   ;;  %v11009_v41 = vld [vmem:[#allocation21 + $0x88] sm:$0xff]   ;;  %v11015_v38 = vld [vmem:[#allocation21 + $0xd8] sm:$0xff]  }
 0xacd   :  { %v3918_v3 = vcombine.low %v3909_v49, %v3916_v51  ;;  %v3833_v5 = vrot.slane %v3812_v32, %v12193_v60  ;;  %v3826_v6 = vrot.slane %v3811_v52, %v12193_v60  ;;  %v3834_v7 = vcombine.high %v3819_v59, %v3819_v59  ;;  %10389 = vmatprep.subr.bf16.mxu0 %v11003_v8  ;;  %v11016_v35 = vld [vmem:[#allocation21 + $0x18] sm:$0xff]   ;;  %v11018_v46 = vld [vmem:[#allocation21 + $0x60] sm:$0xff]   ;;  %v11022_v28 = vld [vmem:[#allocation21 + $0x68] sm:$0xff]  }
 0xace   :  { %v3936_v9 = vcombine.low %v3796_v58, %v3819_v59  ;;  %v3944_v36 = vrot.slane %v3934_v62, %v12193_v60  ;;  %v3925_v13 = vrot.slane %v3917_v55, %v12193_v60  ;;  %v3951_v15 = vrot.slane %v3935_v63, %v12193_v60  ;;  %v11017_v42 = vld [vmem:[#allocation21 + $0x98] sm:$0xff]   ;;  %v11019_v49 = vld [vmem:[#allocation21 + $0xe0] sm:$0xff]   ;;  %v11023_v52 = vld [vmem:[#allocation21 + $0xe8] sm:$0xff]  }
 0xacf   :  { %v3932_v45 = vrot.slane %v3918_v3, %v12193_v60  ;;  %v3835_v14 = vcombine.high %v3833_v5, %v3833_v5  ;;  %v3937_v53 = vcombine.low %v3833_v5, %v3834_v7  ;;  %v3884_v17 = vcombine.low %v3876_v37, %v3883_v2  ;;  %v11013_v37 = vld [vmem:[#allocation21 + $0x90] sm:$0xff]   ;;  %v11020_v50 = vld [vmem:[#allocation21 + $0x20] sm:$0xff]   ;;  %v11024_v32 = vld [vmem:[#allocation21 + $0x28] sm:$0xff]  }
 0xad0   :  { %v3958_v16 = vrot.slane %v3936_v9, %v12193_v60  ;;  %v3966_v61 = vcombine.low %v3944_v36, %v3951_v15  ;;  %v11021_v51 = vld [vmem:[#allocation21 + $0xa0] sm:$0xff]   ;;  %v11025_v55 = vld [vmem:[#allocation21 + $0xa8] sm:$0xff]   ;;  %v11026_v58 = vld [vmem:[#allocation21 + $0x70] sm:$0xff]   ;;  %v4048_v7 = vsub.s32 2, %v12134_v4  ;;  %v4044_v36 = vsub.s32 1, %v12134_v4 }
 0xad1   :  { %v3933_v48 = vcombine.low %v3925_v13, %v3932_v45  ;;  %v3983_v19 = vcombine.low %v3835_v14, %v3826_v6  ;;  %v3965_v57 = vrot.slane %v3937_v53, %v12193_v60  ;;  %v11027_v59 = vld [vmem:[#allocation21 + $0xf0] sm:$0xff]   ;;  %v11030_v3 = vld [vmem:[#allocation21 + $0x78] sm:$0xff]   ;;  %v4052_v13 = vsub.s32 3, %v12134_v4 }
 0xad2   :  { %v3974_v23 = vrot.slane %v3966_v61, %v12193_v60  ;;  %v11028_v62 = vld [vmem:[#allocation21 + $0x30] sm:$0xff]   ;;  %v11031_v5 = vld [vmem:[#allocation21 + $0xf8] sm:$0xff]  }
 0xad3   :  { %v4002_v18 = vpack.c.bf16 %v3933_v48, %v3884_v17  ;;  %v3967_v20 = vcombine.low %v3958_v16, %v3965_v57  ;;  %v3990_v22 = vrot.slane %v3983_v19, %v12193_v60  ;;  %v11029_v2 = vld [vmem:[#allocation21 + $0xb0] sm:$0xff]   ;;  %v11032_v63 = vld [vmem:[#allocation21 + $0x38] sm:$0xff]  }
 0xad4   :  { %v11033_v6 = vld [vmem:[#allocation21 + $0xb8] sm:$0xff]   ;;  %v4036_v9 = vld [vmem:[%s13653_s12] sm:$0xf] }
 0xad5   :  { %4251 = vmatmul.mubr.bf16.vlgmr.msra.gmra.mrb[28].mxu1 %v4002_v18  ;;  %4304 = vmatmul.mubr.bf16.vlgmr.msra.gmra.mrb[16].mxu0 %v4002_v18  ;;  %v3981_v24 = vrot.slane %v3967_v20, %v12193_v60  ;;  %v3997_v26 = vrot.slane %v3990_v22, %v12193_v60  ;;  %v12662_v45 = vrot.slane %v4036_v9, %v12147_v21 }
 0xad6   :  { %4260 = vmatprep.mubr.bf16.mxu1 %v11802_v39  ;;  %4313 = vmatprep.mubr.bf16.mxu0 %v11802_v39  ;;  %v12666_v14 = vrot.slane %v4036_v9, %v4048_v7  ;;  %v12670_v15 = vrot.slane %v4036_v9, %v4044_v36  ;;  %v12674_v53 = vrot.slane %v4036_v9, %v4052_v13 }
 0xad7   :  { %v3982_v25 = vcombine.low %v3974_v23, %v3981_v24  ;;  %10362 = vmatpush3.bf16.msra.mxu1 %v11004_v30  ;;  %10390 = vmatpush3.bf16.msra.mxu0 %v11005_v31 }
 0xad8   :  { %10363 = vmatprep.subr.bf16.mxu1 %v11006_v33  ;;  %10391 = vmatprep.subr.bf16.mxu0 %v11007_v34 }
 0xad9   :  { %v4003_v10 = vpack.c.bf16 %v3997_v26, %v3982_v25 }
 0xadb   :  { %10364 = vmatpush3.bf16.msra.mxu1 %v11008_v40  ;;  %10392 = vmatpush3.bf16.msra.mxu0 %v11009_v41 }
 0xadc   :  { %10365 = vmatprep.subr.bf16.mxu1 %v11010_v43  ;;  %10393 = vmatprep.subr.bf16.mxu0 %v11011_v44 }
 0xadd   :  { %4261 = vmatmul.mubr.bf16.gmra.mrb[32].mxu1 %v4003_v10  ;;  %4314 = vmatmul.mubr.bf16.gmra.mrb[20].mxu0 %v4003_v10 }
 0xadf   :  { %10366 = vmatpush3.bf16.msra.mxu1 %v11012_v47  ;;  %10394 = vmatpush3.bf16.msra.mxu0 %v11013_v37 }
 0xae0   :  { %10367 = vmatprep.subr.bf16.mxu1 %v11014_v1  ;;  %10395 = vmatprep.subr.bf16.mxu0 %v11015_v38 }
 0xae3   :  { %10368 = vmatpush3.bf16.msra.mxu1 %v11016_v35  ;;  %10396 = vmatpush3.bf16.msra.mxu0 %v11017_v42 }
 0xae4   :  { %10369 = vmatprep.subr.bf16.mxu1 %v11018_v46  ;;  %10397 = vmatprep.subr.bf16.mxu0 %v11019_v49 }
 0xae7   :  { %10370 = vmatpush3.bf16.msra.mxu1 %v11020_v50  ;;  %10398 = vmatpush3.bf16.msra.mxu0 %v11021_v51 }
 0xae8   :  { %10371 = vmatprep.subr.bf16.mxu1 %v11022_v28  ;;  %10399 = vmatprep.subr.bf16.mxu0 %v11023_v52 }
 0xaeb   :  { %10372 = vmatpush3.bf16.msra.mxu1 %v11024_v32  ;;  %10400 = vmatpush3.bf16.msra.mxu0 %v11025_v55 }
 0xaec   :  { %10373 = vmatprep.subr.bf16.mxu1 %v11026_v58  ;;  %10401 = vmatprep.subr.bf16.mxu0 %v11027_v59 }
 0xaef   :  { %10374 = vmatpush3.bf16.msra.mxu1 %v11028_v62  ;;  %10402 = vmatpush3.bf16.msra.mxu0 %v11029_v2 }
 0xaf0   :  { %10375 = vmatprep.subr.bf16.mxu1 %v11030_v3  ;;  %10403 = vmatprep.subr.bf16.mxu0 %v11031_v5 }
 0xaf3   :  { %10376 = vmatpush3.bf16.msra.mxu1 %v11032_v63  ;;  %10404 = vmatpush3.bf16.msra.mxu0 %v11033_v6 }
 0xba8   :  { %v4252_v16 = vpop.f32.mrb[28].mxu1  ;;  %v4305_v17 = vpop.f32.mrb[16].mxu0 }
 0xba9   :  { %v12677_v48 = vadd.f32 %v4252_v16, %v12662_v45  ;;  %v12680_v19 = vadd.f32 %v4305_v17, %v12666_v14  ;;  %v4254_v57 = vpop.f32.mrb[29].mxu1  ;;  %v4307_v61 = vpop.f32.mrb[17].mxu0 }
 0xbaa   :  { %v12683_v18 = vadd.f32 %v4254_v57, %v12670_v15  ;;  %v12686_v20 = vadd.f32 %v4307_v61, %v12674_v53  ;;  %v4256_v22 = vpop.f32.mrb[30].mxu1  ;;  %v4309_v23 = vpop.f32.mrb[18].mxu0 }
 0xbab   :  { %v4324_v24 = vmul.f32 %v12677_v48, %v12677_v48  ;;  %v4326_v25 = vmul.f32 %v12680_v19, %v12680_v19  ;;  %v12693_v26 = vadd.f32 %v4256_v22, %v12662_v45  ;;  %v12696_v10 = vadd.f32 %v4309_v23, %v12666_v14  ;;  %v4258_v29 = vpop.f32.mrb[31].mxu1  ;;  %v4311_v8 = vpop.f32.mrb[19].mxu0 }
 0xbac   :  { %v4325_v30 = vmul.f32 %v12683_v18, %v12683_v18  ;;  %v4327_v31 = vmul.f32 %v12686_v20, %v12686_v20  ;;  %v12703_v33 = vadd.f32 %v4258_v29, %v12670_v15  ;;  %v12706_v34 = vadd.f32 %v4311_v8, %v12674_v53 }
 0xbad   :  { %v4340_v40 = vmul.f32 %v4324_v24, %v12677_v48  ;;  %v4342_v41 = vmul.f32 %v4326_v25, %v12680_v19  ;;  %v4328_v43 = vmul.f32 %v12693_v26, %v12693_v26  ;;  %v4330_v44 = vmul.f32 %v12696_v10, %v12696_v10 }
 0xbae   :  { %v4341_v47 = vmul.f32 %v4325_v30, %v12683_v18  ;;  %v4343_v37 = vmul.f32 %v4327_v31, %v12686_v20  ;;  %v4329_v1 = vmul.f32 %v12703_v33, %v12703_v33  ;;  %v4331_v38 = vmul.f32 %v12706_v34, %v12706_v34 }
 0xbaf   :  { %v4356_v35 = vmul.f32 0.044715, %v4340_v40  ;;  %v4358_v42 = vmul.f32 0.044715, %v4342_v41  ;;  %v4344_v46 = vmul.f32 %v4328_v43, %v12693_v26  ;;  %v4346_v49 = vmul.f32 %v4330_v44, %v12696_v10 }
 0xbb0   :  { %v4357_v50 = vmul.f32 0.044715, %v4341_v47  ;;  %v4359_v51 = vmul.f32 0.044715, %v4343_v37  ;;  %v4345_v28 = vmul.f32 %v4329_v1, %v12703_v33  ;;  %v4347_v52 = vmul.f32 %v4331_v38, %v12706_v34  ;;  %v4262_v32 = vpop.f32.mrb[32].mxu1  ;;  %v4315_v55 = vpop.f32.mrb[20].mxu0 }
 0xbb1   :  { %v4372_v58 = vadd.f32 %v4356_v35, %v12677_v48  ;;  %v4374_v59 = vadd.f32 %v4358_v42, %v12680_v19  ;;  %v4360_v62 = vmul.f32 0.044715, %v4344_v46  ;;  %v4362_v2 = vmul.f32 0.044715, %v4346_v49  ;;  %v4264_v3 = vpop.f32.mrb[33].mxu1  ;;  %v4317_v5 = vpop.f32.mrb[21].mxu0 }
 0xbb2   :  { %v4373_v63 = vadd.f32 %v4357_v50, %v12683_v18  ;;  %v4375_v6 = vadd.f32 %v4359_v51, %v12686_v20  ;;  %v4361_v9 = vmul.f32 0.044715, %v4345_v28  ;;  %v4363_v16 = vmul.f32 0.044715, %v4347_v52  ;;  %v4266_v17 = vpop.f32.mrb[34].mxu1  ;;  %v4319_v57 = vpop.f32.mrb[22].mxu0 }
 0xbb3   :  { %v4388_v61 = vmul.f32 0.7978846, %v4372_v58  ;;  %v4390_v22 = vmul.f32 0.7978846, %v4374_v59  ;;  %v4376_v23 = vadd.f32 %v4360_v62, %v12693_v26  ;;  %v4378_v24 = vadd.f32 %v4362_v2, %v12696_v10  ;;  %v4268_v25 = vpop.f32.mrb[35].mxu1  ;;  %v4321_v29 = vpop.f32.mrb[23].mxu0 }
 0xbb4   :  { %v4389_v8 = vmul.f32 0.7978846, %v4373_v63  ;;  %v4391_v30 = vmul.f32 0.7978846, %v4375_v6  ;;  %v4377_v31 = vadd.f32 %v4361_v9, %v12703_v33  ;;  %v4379_v40 = vadd.f32 %v4363_v16, %v12706_v34 }
 0xbb5   :  { %11195 = vtanh.f32 %v4388_v61  ;;  %v4392_v41 = vmul.f32 0.7978846, %v4376_v23  ;;  %v4394_v43 = vmul.f32 0.7978846, %v4378_v24  ;;  %v12733_v44 = vadd.f32 %v4262_v32, %v12662_v45 }
 0xbb6   :  { %11197 = vtanh.f32 %v4390_v22  ;;  %v4393_v47 = vmul.f32 0.7978846, %v4377_v31  ;;  %v4395_v37 = vmul.f32 0.7978846, %v4379_v40  ;;  %v12736_v1 = vadd.f32 %v4315_v55, %v12666_v14 }
 0xbb7   :  { %11199 = vtanh.f32 %v4389_v8  ;;  %v4332_v38 = vmul.f32 %v12733_v44, %v12733_v44  ;;  %v12741_v35 = vadd.f32 %v4264_v3, %v12670_v15  ;;  %v12744_v42 = vadd.f32 %v4317_v5, %v12674_v53 }
 0xbb8   :  { %11201 = vtanh.f32 %v4391_v30  ;;  %v4334_v46 = vmul.f32 %v12736_v1, %v12736_v1  ;;  %v12749_v49 = vadd.f32 %v4266_v17, %v12662_v45  ;;  %v12752_v50 = vadd.f32 %v4319_v57, %v12666_v14 }
 0xbb9   :  { %11203 = vtanh.f32 %v4392_v41  ;;  %v4348_v51 = vmul.f32 %v4332_v38, %v12733_v44  ;;  %v4333_v28 = vmul.f32 %v12741_v35, %v12741_v35  ;;  %v4335_v52 = vmul.f32 %v12744_v42, %v12744_v42 }
 0xbba   :  { %11205 = vtanh.f32 %v4394_v43  ;;  %v4350_v32 = vmul.f32 %v4334_v46, %v12736_v1  ;;  %v4336_v55 = vmul.f32 %v12749_v49, %v12749_v49  ;;  %v4338_v45 = vmul.f32 %v12752_v50, %v12752_v50 }
 0xbbb   :  { %11207 = vtanh.f32 %v4393_v47  ;;  %v4364_v14 = vmul.f32 0.044715, %v4348_v51  ;;  %v4349_v58 = vmul.f32 %v4333_v28, %v12741_v35  ;;  %v4351_v59 = vmul.f32 %v4335_v52, %v12744_v42 }
 0xbbc   :  { %11209 = vtanh.f32 %v4395_v37  ;;  %v4366_v62 = vmul.f32 0.044715, %v4350_v32  ;;  %v4352_v2 = vmul.f32 %v4336_v55, %v12749_v49  ;;  %v4354_v3 = vmul.f32 %v4338_v45, %v12752_v50 }
 0xbbd   :  { %v4380_v5 = vadd.f32 %v4364_v14, %v12733_v44  ;;  %v4365_v63 = vmul.f32 0.044715, %v4349_v58  ;;  %v4367_v6 = vmul.f32 0.044715, %v4351_v59  ;;  %v12770_v9 = vadd.f32 %v4268_v25, %v12670_v15 }
 0xbbe   :  { %v4382_v16 = vadd.f32 %v4366_v62, %v12736_v1  ;;  %v4368_v17 = vmul.f32 0.044715, %v4352_v2  ;;  %v4370_v57 = vmul.f32 0.044715, %v4354_v3  ;;  %v12774_v61 = vadd.f32 %v4321_v29, %v12674_v53 }
 0xbbf   :  { %v11196_v22 = vpop.eup %11195  ;;  %v4396_v23 = vmul.f32 0.7978846, %v4380_v5  ;;  %v4381_v24 = vadd.f32 %v4365_v63, %v12741_v35  ;;  %v4383_v8 = vadd.f32 %v4367_v6, %v12744_v42  ;;  %v4337_v30 = vmul.f32 %v12770_v9, %v12770_v9 }
 0xbc0   :  { %v11198_v31 = vpop.eup %11197  ;;  %v4420_v40 = vadd.f32 1.0, %v11196_v22  ;;  %v4398_v15 = vmul.f32 0.7978846, %v4382_v16  ;;  %v4384_v25 = vadd.f32 %v4368_v17, %v12749_v49  ;;  %v4386_v41 = vadd.f32 %v4370_v57, %v12752_v50 }
 0xbc1   :  { %v11200_v43 = vpop.eup %11199  ;;  %v4422_v47 = vadd.f32 1.0, %v11198_v31  ;;  %11211 = vtanh.f32 %v4396_v23  ;;  %v4397_v53 = vmul.f32 0.7978846, %v4381_v24  ;;  %v4399_v29 = vmul.f32 0.7978846, %v4383_v8 }
 0xbc2   :  { %v11202_v37 = vpop.eup %11201  ;;  %v4436_v38 = vmul.f32 0.5, %v4420_v40  ;;  %11213 = vtanh.f32 %v4398_v15  ;;  %v4400_v46 = vmul.f32 0.7978846, %v4384_v25  ;;  %v4402_v51 = vmul.f32 0.7978846, %v4386_v41 }
 0xbc3   :  { %v11204_v28 = vpop.eup %11203  ;;  %v4438_v52 = vmul.f32 0.5, %v4422_v47  ;;  %11215 = vtanh.f32 %v4397_v53  ;;  %v4353_v32 = vmul.f32 %v4337_v30, %v12770_v9  ;;  %v4339_v55 = vmul.f32 %v12774_v61, %v12774_v61 }
 0xbc4   :  { %v11206_v45 = vpop.eup %11205  ;;  %v4452_v14 = vmul.f32 %v4436_v38, %v12677_v48  ;;  %v4424_v58 = vadd.f32 1.0, %v11204_v28  ;;  %11217 = vtanh.f32 %v4399_v29  ;;  %v4421_v59 = vadd.f32 1.0, %v11200_v43 }
 0xbc5   :  { %v11208_v62 = vpop.eup %11207  ;;  %v4454_v2 = vmul.f32 %v4438_v52, %v12680_v19  ;;  %v4426_v3 = vadd.f32 1.0, %v11206_v45  ;;  %11219 = vtanh.f32 %v4400_v46  ;;  %v4369_v5 = vmul.f32 0.044715, %v4353_v32 }
 0xbc6   :  { %v11210_v63 = vpop.eup %11209  ;;  %v4440_v6 = vmul.f32 0.5, %v4424_v58  ;;  %11221 = vtanh.f32 %v4402_v51  ;;  %v4355_v16 = vmul.f32 %v4339_v55, %v12774_v61  ;;  %v4425_v17 = vadd.f32 1.0, %v11208_v62 }
 0xbc7   :  { %v4442_v57 = vmul.f32 0.5, %v4426_v3  ;;  %v4385_v22 = vadd.f32 %v4369_v5, %v12770_v9  ;;  %v4437_v23 = vmul.f32 0.5, %v4421_v59  ;;  %v4423_v48 = vadd.f32 1.0, %v11202_v37 }
 0xbc8   :  { %v4456_v24 = vmul.f32 %v4440_v6, %v12693_v26  ;;  %v4371_v8 = vmul.f32 0.044715, %v4355_v16  ;;  %v4441_v30 = vmul.f32 0.5, %v4425_v17  ;;  %v4427_v31 = vadd.f32 1.0, %v11210_v63 }
 0xbc9   :  { %v4458_v19 = vmul.f32 %v4442_v57, %v12696_v10  ;;  %v4401_v40 = vmul.f32 0.7978846, %v4385_v22  ;;  %v4453_v15 = vmul.f32 %v4437_v23, %v12683_v18  ;;  %v4439_v25 = vmul.f32 0.5, %v4423_v48 }
 0xbca   :  { %v4468_v41 = vpack.c.bf16 %v4456_v24, %v4452_v14  ;;  %v4387_v43 = vadd.f32 %v4371_v8, %v12774_v61  ;;  %v4457_v47 = vmul.f32 %v4441_v30, %v12703_v33  ;;  %v4443_v53 = vmul.f32 0.5, %v4427_v31 }
 0xbcb   :  { %v11212_v29 = vpop.eup %11211  ;;  %v4470_v38 = vpack.c.bf16 %v4458_v19, %v4454_v2  ;;  %11223 = vtanh.f32 %v4401_v40  ;;  %v4455_v26 = vmul.f32 %v4439_v25, %v12686_v20 }
 0xbcc   :  { %v11214_v37 = vpop.eup %11213  ;;  %v4403_v46 = vmul.f32 0.7978846, %v4387_v43  ;;  %v4469_v51 = vpack.c.bf16 %v4457_v47, %v4453_v15  ;;  %v4459_v10 = vmul.f32 %v4443_v53, %v12706_v34  ;;  %v4428_v28 = vadd.f32 1.0, %v11212_v29 }
 0xbcd   :  { %v11216_v52 = vpop.eup %11215  ;;  %v4430_v18 = vadd.f32 1.0, %v11214_v37 }
 0xbce   :  { %v11218_v32 = vpop.eup %11217  ;;  %11225 = vtanh.f32 %v4403_v46  ;;  %4771 = vmatprep.mubr.bf16.mxu1 %v4469_v51  ;;  %v4471_v55 = vpack.c.bf16 %v4459_v10, %v4455_v26  ;;  %v4444_v58 = vmul.f32 0.5, %v4428_v28  ;;  %v4429_v62 = vadd.f32 1.0, %v11216_v52 }
 0xbcf   :  { %v11220_v45 = vpop.eup %11219  ;;  %4772 = vmatmul.mubr.bf16.vlgmr.msra.gmra.mrb[36].mxu1 %v4468_v41  ;;  %v4446_v59 = vmul.f32 0.5, %v4430_v18  ;;  %v4431_v6 = vadd.f32 1.0, %v11218_v32  ;;  %v10112_v41 = vld [vmem:[%s13654_s10] ss:$0 sm:$0xff] }
 0xbd0   :  { %v11222_v33 = vpop.eup %11221  ;;  %4820 = vmatprep.mubr.bf16.mxu0 %v4471_v55  ;;  %v4432_v14 = vadd.f32 1.0, %v11220_v45  ;;  %v4460_v34 = vmul.f32 %v4444_v58, %v12733_v44  ;;  %v4445_v22 = vmul.f32 0.5, %v4429_v62 }
 0xbd1   :  { %4821 = vmatmul.mubr.bf16.vlgmr.msra.gmra.mrb[24].mxu0 %v4470_v38  ;;  %v4434_v20 = vadd.f32 1.0, %v11222_v33  ;;  %v4462_v16 = vmul.f32 %v4446_v59, %v12736_v1  ;;  %v4447_v31 = vmul.f32 0.5, %v4431_v6 }
 0xbd2   :  { %v4448_v2 = vmul.f32 0.5, %v4432_v14  ;;  %v4461_v19 = vmul.f32 %v4445_v22, %v12741_v35 }
 0xbd3   :  { %v4450_v3 = vmul.f32 0.5, %v4434_v20  ;;  %v4463_v15 = vmul.f32 %v4447_v31, %v12744_v42 }
 0xbd4   :  { %v4464_v5 = vmul.f32 %v4448_v2, %v12749_v49 }
 0xbd5   :  { %v11224_v63 = vpop.eup %11223  ;;  %v4466_v17 = vmul.f32 %v4450_v3, %v12752_v50 }
 0xbd6   :  { %v4433_v57 = vadd.f32 1.0, %v11224_v63  ;;  %v4472_v23 = vpack.c.bf16 %v4464_v5, %v4460_v34 }
 0xbd7   :  { %v4474_v48 = vpack.c.bf16 %v4466_v17, %v4462_v16 }
 0xbd8   :  { %v11226_v24 = vpop.eup %11225  ;;  %v4449_v8 = vmul.f32 0.5, %v4433_v57 }
 0xbd9   :  { %v4435_v30 = vadd.f32 1.0, %v11226_v24 }
 0xbda   :  { %v4465_v44 = vmul.f32 %v4449_v8, %v12770_v9 }
 0xbdb   :  { %v4451_v49 = vmul.f32 0.5, %v4435_v30 }
 0xbdc   :  { %v4473_v40 = vpack.c.bf16 %v4465_v44, %v4461_v19 }
 0xbdd   :  { %v4467_v1 = vmul.f32 %v4451_v49, %v12774_v61 }
 0xbde   :  { %4779 = vmatprep.mubr.bf16.mxu1 %v4473_v40 }
 0xbdf   :  { %v4475_v50 = vpack.c.bf16 %v4467_v1, %v4463_v15  ;;  %4780 = vmatmul.mubr.bf16.gmra.mrb[40].mxu1 %v4472_v23 }
 0xbe1   :  { %4828 = vmatprep.mubr.bf16.mxu0 %v4475_v50 }
 0xbe2   :  { %4829 = vmatmul.mubr.bf16.gmra.mrb[28].mxu0 %v4474_v48 }
 0xca2   :  { %v10377_v25 = vpop.f32.mrb[36].mxu1 }
 0xca3   :  { %v10378_v43 = vpop.f32.mrb[37].mxu1 }
 0xca4   :  { %v10405_v47 = vpop.f32.mrb[24].mxu0  ;;  %v10379_v53 = vadd.f32 %v10378_v43, %v10377_v25  ;;  %v10380_v29 = vpop.f32.mrb[38].mxu1 }
 0xca5   :  { %v10406_v35 = vpop.f32.mrb[25].mxu0  ;;  %v10381_v38 = vpop.f32.mrb[39].mxu1 }
 0xca6   :  { %v4774_v9 = vadd.f32 %v10379_v53, %v10112_v41  ;;  %v10407_v26 = vadd.f32 %v10406_v35, %v10405_v47  ;;  %v10408_v37 = vpop.f32.mrb[26].mxu0  ;;  %v10382_v46 = vadd.f32 %v10381_v38, %v10380_v29 }
 0xca7   :  { %v10409_v42 = vpop.f32.mrb[27].mxu0 }
 0xca8   :  { %v4823_v51 = vadd.f32 %v10407_v26, %v4774_v9  ;;  %v4777_v61 = vadd.f32 %v10382_v46, %v10112_v41  ;;  %v10410_v10 = vadd.f32 %v10409_v42, %v10408_v37 }
 0xcaa   :  { %v4841_v28 = vcombine.high %v4823_v51, %v4823_v51  ;;  %v4848_v52 = vrot.slane %v4823_v51, %v12193_v60  ;;  %v4826_v18 = vadd.f32 %v10410_v10, %v4777_v61 }
 0xcac   :  { %v4855_v32 = vrot.slane %v4841_v28, %v12193_v60  ;;  %v4856_v55 = vcombine.high %v4848_v52, %v4848_v52  ;;  %v4890_v45 = vcombine.high %v4826_v18, %v4826_v18  ;;  %v4897_v33 = vrot.slane %v4826_v18, %v12193_v60 }
 0xcad   :  { %v4864_v58 = vrot.slane %v4848_v52, %v12193_v60 }
 0xcae   :  { %v4857_v14 = vcombine.high %v4855_v32, %v4855_v32  ;;  %v4878_v20 = vrot.slane %v4856_v55, %v12193_v60  ;;  %v4871_v59 = vrot.slane %v4855_v32, %v12193_v60  ;;  %v4904_v34 = vrot.slane %v4890_v45, %v12193_v60 }
 0xcaf   :  { %v4905_v5 = vcombine.high %v4897_v33, %v4897_v33  ;;  %v4913_v43 = vrot.slane %v4897_v33, %v12193_v60 }
 0xcb0   :  { %v4885_v62 = vrot.slane %v4857_v14, %v12193_v60  ;;  %v5010_v2 = vcombine.low %v4864_v58, %v4878_v20  ;;  %v10145_v3 = vcombine.high %v4864_v58, %v4878_v20  ;;  %v4906_v23 = vcombine.high %v4904_v34, %v4904_v34 }
 0xcb1   :  { %v12818_v31 = vrot.slane %v4904_v34, %v12193_v60  ;;  %v4927_v19 = vrot.slane %v4905_v5, %v12193_v60 }
 0xcb2   :  { %v5012_v63 = vcombine.low %v4871_v59, %v4885_v62  ;;  %v10146_v6 = vcombine.high %v4871_v59, %v4885_v62  ;;  %v5020_v16 = vrot.slane %v5010_v2, %v12193_v60  ;;  %v5027_v17 = vrot.slane %v10145_v3, %v12193_v60  ;;  %v10383_v57 = vpop.f32.mrb[40].mxu1 }
 0xcb3   :  { %v10384_v22 = vpop.f32.mrb[41].mxu1  ;;  %v4934_v29 = vrot.slane %v4906_v23, %v12193_v60  ;;  %v4936_v42 = vcombine.high %v12818_v31, %v12818_v31  ;;  %v5059_v51 = vcombine.low %v4913_v43, %v4927_v19  ;;  %v10147_v61 = vcombine.high %v4913_v43, %v4927_v19 }
 0xcb4   :  { %v10385_v48 = vadd.f32 %v10384_v22, %v10383_v57  ;;  %v10386_v24 = vpop.f32.mrb[42].mxu1  ;;  %v5034_v8 = vrot.slane %v5012_v63, %v12193_v60  ;;  %v5041_v30 = vrot.slane %v10146_v6, %v12193_v60  ;;  %v5042_v50 = vcombine.low %v5020_v16, %v5027_v17 }
 0xcb5   :  { %v10411_v44 = vpop.f32.mrb[28].mxu0  ;;  %v10387_v49 = vpop.f32.mrb[43].mxu1  ;;  %v4938_v32 = vcombine.high %v4934_v29, %v4934_v29  ;;  %v5067_v58 = vrot.slane %v5059_v51, %v12193_v60  ;;  %v5074_v20 = vrot.slane %v10147_v61, %v12193_v60  ;;  %v5098_v59 = vcombine.low %v4934_v29, %v4936_v42 }
 0xcb6   :  { %v4782_v40 = vadd.f32 %v10385_v48, %v10112_v41  ;;  %v10412_v15 = vpop.f32.mrb[29].mxu0  ;;  %v10388_v1 = vadd.f32 %v10387_v49, %v10386_v24  ;;  %v5043_v25 = vcombine.low %v5034_v8, %v5041_v30  ;;  %v5050_v9 = vrot.slane %v5042_v50, %v12193_v60 }
 0xcb7   :  { %v10413_v47 = vadd.f32 %v10412_v15, %v10411_v44  ;;  %v10414_v53 = vpop.f32.mrb[30].mxu0  ;;  %v5108_v23 = vrot.slane %v5098_v59, %v12193_v60  ;;  %v5082_v48 = vcombine.low %v5067_v58, %v5074_v20  ;;  %v5081_v44 = vrot.slane %v12818_v31, %v12193_v60 }
 0xcb8   :  { %v4785_v35 = vadd.f32 %v10388_v1, %v10112_v41  ;;  %v10415_v38 = vpop.f32.mrb[31].mxu0  ;;  %v5057_v26 = vrot.slane %v5043_v25, %v12193_v60 }
 0xcb9   :  { %v4831_v37 = vadd.f32 %v10413_v47, %v4782_v40  ;;  %v10416_v46 = vadd.f32 %v10415_v38, %v10414_v53  ;;  %v5089_v50 = vrot.slane %v5082_v48, %v12193_v60  ;;  %v5096_v29 = vrot.slane %v5081_v44, %v12193_v60  ;;  %v11041_v48 = vld [vmem:[#allocation23 + $0x18] sm:$0xff]   ;;  %v11046_v44 = vld [vmem:[%s13655_s21 + $0x30] sm:$0xff]  }
 0xcba   :  { %v5058_v10 = vcombine.low %v5050_v9, %v5057_v26 }
 0xcbb   :  { %v4939_v28 = vcombine.high %v4831_v37, %v4831_v37  ;;  %v4946_v52 = vrot.slane %v4831_v37, %v12193_v60  ;;  %v4834_v18 = vadd.f32 %v10416_v46, %v4785_v35  ;;  %v5097_v9 = vcombine.low %v5089_v50, %v5096_v29 }
 0xcbc   :  { %v12829_v41 = vadd.f32 %v5058_v10, %v12562_v12 }
 0xcbd   :  { %v4953_v55 = vrot.slane %v4939_v28, %v12193_v60  ;;  %v4954_v45 = vcombine.high %v4946_v52, %v4946_v52  ;;  %v4962_v33 = vrot.slane %v4946_v52, %v12193_v60  ;;  %v4994_v14 = vrot.slane %v4834_v18, %v12193_v60 }
 0xcbe   :  { %5196 = vadd.xlane.f32.xlu1 %v12829_v41  ;;  %v12861_v61 = vadd.f32 %v5097_v9, %v12572_v11 }
 0xcbf   :  { %v4955_v62 = vcombine.high %v4953_v55, %v4953_v55  ;;  %v4969_v2 = vrot.slane %v4953_v55, %v12193_v60  ;;  %v4976_v12 = vrot.slane %v4954_v45, %v12193_v60  ;;  %v4984_v3 = vcombine.high %v4962_v33, %v4962_v33 }
 0xcc0   :  { %v5099_v34 = vcombine.low %v4938_v32, %v4962_v33  ;;  %v4995_v5 = vcombine.high %v4994_v14, %v4994_v14  ;;  %v5002_v22 = vrot.slane %v4994_v14, %v12193_v60  ;;  %v5198_v52 = vsel %vm717_vm3, %v12861_v61, 0.0 }
 0xcc1   :  { %v4983_v63 = vrot.slane %v4955_v62, %v12193_v60  ;;  %v4985_v6 = vcombine.high %v4969_v2, %v4969_v2  ;;  %v4986_v16 = vcombine.high %v4976_v12, %v4976_v12  ;;  %v5100_v17 = vcombine.low %v4976_v12, %v4984_v3 }
 0xcc2   :  { %v5115_v57 = vrot.slane %v5099_v34, %v12193_v60  ;;  %v5009_v19 = vrot.slane %v4995_v5, %v12193_v60 }
 0xcc3   :  { %v5101_v24 = vcombine.low %v4986_v16, %v4969_v2  ;;  %v5147_v8 = vcombine.low %v4983_v63, %v4985_v6  ;;  %v4987_v30 = vcombine.high %v4983_v63, %v4983_v63  ;;  %v5122_v15 = vrot.slane %v5100_v17, %v12193_v60  ;;  %v11034_v63 = vld [vmem:[%s13655_s21] sm:$0xff]   ;;  %v11035_v6 = vld [vmem:[#allocation23] sm:$0xff]   ;;  %v11037_v17 = vld [vmem:[#allocation23 + $0x8] sm:$0xff]  }
 0xcc4   :  { %v5130_v49 = vcombine.low %v5108_v23, %v5115_v57  ;;  %v5169_v43 = vrot.slane %v5009_v19, %v12193_v60  ;;  %10689 = vmatprep.subr.bf16.mxu1 %v11034_v63  ;;  %10709 = vmatprep.subr.bf16.mxu0 %v11035_v6  ;;  %v11036_v16 = vld [vmem:[%s13655_s21 + $0x8] sm:$0xff]   ;;  %v11038_v57 = vld [vmem:[%s13655_s21 + $0x10] sm:$0xff]   ;;  %v11040_v23 = vld [vmem:[%s13655_s21 + $0x18] sm:$0xff]  }
 0xcc5   :  { %v5148_v40 = vcombine.low %v4987_v30, %v5002_v22  ;;  %v5129_v1 = vrot.slane %v5101_v24, %v12193_v60  ;;  %v5155_v53 = vrot.slane %v5147_v8, %v12193_v60  ;;  %10690 = vmatpush3.bf16.msra.mxu1 %v11034_v63  ;;  %10710 = vmatpush3.bf16.msra.mxu0 %v11035_v6  ;;  %v11039_v22 = vld [vmem:[#allocation23 + $0x10] sm:$0xff]   ;;  %v11043_v8 = vld [vmem:[#allocation23 + $0x20] sm:$0xff]   ;;  %v11045_v19 = vld [vmem:[#allocation23 + $0x28] sm:$0xff]  }
 0xcc6   :  { %v5138_v35 = vrot.slane %v5130_v49, %v12193_v60  ;;  %v5184_v46 = vrot.slane %v5169_v43, %v12193_v60  ;;  %10691 = vmatprep.subr.bf16.mxu1 %v11036_v16  ;;  %10711 = vmatprep.subr.bf16.mxu0 %v11037_v17  ;;  %v11042_v24 = vld [vmem:[%s13655_s21 + $0x20] sm:$0xff]   ;;  %v11044_v30 = vld [vmem:[%s13655_s21 + $0x28] sm:$0xff]  }
 0xcc7   :  { %v5162_v25 = vrot.slane %v5148_v40, %v12193_v60  ;;  %v5131_v47 = vcombine.low %v5122_v15, %v5129_v1  ;;  %v11047_v49 = vld [vmem:[#allocation23 + $0x30] sm:$0xff]   ;;  %v11049_v15 = vld [vmem:[#allocation23 + $0x38] sm:$0xff]   ;;  %v12901_v1 = vld [vmem:[#allocation24] sm:$0xff]  }
 0xcc8   :  { %v11048_v40 = vld [vmem:[%s13655_s21 + $0x38] sm:$0xff]  }
 0xcc9   :  { %v5145_v31 = vrot.slane %v5131_v47, %v12193_v60  ;;  %v5170_v38 = vcombine.low %v5155_v53, %v5162_v25  ;;  %10692 = vmatpush3.bf16.msra.mxu1 %v11036_v16  ;;  %10712 = vmatpush3.bf16.msra.mxu0 %v11037_v17  ;;  %v10148_v53 = vld [vmem:[%s13656_s20] ss:$0 sm:$0xff] }
 0xcca   :  { %10693 = vmatprep.subr.bf16.mxu1 %v11038_v57  ;;  %10713 = vmatprep.subr.bf16.mxu0 %v11039_v22 }
 0xccb   :  { %v5146_v26 = vcombine.low %v5138_v35, %v5145_v31  ;;  %v5177_v37 = vrot.slane %v5170_v38, %v12193_v60  ;;  %v10149_v35 = vld [vmem:[%s13657_s11] ss:$0 sm:$0xff] }
 0xccd   :  { %v12858_v42 = vadd.f32 %v5146_v26, %v12578_v27  ;;  %v5185_v51 = vcombine.low %v5177_v37, %v5184_v46  ;;  %10694 = vmatpush3.bf16.msra.mxu1 %v11038_v57  ;;  %10714 = vmatpush3.bf16.msra.mxu0 %v11039_v22 }
 0xcce   :  { %10695 = vmatprep.subr.bf16.mxu1 %v11040_v23  ;;  %10715 = vmatprep.subr.bf16.mxu0 %v11041_v48 }
 0xccf   :  { %5201 = vadd.xlane.f32.xlu0 %v12858_v42  ;;  %v12865_v10 = vadd.f32 %v5185_v51, %v12576_v56 }
 0xcd1   :  { %v5203_v28 = vsel %vm717_vm3, %v12865_v10, 0.0  ;;  %10696 = vmatpush3.bf16.msra.mxu1 %v11040_v23  ;;  %10716 = vmatpush3.bf16.msra.mxu0 %v11041_v48 }
 0xcd2   :  { %5204 = vadd.xlane.f32.xlu1 %v5203_v28  ;;  %10697 = vmatprep.subr.bf16.mxu1 %v11042_v24 }
 0xcd3   :  { %5199 = vadd.xlane.f32.xlu0 %v5198_v52  ;;  %10717 = vmatprep.subr.bf16.mxu0 %v11043_v8 }
 0xcd5   :  { %10698 = vmatpush3.bf16.msra.mxu1 %v11042_v24  ;;  %10718 = vmatpush3.bf16.msra.mxu0 %v11043_v8 }
 0xcd6   :  { %10699 = vmatprep.subr.bf16.mxu1 %v11044_v30  ;;  %10719 = vmatprep.subr.bf16.mxu0 %v11045_v19 }
 0xcd9   :  { %10700 = vmatpush3.bf16.msra.mxu1 %v11044_v30  ;;  %10720 = vmatpush3.bf16.msra.mxu0 %v11045_v19 }
 0xcda   :  { %10701 = vmatprep.subr.bf16.mxu1 %v11046_v44  ;;  %10721 = vmatprep.subr.bf16.mxu0 %v11047_v49 }
 0xcdd   :  { %10702 = vmatpush3.bf16.msra.mxu1 %v11046_v44  ;;  %10722 = vmatpush3.bf16.msra.mxu0 %v11047_v49 }
 0xcde   :  { %10703 = vmatprep.subr.bf16.mxu1 %v11048_v40  ;;  %10723 = vmatprep.subr.bf16.mxu0 %v11049_v15 }
 0xce1   :  { %10704 = vmatpush3.bf16.msra.mxu1 %v11048_v40  ;;  %10724 = vmatpush3.bf16.msra.mxu0 %v11049_v15 }
 0xce2   :  { %10729 = vmatprep.subr.bf16.mxu1 %v12901_v1 }
 0xd4b   :  { %v5197_v18 = vpop.xlane.xlu1 %5196 }
 0xd4c   :  { %v5206_v27 = vmul.f32 0.0078125, %v5197_v18 }
 0xd4e   :  { %v12872_v32 = vsub.f32 %v12829_v41, %v5206_v27 }
 0xd50   :  { %v5214_v11 = vmul.f32 %v12872_v32, %v12872_v32 }
 0xd52   :  { %5218 = vadd.xlane.f32.xlu1 %v5214_v11 }
 0xd5c   :  { %v5202_v55 = vpop.xlane.xlu0 %5201 }
 0xd5d   :  { %v5208_v56 = vmul.f32 0.0078125, %v5202_v55 }
 0xd5f   :  { %v12877_v45 = vsub.f32 %v12858_v42, %v5208_v56  ;;  %v5205_v33 = vpop.xlane.xlu1 %5204 }
 0xd60   :  { %v5209_v14 = vmul.f32 0.0078125, %v5205_v33  ;;  %v5200_v58 = vpop.xlane.xlu0 %5199 }
 0xd61   :  { %v5207_v20 = vmul.f32 0.0078125, %v5200_v58  ;;  %v5216_v59 = vmul.f32 %v12877_v45, %v12877_v45 }
 0xd62   :  { %v12882_v62 = vsub.f32 %v12865_v10, %v5209_v14 }
 0xd63   :  { %v12885_v2 = vsub.f32 %v12861_v61, %v5207_v20  ;;  %5223 = vadd.xlane.f32.xlu0 %v5216_v59 }
 0xd64   :  { %v5217_v12 = vmul.f32 %v12882_v62, %v12882_v62 }
 0xd65   :  { %v5215_v3 = vmul.f32 %v12885_v2, %v12885_v2 }
 0xd66   :  { %v5225_v34 = vsel %vm717_vm3, %v5217_v12, 0.0 }
 0xd67   :  { %5226 = vadd.xlane.f32.xlu1 %v5225_v34  ;;  %v5220_v5 = vsel %vm717_vm3, %v5215_v3, 0.0 }
 0xd68   :  { %5221 = vadd.xlane.f32.xlu0 %v5220_v5 }
 0xddf   :  { %v5219_v50 = vpop.xlane.xlu1 %5218 }
 0xde0   :  { %v5228_v25 = vmul.f32 0.0078125, %v5219_v50 }
 0xde2   :  { %v5232_v43 = vadd.f32 1e-05, %v5228_v25 }
 0xde4   :  { %11227 = vrsqrt.f32 %v5232_v43 }
 0xdee   :  { %v11228_v47 = vpop.eup %11227 }
 0xdef   :  { %v5240_v29 = vmul.f32 %v11228_v47, %v12872_v32 }
 0xdf0   :  { %v5224_v31 = vpop.xlane.xlu0 %5223 }
 0xdf1   :  { %v5250_v38 = vmul.f32 %v10148_v53, %v5240_v29  ;;  %v5230_v9 = vmul.f32 0.0078125, %v5224_v31 }
 0xdf3   :  { %v5260_v26 = vadd.f32 %v10149_v35, %v5250_v38  ;;  %v5234_v37 = vadd.f32 1e-05, %v5230_v9 }
 0xdf4   :  { %v5227_v46 = vpop.xlane.xlu1 %5226 }
 0xdf5   :  { %v5268_v51 = vcombine.high %v5260_v26, %v5260_v26  ;;  %11229 = vrsqrt.f32 %v5234_v37  ;;  %v5231_v28 = vmul.f32 0.0078125, %v5227_v46  ;;  %v5222_v52 = vpop.xlane.xlu0 %5221  ;;  %v5275_v18 = vrot.slane %v5260_v26, %v12193_v60 }
 0xdf6   :  { %v5229_v27 = vmul.f32 0.0078125, %v5222_v52 }
 0xdf7   :  { %v5235_v11 = vadd.f32 1e-05, %v5231_v28  ;;  %v5282_v56 = vrot.slane %v5268_v51, %v12193_v60  ;;  %v5283_v32 = vcombine.high %v5275_v18, %v5275_v18  ;;  %v5291_v20 = vrot.slane %v5275_v18, %v12193_v60 }
 0xdf8   :  { %v5233_v55 = vadd.f32 1e-05, %v5229_v27 }
 0xdf9   :  { %11231 = vrsqrt.f32 %v5235_v11  ;;  %v5284_v33 = vcombine.high %v5282_v56, %v5282_v56  ;;  %v5305_v14 = vrot.slane %v5283_v32, %v12193_v60  ;;  %v5298_v63 = vrot.slane %v5282_v56, %v12193_v60 }
 0xdfa   :  { %11233 = vrsqrt.f32 %v5233_v55 }
 0xdfb   :  { %v5312_v12 = vrot.slane %v5284_v33, %v12193_v60  ;;  %v5444_v3 = vcombine.low %v5291_v20, %v5305_v14  ;;  %v10150_v34 = vcombine.high %v5291_v20, %v5305_v14 }
 0xdfd   :  { %v5446_v22 = vcombine.low %v5298_v63, %v5312_v12  ;;  %v10151_v48 = vcombine.high %v5298_v63, %v5312_v12  ;;  %v12917_v24 = vrot.slane %v5444_v3, %v12193_v60 }
 0xdff   :  { %v11230_v58 = vpop.eup %11229  ;;  %v5475_v25 = vrot.slane %v10151_v48, %v12193_v60 }
 0xe00   :  { %v5242_v59 = vmul.f32 %v11230_v58, %v12877_v45  ;;  %v5461_v45 = vrot.slane %v10150_v34, %v12193_v60 }
 0xe02   :  { %v5252_v5 = vmul.f32 %v10148_v53, %v5242_v59  ;;  %v5476_v43 = vcombine.low %v12917_v24, %v5461_v45 }
 0xe03   :  { %v11232_v6 = vpop.eup %11231 }
 0xe04   :  { %v11234_v16 = vpop.eup %11233  ;;  %v5262_v17 = vadd.f32 %v10149_v35, %v5252_v5  ;;  %v5243_v57 = vmul.f32 %v11232_v6, %v12882_v62 }
 0xe05   :  { %v5241_v23 = vmul.f32 %v11234_v16, %v12885_v2  ;;  %v5468_v2 = vrot.slane %v5446_v22, %v12193_v60 }
 0xe06   :  { %v5356_v8 = vcombine.high %v5262_v17, %v5262_v17  ;;  %v5253_v30 = vmul.f32 %v10148_v53, %v5243_v57  ;;  %v5363_v19 = vrot.slane %v5262_v17, %v12193_v60 }
 0xe07   :  { %v5251_v44 = vmul.f32 %v10148_v53, %v5241_v23  ;;  %v5477_v11 = vcombine.low %v5468_v2, %v5475_v25  ;;  %v5484_v25 = vrot.slane %v5476_v43, %v12193_v60  ;;  %v11052_v43 = vld [vmem:[#allocation24 + $0x10] sm:$0xff]  }
 0xe08   :  { %v5370_v49 = vrot.slane %v5356_v8, %v12193_v60  ;;  %v5263_v40 = vadd.f32 %v10149_v35, %v5253_v30  ;;  %v5371_v15 = vcombine.high %v5363_v19, %v5363_v19  ;;  %v5379_v62 = vrot.slane %v5363_v19, %v12193_v60 }
 0xe09   :  { %v5261_v50 = vadd.f32 %v10149_v35, %v5251_v44 }
 0xe0a   :  { %v5372_v47 = vcombine.high %v5370_v49, %v5370_v49  ;;  %v5405_v29 = vcombine.high %v5263_v40, %v5263_v40  ;;  %v5412_v31 = vrot.slane %v5263_v40, %v12193_v60  ;;  %v5386_v38 = vrot.slane %v5370_v49, %v12193_v60 }
 0xe0b   :  { %v5317_v53 = vcombine.high %v5261_v50, %v5261_v50  ;;  %v5324_v9 = vrot.slane %v5261_v50, %v12193_v60  ;;  %v5393_v26 = vrot.slane %v5371_v15, %v12193_v60  ;;  %v5401_v37 = vcombine.high %v5379_v62, %v5379_v62 }
 0xe0c   :  { %v5419_v35 = vrot.slane %v5405_v29, %v12193_v60  ;;  %v5420_v46 = vcombine.high %v5412_v31, %v5412_v31  ;;  %v5427_v51 = vrot.slane %v5412_v31, %v12193_v60  ;;  %v5400_v28 = vrot.slane %v5372_v47, %v12193_v60 }
 0xe0d   :  { %v5331_v52 = vrot.slane %v5317_v53, %v12193_v60  ;;  %v5332_v18 = vcombine.high %v5324_v9, %v5324_v9  ;;  %v5403_v27 = vcombine.high %v5393_v26, %v5393_v26  ;;  %v5339_v56 = vrot.slane %v5324_v9, %v12193_v60 }
 0xe0e   :  { %v5442_v55 = vcombine.high %v5427_v51, %v5427_v51  ;;  %v5402_v32 = vcombine.high %v5386_v38, %v5386_v38  ;;  %v5404_v33 = vcombine.high %v5400_v28, %v5400_v28  ;;  %v5496_v20 = vcombine.low %v5393_v26, %v5401_v37 }
 0xe0f   :  { %v5346_v14 = vrot.slane %v5331_v52, %v12193_v60  ;;  %v5353_v58 = vrot.slane %v5332_v18, %v12193_v60  ;;  %v5542_v59 = vcombine.low %v5403_v27, %v5386_v38  ;;  %v5434_v12 = vrot.slane %v5419_v35, %v12193_v60  ;;  %v11054_v52 = vld [vmem:[#allocation24 + $0x20] sm:$0xff]   ;;  %v11055_v18 = vld [vmem:[#allocation24 + $0x28] sm:$0xff]   ;;  %v11056_v27 = vld [vmem:[#allocation24 + $0x30] sm:$0xff]  }
 0xe10   :  { %v5441_v3 = vrot.slane %v5420_v46, %v12193_v60  ;;  %v5543_v34 = vcombine.low %v5400_v28, %v5402_v32  ;;  %v5544_v5 = vcombine.low %v5404_v33, %v5427_v51  ;;  %v5524_v30 = vrot.slane %v5496_v20, %v12193_v60  ;;  %v11051_v51 = vld [vmem:[#allocation24 + $0x8] sm:$0xff]   ;;  %v11053_v28 = vld [vmem:[#allocation24 + $0x18] sm:$0xff]  }
 0xe11   :  { %v5493_v63 = vcombine.low %v5339_v56, %v5353_v58  ;;  %v10152_v6 = vcombine.high %v5339_v56, %v5353_v58  ;;  %v5495_v16 = vcombine.low %v5346_v14, %v5379_v62  ;;  %v5552_v17 = vrot.slane %v5542_v59, %v12193_v60 }
 0xe12   :  { %v5443_v57 = vcombine.high %v5441_v3, %v5441_v3  ;;  %v5545_v22 = vcombine.low %v5441_v3, %v5442_v55  ;;  %v5559_v23 = vrot.slane %v5543_v34, %v12193_v60  ;;  %v5566_v48 = vrot.slane %v5544_v5, %v12193_v60 }
 0xe13   :  { %v5503_v24 = vrot.slane %v5493_v63, %v12193_v60  ;;  %v5510_v45 = vrot.slane %v10152_v6, %v12193_v60  ;;  %v5517_v8 = vrot.slane %v5495_v16, %v12193_v60  ;;  %v5491_v40 = vrot.slane %v5477_v11, %v12193_v60  ;;  %v11057_v11 = vld [vmem:[#allocation24 + $0x38] sm:$0xff]  }
 0xe14   :  { %v5573_v19 = vrot.slane %v5545_v22, %v12193_v60  ;;  %v5574_v44 = vcombine.low %v5552_v17, %v5559_v23  ;;  %v5591_v49 = vcombine.low %v5443_v57, %v5434_v12 }
 0xe15   :  { %v5525_v15 = vcombine.low %v5503_v24, %v5510_v45  ;;  %v5526_v62 = vcombine.low %v5517_v8, %v5524_v30  ;;  %v5492_v53 = vcombine.low %v5484_v25, %v5491_v40 }
 0xe16   :  { %v5575_v50 = vcombine.low %v5566_v48, %v5573_v19  ;;  %v5598_v2 = vrot.slane %v5591_v49, %v12193_v60  ;;  %v5582_v31 = vrot.slane %v5574_v44, %v12193_v60 }
 0xe17   :  { %v5533_v47 = vrot.slane %v5525_v15, %v12193_v60  ;;  %v5540_v29 = vrot.slane %v5526_v62, %v12193_v60 }
 0xe18   :  { %v5589_v38 = vrot.slane %v5575_v50, %v12193_v60  ;;  %v5605_v37 = vrot.slane %v5598_v2, %v12193_v60 }
 0xe19   :  { %v5541_v9 = vcombine.low %v5533_v47, %v5540_v29 }
 0xe1a   :  { %v5590_v26 = vcombine.low %v5582_v31, %v5589_v38 }
 0xe1b   :  { %v5610_v35 = vpack.c.bf16 %v5541_v9, %v5492_v53 }
 0xe1c   :  { %v5611_v46 = vpack.c.bf16 %v5605_v37, %v5590_v26 }
 0xe1d   :  { %10705 = vmatprep.mubr.bf16.mxu1 %v5610_v35  ;;  %10725 = vmatprep.mubr.bf16.mxu0 %v5610_v35 }
 0xe1e   :  { %10706 = vmatmul.mubr.bf16.vlgmr.msra.gmra.mrb[44].mxu1 %v5611_v46  ;;  %10726 = vmatmul.mubr.bf16.vlgmr.msra.gmra.mrb[32].mxu0 %v5611_v46 }
 0xe1f   :  { %10730 = vmatpush3.bf16.msra.mxu1 %v12901_v1  ;;  %10745 = vmatprep.mubr.bf16.mxu1 %v5610_v35 }
 0xe20   :  { %10731 = vmatprep.subr.bf16.mxu1 %v11051_v51 }
 0xe23   :  { %10732 = vmatpush3.bf16.msra.mxu1 %v11051_v51 }
 0xe24   :  { %10733 = vmatprep.subr.bf16.mxu1 %v11052_v43 }
 0xe27   :  { %10734 = vmatpush3.bf16.msra.mxu1 %v11052_v43 }
 0xe28   :  { %10735 = vmatprep.subr.bf16.mxu1 %v11053_v28 }
 0xe2b   :  { %10736 = vmatpush3.bf16.msra.mxu1 %v11053_v28 }
 0xe2c   :  { %10737 = vmatprep.subr.bf16.mxu1 %v11054_v52 }
 0xe2f   :  { %10738 = vmatpush3.bf16.msra.mxu1 %v11054_v52 }
 0xe30   :  { %10739 = vmatprep.subr.bf16.mxu1 %v11055_v18 }
 0xe33   :  { %10740 = vmatpush3.bf16.msra.mxu1 %v11055_v18 }
 0xe34   :  { %10741 = vmatprep.subr.bf16.mxu1 %v11056_v27 }
 0xe37   :  { %10742 = vmatpush3.bf16.msra.mxu1 %v11056_v27 }
 0xe38   :  { %10743 = vmatprep.subr.bf16.mxu1 %v11057_v11 }
 0xe3b   :  { %10744 = vmatpush3.bf16.msra.mxu1 %v11057_v11 }
 0xe3c   :  { %10749 = vmatprep.subr.bf16.mxu1 %v11797_v0 }
 0xe3e   :  { %10746 = vmatmul.mubr.bf16.vlgmr.msra.gmra.mrb[48].mxu1 %v5611_v46 }
 0xe3f   :  { %10751 = vmatprep.mubr.msk.bf16.mxu1 %vm11798_vm0, %v11797_v0 }
 0xef1   :  { %v10707_v1 = vpop.f32.mrb[44].mxu1  ;;  %v10727_v55 = vpop.f32.mrb[32].mxu0 }
 0xef2   :  { %v5953_v56 = vmul.f32 0.088388346, %v10707_v1  ;;  %v6412_v32 = vcombine.high %v10727_v55, %v10727_v55  ;;  %v6419_v33 = vrot.slane %v10727_v55, %v12193_v60  ;;  %v5710_v14 = vpop.f32.mrb[45].mxu1  ;;  %v5823_v58 = vpop.f32.mrb[33].mxu0 }
 0xef3   :  { %v5951_v20 = vmul.f32 0.088388346, %v5710_v14  ;;  %v10708_v59 = vpop.f32.mrb[46].mxu1  ;;  %v12960_v12 = vpop.f32.mrb[34].mxu0  ;;  %v6314_v24 = vcombine.high %v5823_v58, %v5823_v58  ;;  %v6321_v47 = vrot.slane %v5823_v58, %v12193_v60 }
 0xef4   :  { %v6057_v3 = vcombine.high %v5953_v56, %v5953_v56  ;;  %v6064_v34 = vrot.slane %v5953_v56, %v12193_v60  ;;  %v6426_v5 = vrot.slane %v6412_v32, %v12193_v60  ;;  %v6427_v63 = vcombine.high %v6419_v33, %v6419_v33  ;;  %v12964_v6 = vpop.f32.mrb[47].mxu1  ;;  %v12966_v16 = vpop.f32.mrb[35].mxu0 }
 0xef5   :  { %v12969_v17 = vrot.slane %v6419_v33, %v12193_v60  ;;  %v5959_v57 = vcombine.high %v5951_v20, %v5951_v20  ;;  %v5966_v19 = vrot.slane %v5951_v20, %v12193_v60  ;;  %v6328_v29 = vrot.slane %v6314_v24, %v12193_v60 }
 0xef6   :  { %v6071_v22 = vrot.slane %v6057_v3, %v12193_v60  ;;  %v6072_v23 = vcombine.high %v6064_v34, %v6064_v34  ;;  %v12973_v48 = vrot.slane %v6064_v34, %v12193_v60  ;;  %v6428_v45 = vcombine.high %v6426_v5, %v6426_v5 }
 0xef7   :  { %v6442_v8 = vrot.slane %v6426_v5, %v12193_v60  ;;  %v6449_v30 = vrot.slane %v6427_v63, %v12193_v60  ;;  %v5973_v15 = vrot.slane %v5959_v57, %v12193_v60  ;;  %v6457_v50 = vcombine.high %v12969_v17, %v12969_v17 }
 0xef8   :  { %v6073_v44 = vcombine.high %v6071_v22, %v6071_v22  ;;  %v6087_v49 = vrot.slane %v6071_v22, %v12193_v60  ;;  %v6094_v40 = vrot.slane %v6072_v23, %v12193_v60  ;;  %v6102_v62 = vcombine.high %v12973_v48, %v12973_v48 }
 0xef9   :  { %v6459_v2 = vcombine.high %v6449_v30, %v6449_v30  ;;  %v5974_v9 = vcombine.high %v5966_v19, %v5966_v19  ;;  %v6456_v37 = vrot.slane %v6428_v45, %v12193_v60  ;;  %v6458_v35 = vcombine.high %v6442_v8, %v6442_v8 }
 0xefa   :  { %v6104_v25 = vcombine.high %v6094_v40, %v6094_v40  ;;  %v6101_v31 = vrot.slane %v6073_v44, %v12193_v60  ;;  %v6103_v38 = vcombine.high %v6087_v49, %v6087_v49  ;;  %v5975_v46 = vcombine.high %v5973_v15, %v5973_v15 }
 0xefb   :  { %v6574_v53 = vcombine.low %v6459_v2, %v6442_v8  ;;  %v6218_v51 = vcombine.low %v6094_v40, %v6102_v62  ;;  %v6573_v43 = vcombine.low %v6449_v30, %v6457_v50  ;;  %v5982_v28 = vrot.slane %v5966_v19, %v12193_v60 }
 0xefc   :  { %v6219_v26 = vcombine.low %v6104_v25, %v6087_v49  ;;  %v5996_v52 = vrot.slane %v5974_v9, %v12193_v60  ;;  %v5989_v18 = vrot.slane %v5973_v15, %v12193_v60  ;;  %v6003_v27 = vrot.slane %v5975_v46, %v12193_v60 }
 0xefd   :  { %v6329_v11 = vcombine.high %v6321_v47, %v6321_v47  ;;  %v6330_v1 = vcombine.high %v6328_v29, %v6328_v29  ;;  %v6265_v55 = vcombine.low %v6101_v31, %v6103_v38  ;;  %v6602_v56 = vrot.slane %v6574_v53, %v12193_v60 }
 0xefe   :  { %v6128_v32 = vcombine.low %v5982_v28, %v5996_v52  ;;  %v10177_v33 = vcombine.high %v5982_v28, %v5996_v52  ;;  %v6247_v14 = vrot.slane %v6219_v26, %v12193_v60  ;;  %v6130_v58 = vcombine.low %v5989_v18, %v6003_v27 }
 0xeff   :  { %v10178_v20 = vcombine.high %v5989_v18, %v6003_v27  ;;  %v6337_v3 = vrot.slane %v6321_v47, %v12193_v60  ;;  %v6351_v63 = vrot.slane %v6329_v11, %v12193_v60  ;;  %v6358_v57 = vrot.slane %v6330_v1, %v12193_v60 }
 0xf00   :  { %v12997_v34 = vrot.slane %v6128_v32, %v12193_v60  ;;  %v13000_v5 = vrot.slane %v10177_v33, %v12193_v60  ;;  %v13005_v22 = vrot.slane %v6130_v58, %v12193_v60  ;;  %v6344_v24 = vrot.slane %v6328_v29, %v12193_v60 }
 0xf01   :  { %v13008_v23 = vrot.slane %v10178_v20, %v12193_v60  ;;  %v5954_v45 = vmul.f32 0.088388346, %v10708_v59  ;;  %v6240_v8 = vrot.slane %v6218_v51, %v12193_v60  ;;  %v6595_v30 = vrot.slane %v6573_v43, %v12193_v60 }
 0xf02   :  { %v6620_v19 = vcombine.low %v6456_v37, %v6458_v35  ;;  %v6483_v44 = vcombine.low %v6337_v3, %v6351_v63  ;;  %v10180_v49 = vcombine.high %v6337_v3, %v6351_v63  ;;  %v6485_v40 = vcombine.low %v6344_v24, %v6358_v57 }
 0xf03   :  { %v6105_v15 = vcombine.high %v6101_v31, %v6101_v31  ;;  %v6112_v62 = vrot.slane %v5954_v45, %v12193_v60  ;;  %v13014_v50 = vcombine.low %v6240_v8, %v6247_v14  ;;  %v13016_v2 = vcombine.low %v6595_v30, %v6602_v56 }
 0xf04   :  { %v6160_v25 = vcombine.low %v12997_v34, %v13000_v5  ;;  %v6161_v59 = vcombine.low %v13005_v22, %v13008_v23  ;;  %v10181_v47 = vcombine.high %v6344_v24, %v6358_v57  ;;  %v6273_v38 = vrot.slane %v6265_v55, %v12193_v60 }
 0xf05   :  { %v6120_v29 = vrot.slane %v6112_v62, %v12193_v60  ;;  %v6467_v31 = vrot.slane %v12960_v12, %v12193_v60  ;;  %v13027_v53 = vrot.slane %v6483_v44, %v12193_v60  ;;  %v6460_v9 = vcombine.high %v6456_v37, %v6456_v37 }
 0xf06   :  { %v5952_v26 = vmul.f32 0.088388346, %v12964_v6  ;;  %v6363_v35 = vcombine.high %v12966_v16, %v12966_v16  ;;  %v6500_v46 = vrot.slane %v10180_v49, %v12193_v60  ;;  %v13034_v51 = vrot.slane %v6485_v40, %v12193_v60 }
 0xf07   :  { %v6266_v43 = vcombine.low %v6105_v15, %v6120_v29  ;;  %v6468_v28 = vcombine.high %v6467_v31, %v6467_v31  ;;  %v6475_v52 = vrot.slane %v6467_v31, %v12193_v60  ;;  %v6370_v37 = vrot.slane %v12966_v16, %v12193_v60 }
 0xf08   :  { %v6008_v18 = vcombine.high %v5952_v26, %v5952_v26  ;;  %v6015_v12 = vrot.slane %v5952_v26, %v12193_v60  ;;  %v6514_v6 = vrot.slane %v10181_v47, %v12193_v60  ;;  %v6377_v1 = vrot.slane %v6363_v35, %v12193_v60 }
 0xf09   :  { %v6280_v27 = vrot.slane %v6266_v43, %v12193_v60  ;;  %v6482_v11 = vrot.slane %v6468_v28, %v12193_v60  ;;  %v6113_v55 = vcombine.high %v6112_v62, %v6112_v62  ;;  %v6621_v56 = vcombine.low %v6460_v9, %v6475_v52 }
 0xf0a   :  { %v6022_v32 = vrot.slane %v6008_v18, %v12193_v60  ;;  %v6023_v33 = vcombine.high %v6015_v12, %v6015_v12  ;;  %v6628_v58 = vrot.slane %v6620_v19, %v12193_v60  ;;  %v6031_v20 = vrot.slane %v6015_v12, %v12193_v60 }
 0xf0b   :  { %v13045_v14 = vcombine.low %v6273_v38, %v6280_v27  ;;  %v6378_v16 = vcombine.high %v6370_v37, %v6370_v37  ;;  %v6635_v3 = vrot.slane %v6621_v56, %v12193_v60  ;;  %v6515_v45 = vcombine.low %v13027_v53, %v6500_v46 }
 0xf0c   :  { %v6024_v63 = vcombine.high %v6022_v32, %v6022_v32  ;;  %v13051_v57 = vrot.slane %v6022_v32, %v12193_v60  ;;  %v6045_v24 = vrot.slane %v6023_v33, %v12193_v60  ;;  %v6642_v8 = vrot.slane %v6482_v11, %v12193_v60 }
 0xf0d   :  { %v6379_v30 = vcombine.high %v6377_v1, %v6377_v1  ;;  %v6393_v44 = vrot.slane %v6377_v1, %v12193_v60  ;;  %v6516_v19 = vcombine.low %v13034_v51, %v6514_v6  ;;  %v6643_v49 = vcombine.low %v6628_v58, %v6635_v3 }
 0xf0e   :  { %v13059_v40 = vrot.slane %v6024_v63, %v12193_v60  ;;  %v6177_v15 = vcombine.low %v6031_v20, %v6045_v24  ;;  %v13062_v62 = vrot.slane %v6113_v55, %v12193_v60  ;;  %v10179_v47 = vcombine.high %v6031_v20, %v6045_v24 }
 0xf0f   :  { %v6400_v29 = vrot.slane %v6378_v16, %v12193_v60  ;;  %v6407_v38 = vrot.slane %v6379_v30, %v12193_v60  ;;  %v6199_v9 = vrot.slane %v13051_v57, %v12193_v60  ;;  %v6386_v26 = vrot.slane %v6370_v37, %v12193_v60 }
 0xf10   :  { %v6056_v31 = vcombine.high %v13059_v40, %v13059_v40  ;;  %v6185_v53 = vrot.slane %v6177_v15, %v12193_v60  ;;  %v6657_v46 = vrot.slane %v6642_v8, %v12193_v60  ;;  %v6192_v51 = vrot.slane %v10179_v47, %v12193_v60 }
 0xf11   :  { %v10747_v35 = vpop.f32.mrb[48].mxu1  ;;  %v6409_v43 = vcombine.high %v6393_v44, %v6393_v44  ;;  %v6411_v28 = vcombine.high %v6407_v38, %v6407_v38  ;;  %v6650_v18 = vrot.slane %v6643_v49, %v12193_v60  ;;  %v6532_v6 = vcombine.low %v6386_v26, %v6400_v29 }
 0xf12   :  { %v5936_v52 = vpop.f32.mrb[49].mxu1  ;;  %v13076_v12 = vcombine.low %v6056_v31, %v12973_v48  ;;  %v10182_v27 = vcombine.high %v6386_v26, %v6400_v29  ;;  %v6200_v1 = vcombine.low %v6185_v53, %v6192_v51  ;;  %v6554_v55 = vrot.slane %v6393_v44, %v12193_v60 }
 0xf13   :  { %v10748_v11 = vpop.f32.mrb[50].mxu1  ;;  %v6571_v37 = vcombine.low %v6407_v38, %v6409_v43  ;;  %v6572_v56 = vcombine.low %v6411_v28, %v12969_v17  ;;  %v6214_v33 = vrot.slane %v6199_v9, %v12193_v60  ;;  %v6540_v58 = vrot.slane %v6532_v6, %v12193_v60 }
 0xf14   :  { %v13080_v32 = vpop.f32.mrb[51].mxu1  ;;  %v6547_v20 = vrot.slane %v10182_v27, %v12193_v60  ;;  %v6523_v48 = vrot.slane %v6515_v45, %v12193_v60  ;;  %v6569_v16 = vrot.slane %v6554_v55, %v12193_v60  ;;  %v6530_v24 = vrot.slane %v6516_v19, %v12193_v60 }
 0xf15   :  { %v6581_v3 = vrot.slane %v6571_v37, %v12193_v60  ;;  %v6588_v63 = vrot.slane %v6572_v56, %v12193_v60  ;;  %v6168_v17 = vrot.slane %v6160_v25, %v12193_v60  ;;  %v6175_v30 = vrot.slane %v6161_v59, %v12193_v60 }
 0xf16   :  { %v6555_v8 = vcombine.low %v6540_v58, %v6547_v20  ;;  %v6207_v45 = vrot.slane %v6200_v1, %v12193_v60  ;;  %v6531_v44 = vcombine.low %v6523_v48, %v6530_v24  ;;  %v6618_v15 = vrot.slane %v13016_v2, %v12193_v60 }
 0xf17   :  { %v6603_v49 = vcombine.low %v6581_v3, %v6588_v63  ;;  %v6658_v47 = vcombine.low %v6650_v18, %v6657_v46  ;;  %v6176_v29 = vcombine.low %v6168_v17, %v6175_v30  ;;  %v6767_v31 = vcombine.high %v10747_v35, %v10747_v35 }
 0xf18   :  { %v6562_v19 = vrot.slane %v6555_v8, %v12193_v60  ;;  %v6215_v38 = vcombine.low %v6207_v45, %v6214_v33  ;;  %v6774_v5 = vrot.slane %v10747_v35, %v12193_v60  ;;  %v6669_v25 = vcombine.high %v5936_v52, %v5936_v52 }
 0xf19   :  { %v6611_v34 = vrot.slane %v6603_v49, %v12193_v60  ;;  %v6676_v22 = vrot.slane %v5936_v52, %v12193_v60  ;;  %v6054_v23 = vcombine.high %v13051_v57, %v13051_v57  ;;  %v6781_v2 = vrot.slane %v6767_v31, %v12193_v60 }
 0xf1a   :  { %v6570_v59 = vcombine.low %v6562_v19, %v6569_v16  ;;  %v6308_v53 = vpack.c.bf16 %v6215_v38, %v6176_v29  ;;  %v6782_v26 = vcombine.high %v6774_v5, %v6774_v5  ;;  %v6683_v46 = vrot.slane %v6669_v25, %v12193_v60 }
 0xf1b   :  { %v6619_v9 = vcombine.low %v6611_v34, %v6618_v15  ;;  %v6822_v51 = vrot.slane %v10748_v11, %v12193_v60  ;;  %v6783_v28 = vcombine.high %v6781_v2, %v6781_v2  ;;  %v6797_v35 = vrot.slane %v6781_v2, %v12193_v60 }
 0xf1c   :  { %v6663_v43 = vpack.c.bf16 %v6570_v59, %v6531_v44  ;;  %v6684_v18 = vcombine.high %v6676_v22, %v6676_v22  ;;  %v13112_v52 = vrot.slane %v6774_v5, %v12193_v60  ;;  %v6804_v57 = vrot.slane %v6782_v26, %v12193_v60 }
 0xf1d   :  { %v6664_v6 = vpack.c.bf16 %v6658_v47, %v6619_v9  ;;  %v6685_v27 = vcombine.high %v6683_v46, %v6683_v46  ;;  %v6287_v1 = vrot.slane %v13062_v62, %v12193_v60  ;;  %v6216_v55 = vcombine.low %v13059_v40, %v6054_v23 }
 0xf1e   :  { %10750 = vmatpush3.bf16.xpose.msra.mxu1 %v6663_v43  ;;  %v6811_v11 = vrot.slane %v6783_v28, %v12193_v60  ;;  %v6813_v37 = vcombine.high %v6797_v35, %v6797_v35  ;;  %v6692_v56 = vrot.slane %v6676_v22, %v12193_v60  ;;  %v6699_v33 = vrot.slane %v6683_v46, %v12193_v60 }
 0xf1f   :  { %10755 = vmatprep.subr.bf16.mxu1 %v11797_v0  ;;  %v6706_v58 = vrot.slane %v6684_v18, %v12193_v60  ;;  %v6713_v20 = vrot.slane %v6685_v27, %v12193_v60  ;;  %v6823_v3 = vcombine.high %v6822_v51, %v6822_v51  ;;  %v6830_v62 = vrot.slane %v6822_v51, %v12193_v60 }
 0xf20   :  { %v6975_v48 = vcombine.low %v6811_v11, %v6813_v37  ;;  %v6815_v16 = vcombine.high %v6811_v11, %v6811_v11  ;;  %v6812_v40 = vcombine.high %v13112_v52, %v13112_v52  ;;  %v6814_v63 = vcombine.high %v6804_v57, %v6804_v57 }
 0xf21   :  { %v6838_v24 = vcombine.low %v6692_v56, %v6706_v58  ;;  %v10183_v8 = vcombine.high %v6692_v56, %v6706_v58  ;;  %v6840_v17 = vcombine.low %v6699_v33, %v6713_v20  ;;  %v10184_v30 = vcombine.high %v6699_v33, %v6713_v20 }
 0xf22   :  { %v6837_v45 = vrot.slane %v6823_v3, %v12193_v60  ;;  %v6976_v44 = vcombine.low %v6815_v16, %v6830_v62  ;;  %v6233_v49 = vrot.slane %v13076_v12, %v12193_v60  ;;  %v6983_v19 = vrot.slane %v6975_v48, %v12193_v60 }
 0xf23   :  { %v6848_v15 = vrot.slane %v6838_v24, %v12193_v60  ;;  %v6855_v47 = vrot.slane %v10183_v8, %v12193_v60  ;;  %v6862_v29 = vrot.slane %v6840_v17, %v12193_v60  ;;  %v6869_v38 = vrot.slane %v10184_v30, %v12193_v60 }
 0xf24   :  { %v6990_v31 = vrot.slane %v6976_v44, %v12193_v60  ;;  %v6997_v34 = vrot.slane %v6837_v45, %v12193_v60  ;;  %v6302_v5 = vrot.slane %v6287_v1, %v12193_v60  ;;  %v6226_v25 = vrot.slane %v6216_v55, %v12193_v60 }
 0xf25   :  { %10752 = vmatmul.mubr.bf16.vlgmr.msra.gmra.mrb[52].mxu1 %v6308_v53  ;;  %v6718_v12 = vcombine.high %v13080_v32, %v13080_v32  ;;  %v6725_v22 = vrot.slane %v13080_v32, %v12193_v60  ;;  %v6928_v23 = vcombine.low %v6804_v57, %v6812_v40  ;;  %v6929_v59 = vcombine.low %v6814_v63, %v6797_v35 }
 0xf26   :  { %10756 = vmatpush3.bf16.xpose.msra.mxu1 %v6664_v6  ;;  %v6998_v2 = vcombine.low %v6983_v19, %v6990_v31  ;;  %10757 = vmatprep.mubr.msk.bf16.mxu1 %vm11798_vm0, %v11797_v0  ;;  %v6870_v9 = vcombine.low %v6848_v15, %v6855_v47  ;;  %v6871_v26 = vcombine.low %v6862_v29, %v6869_v38 }
 0xf27   :  { %v6732_v46 = vrot.slane %v6718_v12, %v12193_v60  ;;  %v6733_v51 = vcombine.high %v6725_v22, %v6725_v22  ;;  %10761 = vmatprep.subr.bf16.mxu1 %v11797_v0  ;;  %v7012_v43 = vrot.slane %v6997_v34, %v12193_v60  ;;  %v6248_v28 = vcombine.low %v6226_v25, %v6233_v49 }
 0xf28   :  { %v7005_v53 = vrot.slane %v6998_v2, %v12193_v60  ;;  %v6295_v32 = vrot.slane %v13045_v14, %v12193_v60  ;;  %v6741_v18 = vrot.slane %v6725_v22, %v12193_v60  ;;  %v6263_v55 = vrot.slane %v13014_v50, %v12193_v60 }
 0xf29   :  { %v6734_v35 = vcombine.high %v6732_v46, %v6732_v46  ;;  %v6748_v6 = vrot.slane %v6732_v46, %v12193_v60  ;;  %v6755_v57 = vrot.slane %v6733_v51, %v12193_v60  ;;  %v6256_v1 = vrot.slane %v6248_v28, %v12193_v60 }
 0xf2a   :  { %v13154_v27 = vcombine.low %v7005_v53, %v7012_v43  ;;  %v6303_v11 = vcombine.low %v6295_v32, %v6302_v5  ;;  %v6957_v58 = vrot.slane %v6929_v59, %v12193_v60  ;;  %v6885_v16 = vrot.slane %v6871_v26, %v12193_v60 }
 0xf2b   :  { %v6762_v37 = vrot.slane %v6734_v35, %v12193_v60  ;;  %v6764_v56 = vcombine.high %v6748_v6, %v6748_v6  ;;  %v6887_v33 = vcombine.low %v6741_v18, %v6755_v57  ;;  %v10185_v14 = vcombine.high %v6741_v18, %v6755_v57 }
 0xf2c   :  { %v6909_v20 = vrot.slane %v6748_v6, %v12193_v60  ;;  %v6264_v48 = vcombine.low %v6256_v1, %v6263_v55  ;;  %v6950_v50 = vrot.slane %v6928_v23, %v12193_v60  ;;  %v6878_v24 = vrot.slane %v6870_v9, %v12193_v60 }
 0xf2d   :  { %v6766_v3 = vcombine.high %v6762_v37, %v6762_v37  ;;  %v6895_v62 = vrot.slane %v6887_v33, %v12193_v60  ;;  %v6902_v40 = vrot.slane %v10185_v14, %v12193_v60  ;;  %v6926_v63 = vcombine.low %v6762_v37, %v6764_v56 }
 0xf2e   :  { %v6309_v8 = vpack.c.bf16 %v6303_v11, %v6264_v48  ;;  %v6959_v45 = vcombine.low %v6950_v50, %v6957_v58  ;;  %v6886_v44 = vcombine.low %v6878_v24, %v6885_v16  ;;  %v6924_v15 = vrot.slane %v6909_v20, %v12193_v60  ;;  %v11058_v50 = vld [vmem:[#allocation26] sm:$0xff]  }
 0xf2f   :  { %v6910_v17 = vcombine.low %v6895_v62, %v6902_v40  ;;  %v6927_v30 = vcombine.low %v6766_v3, %v13112_v52  ;;  %v6936_v47 = vrot.slane %v6926_v63, %v12193_v60  ;;  %10773 = vmatprep.subr.bf16.mxu0 %v11058_v50 }
 0xf30   :  { %10758 = vmatmul.mubr.bf16.vlgmr.msra.gmra.mrb[56].mxu1 %v6309_v8  ;;  %v6973_v52 = vrot.slane %v6959_v45, %v12193_v60  ;;  %10774 = vmatpush3.bf16.msra.mxu0 %v11058_v50 }
 0xf31   :  { %v6917_v49 = vrot.slane %v6910_v17, %v12193_v60  ;;  %v6943_v19 = vrot.slane %v6927_v30, %v12193_v60  ;;  %10763 = vmatprep.mubr.msk.bf16.mxu1 %vm11798_vm0, %v11797_v0 }
 0xf33   :  { %v6958_v29 = vcombine.low %v6936_v47, %v6943_v19  ;;  %v6925_v38 = vcombine.low %v6917_v49, %v6924_v15 }
 0xf35   :  { %v7018_v31 = vpack.c.bf16 %v6925_v38, %v6886_v44  ;;  %v6966_v34 = vrot.slane %v6958_v29, %v12193_v60 }
 0xf37   :  { %v7152_v5 = vand.u32 %v7018_v31, %v12458_v54  ;;  %v13177_v25 = vcombine.low %v6966_v34, %v6973_v52 }
 0xf39   :  { %10762 = vmatpush3.bf16.msra.mxu1 %v7152_v5  ;;  %v7019_v12 = vpack.c.bf16 %v13154_v27, %v13177_v25  ;;  %v11059_v5 = vld [vmem:[#allocation26 + $0x8] sm:$0xff]   ;;  %v11060_v25 = vld [vmem:[#allocation26 + $0x10] sm:$0xff]  }
 0xf3a   :  { %10767 = vmatprep.subr.bf16.mxu1 %v11797_v0  ;;  %10775 = vmatprep.subr.bf16.mxu0 %v11059_v5 }
 0xf3b   :  { %v7199_v19 = vand.u32 %v7019_v12, %v12458_v54  ;;  %10776 = vmatpush3.bf16.msra.mxu0 %v11059_v5  ;;  %v11061_v54 = vld [vmem:[#allocation26 + $0x18] sm:$0xff]   ;;  %v11062_v12 = vld [vmem:[#allocation26 + $0x20] sm:$0xff]  }
 0xf3c   :  { %10777 = vmatprep.subr.bf16.mxu0 %v11060_v25 }
 0xf3f   :  { %10778 = vmatpush3.bf16.msra.mxu0 %v11060_v25 }
 0xf40   :  { %10779 = vmatprep.subr.bf16.mxu0 %v11061_v54 }
 0xf43   :  { %10780 = vmatpush3.bf16.msra.mxu0 %v11061_v54 }
 0xf44   :  { %10781 = vmatprep.subr.bf16.mxu0 %v11062_v12 }
 0xf47   :  { %10782 = vmatpush3.bf16.msra.mxu0 %v11062_v12 }
 0xff8   :  { %v7054_v22 = vpop.f32.mrb[52].mxu1 }
 0xff9   :  { %v10753_v23 = vpop.f32.mrb[53].mxu1  ;;  %v7102_v59 = vsel %vm2623_vm5, %v7054_v22, -inf }
 0xffa   :  { %7103 = vmax.xlane.f32.xlu0 %v7102_v59  ;;  %v7057_v2 = vpop.f32.mrb[54].mxu1  ;;  %v11064_v23 = vld [vmem:[#allocation26 + $0x30] sm:$0xff]   ;;  %v11065_v59 = vld [vmem:[#allocation26 + $0x38] sm:$0xff]  }
 0xffb   :  { %v10754_v9 = vpop.f32.mrb[55].mxu1  ;;  %v7105_v26 = vsel %vm2627_vm6, %v7057_v2, -inf }
 0xffc   :  { %7106 = vmax.xlane.f32.xlu1 %v7105_v26 }
0x1003   :  { %v7095_v46 = vpop.f32.mrb[56].mxu1 }
0x1004   :  { %v10759_v51 = vpop.f32.mrb[57].mxu1  ;;  %v7108_v53 = vsel %vm2623_vm5, %v7095_v46, -inf }
0x1005   :  { %7109 = vmax.xlane.f32.xlu0 %v7108_v53  ;;  %v7098_v43 = vpop.f32.mrb[58].mxu1 }
0x1006   :  { %v10760_v28 = vpop.f32.mrb[59].mxu1  ;;  %v7111_v32 = vsel %vm2627_vm6, %v7098_v43, -inf }
0x1007   :  { %7112 = vmax.xlane.f32.xlu1 %v7111_v32 }
0x1087   :  { %v7104_v35 = vpop.xlane.xlu0 %7103 }
0x1088   :  { %v7114_v18 = vsub.f32 %v7054_v22, %v7104_v35  ;;  %v11063_v22 = vld [vmem:[#allocation26 + $0x28] sm:$0xff]  }
0x1089   :  { %v7107_v6 = vpop.xlane.xlu1 %7106  ;;  %10783 = vmatprep.subr.bf16.mxu0 %v11063_v22 }
0x108a   :  { %v7118_v57 = vmul.f32 1.442695, %v7114_v18  ;;  %v7115_v27 = vsub.f32 %v7057_v2, %v7107_v6  ;;  %10784 = vmatpush3.bf16.msra.mxu0 %v11063_v22 }
0x108b   :  { %10785 = vmatprep.subr.bf16.mxu0 %v11064_v23 }
0x108c   :  { %11235 = vpow2.f32 %v7118_v57  ;;  %v7120_v1 = vmul.f32 1.442695, %v7115_v27 }
0x108e   :  { %11237 = vpow2.f32 %v7120_v1  ;;  %10786 = vmatpush3.bf16.msra.mxu0 %v11064_v23 }
0x108f   :  { %10787 = vmatprep.subr.bf16.mxu0 %v11065_v59 }
0x1092   :  { %v7110_v55 = vpop.xlane.xlu0 %7109  ;;  %10788 = vmatpush3.bf16.msra.mxu0 %v11065_v59 }
0x1093   :  { %v7116_v11 = vsub.f32 %v7095_v46, %v7110_v55 }
0x1094   :  { %v7113_v37 = vpop.xlane.xlu1 %7112 }
0x1095   :  { %v7122_v56 = vmul.f32 1.442695, %v7116_v11  ;;  %v7117_v33 = vsub.f32 %v7098_v43, %v7113_v37 }
0x1096   :  { %v11236_v14 = vpop.eup %11235 }
0x1097   :  { %11239 = vpow2.f32 %v7122_v56  ;;  %v7124_v58 = vmul.f32 1.442695, %v7117_v33  ;;  %v7126_v20 = vsel %vm2623_vm5, %v11236_v14, 0.0 }
0x1098   :  { %v11238_v48 = vpop.eup %11237  ;;  %7127 = vadd.xlane.f32.xlu0 %v7126_v20 }
0x1099   :  { %11241 = vpow2.f32 %v7124_v58  ;;  %v7129_v16 = vsel %vm2627_vm6, %v11238_v48, 0.0 }
0x109a   :  { %7130 = vadd.xlane.f32.xlu1 %v7129_v16 }
0x10a1   :  { %v11240_v3 = vpop.eup %11239 }
0x10a2   :  { %v7132_v62 = vsel %vm2623_vm5, %v11240_v3, 0.0 }
0x10a3   :  { %v11242_v40 = vpop.eup %11241  ;;  %7133 = vadd.xlane.f32.xlu0 %v7132_v62 }
0x10a4   :  { %v7135_v63 = vsel %vm2627_vm6, %v11242_v40, 0.0 }
0x10a5   :  { %7136 = vadd.xlane.f32.xlu1 %v7135_v63 }
0x1125   :  { %v7128_v24 = vpop.xlane.xlu0 %7127 }
0x1126   :  { %11243 = vrcp.f32 %v7128_v24 }
0x1127   :  { %v7131_v8 = vpop.xlane.xlu1 %7130 }
0x1128   :  { %11245 = vrcp.f32 %v7131_v8 }
0x1130   :  { %v11244_v17 = vpop.eup %11243  ;;  %v7134_v30 = vpop.xlane.xlu0 %7133 }
0x1131   :  { %11247 = vrcp.f32 %v7134_v30  ;;  %v7142_v49 = vmul.f32 %v11244_v17, %v11236_v14 }
0x1132   :  { %v11246_v45 = vpop.eup %11245  ;;  %v7137_v44 = vpop.xlane.xlu1 %7136 }
0x1133   :  { %v7143_v15 = vmul.f32 %v11246_v45, %v11238_v48  ;;  %11249 = vrcp.f32 %v7137_v44 }
0x1135   :  { %v7146_v47 = vpack.c.bf16 %v7143_v15, %v7142_v49 }
0x1137   :  { %10764 = vmatmul.mubr.msk.bf16.vlgmr.msra.gmra.mrb[60].mxu1 %vm2623_vm5, %v7146_v47 }
0x1138   :  { %10768 = vmatpush3.bf16.msra.mxu1 %v7199_v19  ;;  %10769 = vmatprep.mubr.msk.bf16.mxu1 %vm11798_vm0, %v11797_v0 }
0x113b   :  { %v11248_v29 = vpop.eup %11247 }
0x113c   :  { %v7144_v31 = vmul.f32 %v11248_v29, %v11240_v3 }
0x113d   :  { %v11250_v38 = vpop.eup %11249 }
0x113e   :  { %v7145_v34 = vmul.f32 %v11250_v38, %v11242_v40 }
0x1140   :  { %v7147_v52 = vpack.c.bf16 %v7145_v34, %v7144_v31 }
0x1142   :  { %10770 = vmatmul.mubr.msk.bf16.vlgmr.msra.gmra.mrb[64].mxu1 %vm2623_vm5, %v7147_v52 }
0x1143   :  { %8724 = vmatprep.mubr.bf16.mxu1 %v11802_v39 }
0x120a   :  { %v7188_v2 = vpop.f32.mrb[60].mxu1 }
0x120b   :  { %v7246_v9 = vcombine.high %v7188_v2, %v7188_v2  ;;  %v7253_v26 = vrot.slane %v7188_v2, %v12193_v60  ;;  %v10765_v46 = vpop.f32.mrb[61].mxu1 }
0x120c   :  { %v7191_v51 = vpop.f32.mrb[62].mxu1 }
0x120d   :  { %v7260_v53 = vrot.slane %v7246_v9, %v12193_v60  ;;  %v7261_v43 = vcombine.high %v7253_v26, %v7253_v26  ;;  %v10766_v28 = vpop.f32.mrb[63].mxu1  ;;  %v7295_v32 = vcombine.high %v7191_v51, %v7191_v51  ;;  %v7302_v35 = vrot.slane %v7191_v51, %v12193_v60 }
0x120e   :  { %v7269_v6 = vrot.slane %v7253_v26, %v12193_v60 }
0x120f   :  { %v7262_v18 = vcombine.high %v7260_v53, %v7260_v53  ;;  %v7283_v57 = vrot.slane %v7261_v43, %v12193_v60  ;;  %v7310_v27 = vcombine.high %v7302_v35, %v7302_v35  ;;  %v7276_v1 = vrot.slane %v7260_v53, %v12193_v60 }
0x1210   :  { %v7309_v56 = vrot.slane %v7295_v32, %v12193_v60  ;;  %v7317_v33 = vrot.slane %v7302_v35, %v12193_v60 }
0x1211   :  { %v7290_v55 = vrot.slane %v7262_v18, %v12193_v60  ;;  %v7422_v11 = vcombine.low %v7269_v6, %v7283_v57  ;;  %v10188_v37 = vcombine.high %v7269_v6, %v7283_v57  ;;  %v7331_v14 = vrot.slane %v7310_v27, %v12193_v60 }
0x1212   :  { %v7324_v45 = vrot.slane %v7309_v56, %v12193_v60 }
0x1213   :  { %v7424_v58 = vcombine.low %v7276_v1, %v7290_v55  ;;  %v10189_v20 = vcombine.high %v7276_v1, %v7290_v55  ;;  %v7432_v48 = vrot.slane %v7422_v11, %v12193_v60  ;;  %v7439_v16 = vrot.slane %v10188_v37, %v12193_v60 }
0x1214   :  { %v7471_v3 = vcombine.low %v7317_v33, %v7331_v14  ;;  %v10190_v63 = vcombine.high %v7317_v33, %v7331_v14 }
0x1215   :  { %v7446_v62 = vrot.slane %v7424_v58, %v12193_v60  ;;  %v7453_v40 = vrot.slane %v10189_v20, %v12193_v60  ;;  %v7235_v50 = vpop.f32.mrb[64].mxu1  ;;  %v7454_v30 = vcombine.low %v7432_v48, %v7439_v16 }
0x1216   :  { %v7334_v24 = vcombine.high %v7235_v50, %v7235_v50  ;;  %v7341_v8 = vrot.slane %v7235_v50, %v12193_v60  ;;  %v10771_v17 = vpop.f32.mrb[65].mxu1  ;;  %v7481_v49 = vrot.slane %v7471_v3, %v12193_v60  ;;  %v7488_v38 = vrot.slane %v10190_v63, %v12193_v60 }
0x1217   :  { %v7238_v44 = vpop.f32.mrb[66].mxu1  ;;  %v7455_v52 = vcombine.low %v7446_v62, %v7453_v40  ;;  %v7462_v20 = vrot.slane %v7454_v30, %v12193_v60 }
0x1218   :  { %v7348_v15 = vrot.slane %v7334_v24, %v12193_v60  ;;  %v7349_v47 = vcombine.high %v7341_v8, %v7341_v8  ;;  %v7357_v19 = vrot.slane %v7341_v8, %v12193_v60  ;;  %v10772_v29 = vpop.f32.mrb[67].mxu1  ;;  %v7383_v31 = vcombine.high %v7238_v44, %v7238_v44 }
0x1219   :  { %v7390_v34 = vrot.slane %v7238_v44, %v12193_v60  ;;  %v7503_v53 = vcombine.low %v7481_v49, %v7488_v38  ;;  %v7469_v11 = vrot.slane %v7455_v52, %v12193_v60 }
0x121a   :  { %v7350_v5 = vcombine.high %v7348_v15, %v7348_v15  ;;  %v7364_v25 = vrot.slane %v7348_v15, %v12193_v60  ;;  %v7371_v54 = vrot.slane %v7349_v47, %v12193_v60  ;;  %v7379_v12 = vcombine.high %v7357_v19, %v7357_v19 }
0x121b   :  { %v7473_v22 = vcombine.low %v7324_v45, %v7357_v19  ;;  %v7397_v23 = vrot.slane %v7383_v31, %v12193_v60  ;;  %v7398_v59 = vcombine.high %v7390_v34, %v7390_v34  ;;  %v7405_v2 = vrot.slane %v7390_v34, %v12193_v60 }
0x121c   :  { %v7378_v9 = vrot.slane %v7350_v5, %v12193_v60  ;;  %v7380_v26 = vcombine.high %v7364_v25, %v7364_v25  ;;  %v7381_v46 = vcombine.high %v7371_v54, %v7371_v54  ;;  %v7474_v51 = vcombine.low %v7371_v54, %v7379_v12 }
0x121d   :  { %v7495_v43 = vrot.slane %v7473_v22, %v12193_v60  ;;  %v7419_v28 = vrot.slane %v7398_v59, %v12193_v60  ;;  %v7420_v32 = vcombine.high %v7405_v2, %v7405_v2  ;;  %v7412_v27 = vrot.slane %v7397_v23, %v12193_v60 }
0x121e   :  { %v7502_v35 = vrot.slane %v7474_v51, %v12193_v60  ;;  %v7520_v18 = vcombine.low %v7381_v46, %v7364_v25  ;;  %v7521_v6 = vcombine.low %v7378_v9, %v7380_v26  ;;  %v7382_v57 = vcombine.high %v7378_v9, %v7378_v9 }
0x121f   :  { %v7421_v1 = vcombine.high %v7419_v28, %v7419_v28  ;;  %v7523_v55 = vcombine.low %v7419_v28, %v7420_v32  ;;  %v7511_v48 = vrot.slane %v7503_v53, %v12193_v60  ;;  %v7470_v24 = vcombine.low %v7462_v20, %v7469_v11 }
0x1220   :  { %v7504_v37 = vcombine.low %v7495_v43, %v7502_v35  ;;  %v7530_v56 = vrot.slane %v7520_v18, %v12193_v60  ;;  %v7537_v33 = vrot.slane %v7521_v6, %v12193_v60  ;;  %v7522_v14 = vcombine.low %v7382_v57, %v7405_v2 }
0x1221   :  { %v7569_v58 = vcombine.low %v7421_v1, %v7412_v27  ;;  %v7551_v62 = vrot.slane %v7523_v55, %v12193_v60 }
0x1222   :  { %v7552_v16 = vcombine.low %v7530_v56, %v7537_v33  ;;  %v7544_v3 = vrot.slane %v7522_v14, %v12193_v60  ;;  %v7518_v40 = vrot.slane %v7504_v37, %v12193_v60 }
0x1223   :  { %v7576_v50 = vrot.slane %v7569_v58, %v12193_v60 }
0x1224   :  { %v7553_v63 = vcombine.low %v7544_v3, %v7551_v62  ;;  %v7519_v8 = vcombine.low %v7511_v48, %v7518_v40  ;;  %v7560_v45 = vrot.slane %v7552_v16, %v12193_v60 }
0x1225   :  { %v7583_v49 = vrot.slane %v7576_v50, %v12193_v60 }
0x1226   :  { %v7588_v17 = vpack.c.bf16 %v7519_v8, %v7470_v24  ;;  %v7567_v44 = vrot.slane %v7553_v63, %v12193_v60 }
0x1228   :  { %10789 = vmatprep.mubr.bf16.mxu0 %v7588_v17  ;;  %v7568_v30 = vcombine.low %v7560_v45, %v7567_v44 }
0x122a   :  { %v7589_v15 = vpack.c.bf16 %v7583_v49, %v7568_v30 }
0x122c   :  { %10790 = vmatmul.mubr.bf16.vlgmr.msra.gmra.mrb[36].mxu0 %v7589_v15 }
0x122d   :  { %8777 = vmatprep.mubr.bf16.mxu0 %v11802_v39 }
0x12ff   :  { %v10791_v47 = vpop.f32.mrb[36].mxu0 }
0x1300   :  { %v7805_v19 = vcombine.high %v10791_v47, %v10791_v47  ;;  %v7812_v29 = vrot.slane %v10791_v47, %v12193_v60  ;;  %v7688_v38 = vpop.f32.mrb[37].mxu0 }
0x1301   :  { %v7707_v31 = vcombine.high %v7688_v38, %v7688_v38  ;;  %v7714_v34 = vrot.slane %v7688_v38, %v12193_v60  ;;  %v10792_v52 = vpop.f32.mrb[38].mxu0 }
0x1302   :  { %v7819_v5 = vrot.slane %v7805_v19, %v12193_v60  ;;  %v7820_v25 = vcombine.high %v7812_v29, %v7812_v29  ;;  %v7860_v54 = vrot.slane %v10792_v52, %v12193_v60  ;;  %v7691_v12 = vpop.f32.mrb[39].mxu0  ;;  %v7828_v2 = vrot.slane %v7812_v29, %v12193_v60 }
0x1303   :  { %v7721_v22 = vrot.slane %v7707_v31, %v12193_v60  ;;  %v7722_v23 = vcombine.high %v7714_v34, %v7714_v34  ;;  %v7730_v46 = vrot.slane %v7714_v34, %v12193_v60  ;;  %v7756_v53 = vcombine.high %v7691_v12, %v7691_v12 }
0x1304   :  { %v7821_v59 = vcombine.high %v7819_v5, %v7819_v5  ;;  %v7835_v9 = vrot.slane %v7819_v5, %v12193_v60  ;;  %v7842_v43 = vrot.slane %v7820_v25, %v12193_v60  ;;  %v7861_v35 = vcombine.high %v7860_v54, %v7860_v54 }
0x1305   :  { %v7723_v26 = vcombine.high %v7721_v22, %v7721_v22  ;;  %v7744_v51 = vrot.slane %v7722_v23, %v12193_v60  ;;  %v7737_v18 = vrot.slane %v7721_v22, %v12193_v60  ;;  %v7850_v1 = vcombine.high %v7828_v2, %v7828_v2 }
0x1306   :  { %v7849_v28 = vrot.slane %v7821_v59, %v12193_v60  ;;  %v7851_v32 = vcombine.high %v7835_v9, %v7835_v9  ;;  %v7868_v37 = vrot.slane %v7860_v54, %v12193_v60  ;;  %v7852_v20 = vcombine.high %v7842_v43, %v7842_v43 }
0x1307   :  { %v7751_v6 = vrot.slane %v7723_v26, %v12193_v60  ;;  %v7876_v57 = vcombine.low %v7730_v46, %v7744_v51  ;;  %v10199_v27 = vcombine.high %v7730_v46, %v7744_v51  ;;  %v7875_v48 = vrot.slane %v7861_v35, %v12193_v60 }
0x1308   :  { %v8013_v55 = vcombine.low %v7849_v28, %v7851_v32  ;;  %v7853_v11 = vcombine.high %v7849_v28, %v7849_v28  ;;  %v7763_v63 = vrot.slane %v7691_v12, %v12193_v60  ;;  %v7770_v17 = vrot.slane %v7756_v53, %v12193_v60 }
0x1309   :  { %v7878_v56 = vcombine.low %v7737_v18, %v7751_v6  ;;  %v10200_v33 = vcombine.high %v7737_v18, %v7751_v6  ;;  %v7886_v14 = vrot.slane %v7876_v57, %v12193_v60  ;;  %v7893_v58 = vrot.slane %v10199_v27, %v12193_v60 }
0x130a   :  { %v8014_v16 = vcombine.low %v7853_v11, %v7868_v37  ;;  %v8021_v50 = vrot.slane %v8013_v55, %v12193_v60  ;;  %v8035_v8 = vrot.slane %v7875_v48, %v12193_v60  ;;  %v7966_v45 = vcombine.low %v7842_v43, %v7850_v1 }
0x130b   :  { %v7900_v3 = vrot.slane %v7878_v56, %v12193_v60  ;;  %v7907_v62 = vrot.slane %v10200_v33, %v12193_v60  ;;  %v7908_v40 = vcombine.low %v7886_v14, %v7893_v58  ;;  %v7771_v44 = vcombine.high %v7763_v63, %v7763_v63 }
0x130c   :  { %v8028_v24 = vrot.slane %v8014_v16, %v12193_v60  ;;  %v7967_v49 = vcombine.low %v7852_v20, %v7835_v9  ;;  %v7772_v47 = vcombine.high %v7770_v17, %v7770_v17  ;;  %v7786_v19 = vrot.slane %v7770_v17, %v12193_v60 }
0x130d   :  { %v7909_v30 = vcombine.low %v7900_v3, %v7907_v62  ;;  %v7779_v29 = vrot.slane %v7763_v63, %v12193_v60  ;;  %v7793_v38 = vrot.slane %v7771_v44, %v12193_v60  ;;  %v7916_v31 = vrot.slane %v7908_v40, %v12193_v60 }
0x130e   :  { %v8036_v15 = vcombine.low %v8021_v50, %v8028_v24  ;;  %v8050_v52 = vrot.slane %v8035_v8, %v12193_v60  ;;  %v7800_v5 = vrot.slane %v7772_v47, %v12193_v60  ;;  %v7802_v25 = vcombine.high %v7786_v19, %v7786_v19 }
0x130f   :  { %v7923_v34 = vrot.slane %v7909_v30, %v12193_v60  ;;  %v7925_v12 = vcombine.low %v7779_v29, %v7793_v38  ;;  %v10201_v22 = vcombine.high %v7779_v29, %v7793_v38  ;;  %v7995_v59 = vrot.slane %v7967_v49, %v12193_v60  ;;  %v11071_v29 = vld [vmem:[#allocation27 + $0xc] ss:$16 sps:$4 sm:$0xff]   ;;  %v11066_v38 = vld [vmem:[#allocation27] ss:$16 sps:$4 sm:$0xff]  }
0x1310   :  { %v8043_v54 = vrot.slane %v8036_v15, %v12193_v60  ;;  %v7804_v9 = vcombine.high %v7800_v5, %v7800_v5  ;;  %v7964_v26 = vcombine.low %v7800_v5, %v7802_v25  ;;  %v7947_v43 = vrot.slane %v7786_v19, %v12193_v60  ;;  %v11068_v19 = vld [vmem:[#allocation27 + $0x4] ss:$16 sps:$4 sm:$0xff]   ;;  %8745 = vmatprep.subr.bf16.mxu0 %v11071_v29  ;;  %v11072_v5 = vld [vmem:[#allocation27 + $0x20] ss:$16 sps:$4 sm:$0xff]   ;;  %v11075_v25 = vld [vmem:[#allocation27 + $0x28] ss:$16 sps:$4 sm:$0xff]  }
0x1311   :  { %v7924_v23 = vcombine.low %v7916_v31, %v7923_v34  ;;  %v7933_v51 = vrot.slane %v7925_v12, %v12193_v60  ;;  %v7940_v53 = vrot.slane %v10201_v22, %v12193_v60  ;;  %v7988_v32 = vrot.slane %v7966_v45, %v12193_v60  ;;  %v11069_v31 = vld [vmem:[#allocation27 + $0x8] ss:$16 sps:$4 sm:$0xff]   ;;  %8692 = vmatprep.subr.bf16.mxu1 %v11068_v19  ;;  %v11074_v34 = vld [vmem:[#allocation27 + $0x24] ss:$16 sps:$4 sm:$0xff]   ;;  %v11083_v12 = vld [vmem:[#allocation27 + $0x4c] ss:$16 sps:$4 sm:$0xff]  }
0x1312   :  { %v8051_v46 = vcombine.low %v8043_v54, %v8050_v52  ;;  %v7965_v35 = vcombine.low %v7804_v9, %v7828_v2  ;;  %v7974_v6 = vrot.slane %v7964_v26, %v12193_v60  ;;  %v7962_v55 = vrot.slane %v7947_v43, %v12193_v60  ;;  %8693 = vmatpush1.bf16.msra.mxu1 %v11066_v38  ;;  %v11077_v52 = vld [vmem:[#allocation27 + $0x2c] ss:$16 sps:$4 sm:$0xff]   ;;  %v11080_v54 = vld [vmem:[#allocation27 + $0x44] ss:$16 sps:$4 sm:$0xff]   ;;  %v11078_v22 = vld [vmem:[#allocation27 + $0x40] ss:$16 sps:$4 sm:$0xff]  }
0x1313   :  { %v13276_v28 = vadd.f32 %v7924_v23, %v12829_v41  ;;  %v7948_v18 = vcombine.low %v7933_v51, %v7940_v53  ;;  %v7997_v27 = vcombine.low %v7988_v32, %v7995_v59  ;;  %8746 = vmatpush1.bf16.msra.mxu0 %v11069_v31  ;;  %8694 = vmatprep.subr.bf16.mxu1 %v11074_v34  ;;  %v11081_v23 = vld [vmem:[#allocation27 + $0x48] ss:$16 sps:$4 sm:$0xff]   ;;  %v11086_v59 = vld [vmem:[#allocation27 + $0x64] ss:$16 sps:$4 sm:$0xff]   ;;  %v11089_v9 = vld [vmem:[#allocation27 + $0x6c] ss:$16 sps:$4 sm:$0xff]  }
0x1314   :  { %v7981_v57 = vrot.slane %v7965_v35, %v12193_v60  ;;  %v13292_v58 = vadd.f32 %v8051_v46, %v12865_v10  ;;  %8747 = vmatprep.subr.bf16.mxu0 %v11077_v52  ;;  %v11084_v26 = vld [vmem:[#allocation27 + $0x60] ss:$16 sps:$4 sm:$0xff]   ;;  %v11087_v46 = vld [vmem:[#allocation27 + $0x68] ss:$16 sps:$4 sm:$0xff]   ;;  %v11092_v51 = vld [vmem:[#allocation27 + $0x84] ss:$16 sps:$4 sm:$0xff]  }
0x1315   :  { %8062 = vadd.xlane.f32.xlu0 %v13276_v28  ;;  %v7955_v1 = vrot.slane %v7948_v18, %v12193_v60  ;;  %v8011_v56 = vrot.slane %v7997_v27, %v12193_v60  ;;  %v11090_v53 = vld [vmem:[#allocation27 + $0x80] ss:$16 sps:$4 sm:$0xff]   ;;  %v11093_v43 = vld [vmem:[#allocation27 + $0x88] ss:$16 sps:$4 sm:$0xff]   ;;  %v11095_v32 = vld [vmem:[#allocation27 + $0x8c] ss:$16 sps:$4 sm:$0xff]  }
0x1316   :  { %v7996_v11 = vcombine.low %v7974_v6, %v7981_v57  ;;  %v8069_v48 = vsel %vm717_vm3, %v13292_v58, 0.0  ;;  %8695 = vmatpush1.bf16.msra.mxu1 %v11072_v5  ;;  %v11098_v35 = vld [vmem:[#allocation27 + $0xa4] ss:$16 sps:$4 sm:$0xff]   ;;  %v11101_v18 = vld [vmem:[#allocation27 + $0xac] ss:$16 sps:$4 sm:$0xff]  }
0x1317   :  { %v7963_v37 = vcombine.low %v7955_v1, %v7962_v55  ;;  %8748 = vmatpush1.bf16.msra.mxu0 %v11075_v25  ;;  %8696 = vmatprep.subr.bf16.mxu1 %v11080_v54  ;;  %v11096_v6 = vld [vmem:[#allocation27 + $0xa0] ss:$16 sps:$4 sm:$0xff]   ;;  %v11099_v57 = vld [vmem:[#allocation27 + $0xa8] ss:$16 sps:$4 sm:$0xff]   ;;  %v11104_v27 = vld [vmem:[#allocation27 + $0xc4] ss:$16 sps:$4 sm:$0xff]  }
0x1318   :  { %v8004_v41 = vrot.slane %v7996_v11, %v12193_v60  ;;  %8749 = vmatprep.subr.bf16.mxu0 %v11083_v12  ;;  %v11107_v1 = vld [vmem:[#allocation27 + $0xcc] ss:$16 sps:$4 sm:$0xff]   ;;  %v11102_v55 = vld [vmem:[#allocation27 + $0xc0] ss:$16 sps:$4 sm:$0xff]   ;;  %v11105_v11 = vld [vmem:[#allocation27 + $0xc8] ss:$16 sps:$4 sm:$0xff]  }
0x1319   :  { %v13287_v2 = vadd.f32 %v7963_v37, %v12861_v61  ;;  %v11110_v37 = vld [vmem:[#allocation27 + $0xe4] ss:$16 sps:$4 sm:$0xff]  }
0x131a   :  { %v8012_v33 = vcombine.low %v8004_v41, %v8011_v56  ;;  %8697 = vmatpush1.bf16.msra.mxu1 %v11078_v22  ;;  %v11113_v41 = vld [vmem:[#allocation27 + $0xec] ss:$16 sps:$4 sm:$0xff]   ;;  %v11108_v56 = vld [vmem:[#allocation27 + $0xe0] ss:$16 sps:$4 sm:$0xff]  }
0x131b   :  { %v8064_v14 = vsel %vm717_vm3, %v13287_v2, 0.0  ;;  %8750 = vmatpush1.bf16.msra.mxu0 %v11081_v23  ;;  %8698 = vmatprep.subr.bf16.mxu1 %v11086_v59 }
0x131c   :  { %8065 = vadd.xlane.f32.xlu1 %v8064_v14  ;;  %v13295_v20 = vadd.f32 %v8012_v33, %v12858_v42  ;;  %8751 = vmatprep.subr.bf16.mxu0 %v11089_v9  ;;  %v11111_v33 = vld [vmem:[#allocation27 + $0xe8] ss:$16 sps:$4 sm:$0xff]  }
0x131e   :  { %8067 = vadd.xlane.f32.xlu0 %v13295_v20  ;;  %8699 = vmatpush1.bf16.msra.mxu1 %v11084_v26 }
0x131f   :  { %8752 = vmatpush1.bf16.msra.mxu0 %v11087_v46  ;;  %8700 = vmatprep.subr.bf16.mxu1 %v11092_v51 }
0x1320   :  { %8070 = vadd.xlane.f32.xlu1 %v8069_v48  ;;  %8753 = vmatprep.subr.bf16.mxu0 %v11095_v32 }
0x1322   :  { %8701 = vmatpush1.bf16.msra.mxu1 %v11090_v53 }
0x1323   :  { %8754 = vmatpush1.bf16.msra.mxu0 %v11093_v43  ;;  %8702 = vmatprep.subr.bf16.mxu1 %v11098_v35 }
0x1324   :  { %8755 = vmatprep.subr.bf16.mxu0 %v11101_v18 }
0x1326   :  { %8703 = vmatpush1.bf16.msra.mxu1 %v11096_v6 }
0x1327   :  { %8756 = vmatpush1.bf16.msra.mxu0 %v11099_v57  ;;  %8704 = vmatprep.subr.bf16.mxu1 %v11104_v27 }
0x1328   :  { %8757 = vmatprep.subr.bf16.mxu0 %v11107_v1 }
0x132a   :  { %8705 = vmatpush1.bf16.msra.mxu1 %v11102_v55 }
0x132b   :  { %8758 = vmatpush1.bf16.msra.mxu0 %v11105_v11  ;;  %8706 = vmatprep.subr.bf16.mxu1 %v11110_v37 }
0x132c   :  { %8759 = vmatprep.subr.bf16.mxu0 %v11113_v41 }
0x132e   :  { %8707 = vmatpush1.bf16.msra.mxu1 %v11108_v56 }
0x132f   :  { %8760 = vmatpush1.bf16.msra.mxu0 %v11111_v33 }
0x13a2   :  { %v8063_v16 = vpop.xlane.xlu0 %8062 }
0x13a3   :  { %v8072_v61 = vmul.f32 0.0078125, %v8063_v16 }
0x13a5   :  { %v13301_v3 = vsub.f32 %v13276_v28, %v8072_v61 }
0x13a7   :  { %v8080_v62 = vmul.f32 %v13301_v3, %v13301_v3 }
0x13a9   :  { %8084 = vadd.xlane.f32.xlu0 %v8080_v62  ;;  %v8066_v10 = vpop.xlane.xlu1 %8065 }
0x13aa   :  { %v8073_v40 = vmul.f32 0.0078125, %v8066_v10 }
0x13ab   :  { %v8068_v63 = vpop.xlane.xlu0 %8067 }
0x13ac   :  { %v13306_v42 = vsub.f32 %v13287_v2, %v8073_v40  ;;  %v8074_v50 = vmul.f32 0.0078125, %v8068_v63 }
0x13ad   :  { %v8071_v24 = vpop.xlane.xlu1 %8070 }
0x13ae   :  { %v13309_v8 = vsub.f32 %v13295_v20, %v8074_v50  ;;  %v8075_v17 = vmul.f32 0.0078125, %v8071_v24  ;;  %v8081_v45 = vmul.f32 %v13306_v42, %v13306_v42 }
0x13b0   :  { %v13314_v44 = vsub.f32 %v13292_v58, %v8075_v17  ;;  %v8086_v30 = vsel %vm717_vm3, %v8081_v45, 0.0  ;;  %v8082_v49 = vmul.f32 %v13309_v8, %v13309_v8  ;;  %v10202_v45 = vld [vmem:[%s13658_s15] ss:$0 sm:$0xff] }
0x13b1   :  { %8087 = vadd.xlane.f32.xlu1 %v8086_v30 }
0x13b2   :  { %8089 = vadd.xlane.f32.xlu0 %v8082_v49  ;;  %v8083_v15 = vmul.f32 %v13314_v44, %v13314_v44 }
0x13b4   :  { %v8091_v47 = vsel %vm717_vm3, %v8083_v15, 0.0  ;;  %v10203_v15 = vld [vmem:[%s13659_s16] ss:$0 sm:$0xff] }
0x13b5   :  { %8092 = vadd.xlane.f32.xlu1 %v8091_v47 }
0x1436   :  { %v8085_v14 = vpop.xlane.xlu0 %8084 }
0x1437   :  { %v8094_v48 = vmul.f32 0.0078125, %v8085_v14 }
0x1439   :  { %v8098_v16 = vadd.f32 1e-05, %v8094_v48 }
0x143b   :  { %11251 = vrsqrt.f32 %v8098_v16 }
0x143e   :  { %v8088_v61 = vpop.xlane.xlu1 %8087 }
0x143f   :  { %v8095_v62 = vmul.f32 0.0078125, %v8088_v61  ;;  %v8090_v10 = vpop.xlane.xlu0 %8089 }
0x1440   :  { %v8096_v40 = vmul.f32 0.0078125, %v8090_v10 }
0x1441   :  { %v8099_v63 = vadd.f32 1e-05, %v8095_v62 }
0x1442   :  { %v8100_v50 = vadd.f32 1e-05, %v8096_v40  ;;  %v8093_v24 = vpop.xlane.xlu1 %8092 }
0x1443   :  { %11253 = vrsqrt.f32 %v8099_v63  ;;  %v8097_v30 = vmul.f32 0.0078125, %v8093_v24 }
0x1444   :  { %11255 = vrsqrt.f32 %v8100_v50 }
0x1445   :  { %v11252_v17 = vpop.eup %11251  ;;  %v8101_v47 = vadd.f32 1e-05, %v8097_v30 }
0x1446   :  { %v8106_v49 = vmul.f32 %v11252_v17, %v13301_v3 }
0x1447   :  { %11257 = vrsqrt.f32 %v8101_v47 }
0x1448   :  { %v8116_v19 = vmul.f32 %v10202_v45, %v8106_v49 }
0x144a   :  { %v8126_v29 = vadd.f32 %v10203_v15, %v8116_v19 }
0x144c   :  { %v8134_v38 = vcombine.high %v8126_v29, %v8126_v29  ;;  %v8141_v31 = vrot.slane %v8126_v29, %v12193_v60 }
0x144d   :  { %v11254_v5 = vpop.eup %11253 }
0x144e   :  { %v8148_v34 = vrot.slane %v8134_v38, %v12193_v60  ;;  %v8149_v52 = vcombine.high %v8141_v31, %v8141_v31  ;;  %v11256_v25 = vpop.eup %11255  ;;  %v8107_v54 = vmul.f32 %v11254_v5, %v13306_v42  ;;  %v8157_v22 = vrot.slane %v8141_v31, %v12193_v60 }
0x144f   :  { %v8108_v23 = vmul.f32 %v11256_v25, %v13309_v8 }
0x1450   :  { %v8150_v12 = vcombine.high %v8148_v34, %v8148_v34  ;;  %v8171_v3 = vrot.slane %v8149_v52, %v12193_v60  ;;  %v8164_v59 = vrot.slane %v8148_v34, %v12193_v60  ;;  %v8117_v9 = vmul.f32 %v10202_v45, %v8107_v54 }
0x1451   :  { %v11258_v53 = vpop.eup %11257  ;;  %v8118_v43 = vmul.f32 %v10202_v45, %v8108_v23 }
0x1452   :  { %v8178_v26 = vrot.slane %v8150_v12, %v12193_v60  ;;  %v8310_v46 = vcombine.low %v8157_v22, %v8171_v3  ;;  %v10204_v51 = vcombine.high %v8157_v22, %v8171_v3  ;;  %v8127_v32 = vadd.f32 %v10203_v15, %v8117_v9 }
0x1453   :  { %v8109_v35 = vmul.f32 %v11258_v53, %v13314_v44  ;;  %v8128_v6 = vadd.f32 %v10203_v15, %v8118_v43 }
0x1454   :  { %v8312_v42 = vcombine.low %v8164_v59, %v8178_v26  ;;  %v10205_v18 = vcombine.high %v8164_v59, %v8178_v26  ;;  %v8320_v57 = vrot.slane %v8310_v46, %v12193_v60  ;;  %v8327_v27 = vrot.slane %v10204_v51, %v12193_v60 }
0x1455   :  { %v8183_v8 = vcombine.high %v8127_v32, %v8127_v32  ;;  %v8190_v1 = vrot.slane %v8127_v32, %v12193_v60  ;;  %v8119_v55 = vmul.f32 %v10202_v45, %v8109_v35  ;;  %v8222_v37 = vcombine.high %v8128_v6, %v8128_v6 }
0x1456   :  { %v8334_v11 = vrot.slane %v8312_v42, %v12193_v60  ;;  %v8229_v41 = vrot.slane %v8128_v6, %v12193_v60  ;;  %v8341_v56 = vrot.slane %v10205_v18, %v12193_v60  ;;  %v8342_v62 = vcombine.low %v8320_v57, %v8327_v27 }
0x1457   :  { %v8197_v44 = vrot.slane %v8183_v8, %v12193_v60  ;;  %v8198_v33 = vcombine.high %v8190_v1, %v8190_v1  ;;  %v8129_v14 = vadd.f32 %v10203_v15, %v8119_v55  ;;  %v8205_v16 = vrot.slane %v8190_v1, %v12193_v60 }
0x1458   :  { %v8237_v48 = vcombine.high %v8229_v41, %v8229_v41  ;;  %v8245_v61 = vrot.slane %v8229_v41, %v12193_v60  ;;  %v8343_v63 = vcombine.low %v8334_v11, %v8341_v56  ;;  %v8236_v50 = vrot.slane %v8222_v37, %v12193_v60 }
0x1459   :  { %v8212_v10 = vrot.slane %v8197_v44, %v12193_v60  ;;  %v8219_v40 = vrot.slane %v8198_v33, %v12193_v60  ;;  %v8278_v24 = vrot.slane %v8129_v14, %v12193_v60  ;;  %v8271_v30 = vcombine.high %v8129_v14, %v8129_v14 }
0x145a   :  { %v8259_v17 = vrot.slane %v8237_v48, %v12193_v60  ;;  %v8267_v45 = vcombine.high %v8245_v61, %v8245_v61  ;;  %v8238_v19 = vcombine.high %v8236_v50, %v8236_v50  ;;  %v8350_v29 = vrot.slane %v8342_v62, %v12193_v60 }
0x145b   :  { %v8359_v49 = vcombine.low %v8205_v16, %v8219_v40  ;;  %v10206_v15 = vcombine.high %v8205_v16, %v8219_v40  ;;  %v8361_v47 = vcombine.low %v8212_v10, %v8245_v61  ;;  %v8252_v31 = vrot.slane %v8236_v50, %v12193_v60  ;;  %v11114_v50 = vld [vmem:[#allocation29 + $0x40] sm:$0xff]  }
0x145c   :  { %v8362_v38 = vcombine.low %v8259_v17, %v8267_v45  ;;  %v8269_v34 = vcombine.high %v8259_v17, %v8259_v17  ;;  %v8266_v54 = vrot.slane %v8238_v19, %v12193_v60  ;;  %v8285_v3 = vrot.slane %v8271_v30, %v12193_v60  ;;  %v11116_v17 = vld [vmem:[#allocation29] sm:$0xff]   ;;  %10465 = vmatprep.subr.bf16.mxu1 %v11114_v50  ;;  %v11118_v30 = vld [vmem:[#allocation29 + $0x48] sm:$0xff]   ;;  %v11123_v19 = vld [vmem:[#allocation29 + $0xd0] sm:$0xff]  }
0x145d   :  { %v8369_v52 = vrot.slane %v8359_v49, %v12193_v60  ;;  %v8376_v5 = vrot.slane %v10206_v15, %v12193_v60  ;;  %v8383_v25 = vrot.slane %v8361_v47, %v12193_v60  ;;  %v8268_v22 = vcombine.high %v8252_v31, %v8252_v31  ;;  %v11117_v45 = vld [vmem:[#allocation29 + $0x80] sm:$0xff]   ;;  %v11120_v49 = vld [vmem:[#allocation29 + $0x8] sm:$0xff]   ;;  %v11122_v47 = vld [vmem:[#allocation29 + $0x50] sm:$0xff]  }
0x145e   :  { %v8390_v12 = vrot.slane %v8362_v38, %v12193_v60  ;;  %v8286_v23 = vcombine.high %v8278_v24, %v8278_v24  ;;  %v8270_v9 = vcombine.high %v8266_v54, %v8266_v54  ;;  %v8293_v26 = vrot.slane %v8278_v24, %v12193_v60  ;;  %v11115_v24 = vld [vmem:[#allocation29 + $0xc0] sm:$0xff]   ;;  %v11121_v15 = vld [vmem:[#allocation29 + $0x88] sm:$0xff]   ;;  %v11125_v38 = vld [vmem:[#allocation29 + $0x90] sm:$0xff]  }
0x145f   :  { %v8391_v59 = vcombine.low %v8369_v52, %v8376_v5  ;;  %v8408_v46 = vcombine.low %v8269_v34, %v8252_v31  ;;  %v8357_v51 = vrot.slane %v8343_v63, %v12193_v60  ;;  %v8409_v32 = vcombine.low %v8266_v54, %v8268_v22  ;;  %10493 = vmatprep.subr.bf16.mxu0 %v11115_v24  ;;  %v11126_v31 = vld [vmem:[#allocation29 + $0x58] sm:$0xff]   ;;  %v11131_v54 = vld [vmem:[#allocation29 + $0xe0] sm:$0xff]  }
0x1460   :  { %v8392_v53 = vcombine.low %v8383_v25, %v8390_v12  ;;  %v8307_v43 = vrot.slane %v8286_v23, %v12193_v60  ;;  %v8300_v35 = vrot.slane %v8285_v3, %v12193_v60  ;;  %v8308_v42 = vcombine.high %v8293_v26, %v8293_v26  ;;  %v11127_v34 = vld [vmem:[#allocation29 + $0xd8] sm:$0xff]   ;;  %v11130_v25 = vld [vmem:[#allocation29 + $0x60] sm:$0xff]   ;;  %v11134_v3 = vld [vmem:[#allocation29 + $0x68] sm:$0xff]  }
0x1461   :  { %v8410_v18 = vcombine.low %v8270_v9, %v8293_v26  ;;  %v8418_v6 = vrot.slane %v8408_v46, %v12193_v60  ;;  %v8399_v57 = vrot.slane %v8391_v59, %v12193_v60  ;;  %v8425_v1 = vrot.slane %v8409_v32, %v12193_v60  ;;  %v11128_v52 = vld [vmem:[#allocation29 + $0x18] sm:$0xff]   ;;  %v11132_v12 = vld [vmem:[#allocation29 + $0x20] sm:$0xff]   ;;  %v11135_v23 = vld [vmem:[#allocation29 + $0xe8] sm:$0xff]  }
0x1462   :  { %v8406_v27 = vrot.slane %v8392_v53, %v12193_v60  ;;  %v8309_v8 = vcombine.high %v8307_v43, %v8307_v43  ;;  %v8411_v55 = vcombine.low %v8307_v43, %v8308_v42  ;;  %v8358_v37 = vcombine.low %v8350_v29, %v8357_v51  ;;  %v11124_v29 = vld [vmem:[#allocation29 + $0x10] sm:$0xff]   ;;  %v11129_v5 = vld [vmem:[#allocation29 + $0x98] sm:$0xff]   ;;  %v11133_v22 = vld [vmem:[#allocation29 + $0xa0] sm:$0xff]  }
0x1463   :  { %v8432_v11 = vrot.slane %v8410_v18, %v12193_v60  ;;  %v8440_v33 = vcombine.low %v8418_v6, %v8425_v1  ;;  %v11136_v59 = vld [vmem:[#allocation29 + $0x28] sm:$0xff]   ;;  %v11138_v26 = vld [vmem:[#allocation29 + $0x70] sm:$0xff]   ;;  %v11142_v43 = vld [vmem:[#allocation29 + $0x78] sm:$0xff]  }
0x1464   :  { %v8407_v41 = vcombine.low %v8399_v57, %v8406_v27  ;;  %v8457_v56 = vcombine.low %v8309_v8, %v8300_v35  ;;  %v8439_v44 = vrot.slane %v8411_v55, %v12193_v60  ;;  %v11137_v9 = vld [vmem:[#allocation29 + $0xa8] sm:$0xff]   ;;  %v11139_v46 = vld [vmem:[#allocation29 + $0xf0] sm:$0xff]   ;;  %v11143_v32 = vld [vmem:[#allocation29 + $0xf8] sm:$0xff]  }
0x1465   :  { %v8448_v61 = vrot.slane %v8440_v33, %v12193_v60  ;;  %v11140_v51 = vld [vmem:[#allocation29 + $0x30] sm:$0xff]   ;;  %v11144_v35 = vld [vmem:[#allocation29 + $0x38] sm:$0xff]  }
0x1466   :  { %v8476_v14 = vpack.c.bf16 %v8407_v41, %v8358_v37  ;;  %v8441_v48 = vcombine.low %v8432_v11, %v8439_v44  ;;  %v8464_v16 = vrot.slane %v8457_v56, %v12193_v60  ;;  %v11141_v53 = vld [vmem:[#allocation29 + $0xb0] sm:$0xff]   ;;  %v11145_v42 = vld [vmem:[#allocation29 + $0xb8] sm:$0xff]  }
0x1467   :  { %v8510_v18 = vld [vmem:[%s13660_s4] sm:$0xf] }
0x1468   :  { %8725 = vmatmul.mubr.bf16.vlgmr.msra.gmra.mrb[68].mxu1 %v8476_v14  ;;  %8778 = vmatmul.mubr.bf16.vlgmr.msra.gmra.mrb[40].mxu0 %v8476_v14  ;;  %v8455_v62 = vrot.slane %v8441_v48, %v12193_v60  ;;  %v8471_v40 = vrot.slane %v8464_v16, %v12193_v60  ;;  %v13376_v6 = vrot.slane %v8510_v18, %v12147_v21 }
0x1469   :  { %8734 = vmatprep.mubr.bf16.mxu1 %v11802_v39  ;;  %8787 = vmatprep.mubr.bf16.mxu0 %v11802_v39  ;;  %v11119_v39 = vld [vmem:[#allocation29 + $0xc8] sm:$0xff]   ;;  %v13380_v57 = vrot.slane %v8510_v18, %v4048_v7  ;;  %v13384_v27 = vrot.slane %v8510_v18, %v4044_v36  ;;  %v13388_v8 = vrot.slane %v8510_v18, %v4052_v13 }
0x146a   :  { %v8456_v10 = vcombine.low %v8448_v61, %v8455_v62  ;;  %10466 = vmatpush3.bf16.msra.mxu1 %v11116_v17  ;;  %10494 = vmatpush3.bf16.msra.mxu0 %v11117_v45 }
0x146b   :  { %10467 = vmatprep.subr.bf16.mxu1 %v11118_v30  ;;  %10495 = vmatprep.subr.bf16.mxu0 %v11119_v39 }
0x146c   :  { %v8477_v63 = vpack.c.bf16 %v8471_v40, %v8456_v10 }
0x146e   :  { %10468 = vmatpush3.bf16.msra.mxu1 %v11120_v49  ;;  %10496 = vmatpush3.bf16.msra.mxu0 %v11121_v15 }
0x146f   :  { %10469 = vmatprep.subr.bf16.mxu1 %v11122_v47  ;;  %10497 = vmatprep.subr.bf16.mxu0 %v11123_v19 }
0x1470   :  { %8735 = vmatmul.mubr.bf16.gmra.mrb[72].mxu1 %v8477_v63  ;;  %8788 = vmatmul.mubr.bf16.gmra.mrb[44].mxu0 %v8477_v63 }
0x1472   :  { %10470 = vmatpush3.bf16.msra.mxu1 %v11124_v29  ;;  %10498 = vmatpush3.bf16.msra.mxu0 %v11125_v38 }
0x1473   :  { %10471 = vmatprep.subr.bf16.mxu1 %v11126_v31  ;;  %10499 = vmatprep.subr.bf16.mxu0 %v11127_v34 }
0x1476   :  { %10472 = vmatpush3.bf16.msra.mxu1 %v11128_v52  ;;  %10500 = vmatpush3.bf16.msra.mxu0 %v11129_v5 }
0x1477   :  { %10473 = vmatprep.subr.bf16.mxu1 %v11130_v25  ;;  %10501 = vmatprep.subr.bf16.mxu0 %v11131_v54 }
0x147a   :  { %10474 = vmatpush3.bf16.msra.mxu1 %v11132_v12  ;;  %10502 = vmatpush3.bf16.msra.mxu0 %v11133_v22 }
0x147b   :  { %10475 = vmatprep.subr.bf16.mxu1 %v11134_v3  ;;  %10503 = vmatprep.subr.bf16.mxu0 %v11135_v23 }
0x147e   :  { %10476 = vmatpush3.bf16.msra.mxu1 %v11136_v59  ;;  %10504 = vmatpush3.bf16.msra.mxu0 %v11137_v9 }
0x147f   :  { %10477 = vmatprep.subr.bf16.mxu1 %v11138_v26  ;;  %10505 = vmatprep.subr.bf16.mxu0 %v11139_v46 }
0x1482   :  { %10478 = vmatpush3.bf16.msra.mxu1 %v11140_v51  ;;  %10506 = vmatpush3.bf16.msra.mxu0 %v11141_v53 }
0x1483   :  { %10479 = vmatprep.subr.bf16.mxu1 %v11142_v43  ;;  %10507 = vmatprep.subr.bf16.mxu0 %v11143_v32 }
0x1486   :  { %10480 = vmatpush3.bf16.msra.mxu1 %v11144_v35  ;;  %10508 = vmatpush3.bf16.msra.mxu0 %v11145_v42 }
0x1487   :  { %10793 = vmatprep.subr.bf16.mxu1 %v11797_v0  ;;  %10813 = vmatprep.subr.bf16.mxu0 %v11797_v0 }
0x153b   :  { %v8726_v1 = vpop.f32.mrb[68].mxu1  ;;  %v8779_v55 = vpop.f32.mrb[40].mxu0 }
0x153c   :  { %v13391_v11 = vadd.f32 %v8726_v1, %v13376_v6  ;;  %v13394_v21 = vadd.f32 %v8779_v55, %v13380_v57  ;;  %v8728_v37 = vpop.f32.mrb[69].mxu1  ;;  %v8781_v41 = vpop.f32.mrb[41].mxu0 }
0x153d   :  { %v13397_v7 = vadd.f32 %v8728_v37, %v13384_v27  ;;  %v13400_v36 = vadd.f32 %v8781_v41, %v13388_v8  ;;  %v8730_v56 = vpop.f32.mrb[70].mxu1  ;;  %v8783_v4 = vpop.f32.mrb[42].mxu0 }
0x153e   :  { %v8798_v13 = vmul.f32 %v13391_v11, %v13391_v11  ;;  %v8800_v44 = vmul.f32 %v13394_v21, %v13394_v21  ;;  %v13407_v33 = vadd.f32 %v8730_v56, %v13376_v6  ;;  %v13410_v14 = vadd.f32 %v8783_v4, %v13380_v57  ;;  %v8732_v48 = vpop.f32.mrb[71].mxu1  ;;  %v8785_v16 = vpop.f32.mrb[43].mxu0 }
0x153f   :  { %v8799_v61 = vmul.f32 %v13397_v7, %v13397_v7  ;;  %v8801_v62 = vmul.f32 %v13400_v36, %v13400_v36  ;;  %v13417_v10 = vadd.f32 %v8732_v48, %v13384_v27  ;;  %v13420_v40 = vadd.f32 %v8785_v16, %v13388_v8 }
0x1540   :  { %v8814_v63 = vmul.f32 %v8798_v13, %v13391_v11  ;;  %v8816_v50 = vmul.f32 %v8800_v44, %v13394_v21  ;;  %v8802_v24 = vmul.f32 %v13407_v33, %v13407_v33  ;;  %v8804_v17 = vmul.f32 %v13410_v14, %v13410_v14 }
0x1541   :  { %v8815_v45 = vmul.f32 %v8799_v61, %v13397_v7  ;;  %v8817_v30 = vmul.f32 %v8801_v62, %v13400_v36  ;;  %v8803_v39 = vmul.f32 %v13417_v10, %v13417_v10  ;;  %v8805_v49 = vmul.f32 %v13420_v40, %v13420_v40 }
0x1542   :  { %v8830_v15 = vmul.f32 0.044715, %v8814_v63  ;;  %v8832_v47 = vmul.f32 0.044715, %v8816_v50  ;;  %v8818_v19 = vmul.f32 %v8802_v24, %v13407_v33  ;;  %v8820_v29 = vmul.f32 %v8804_v17, %v13410_v14 }
0x1543   :  { %v8831_v38 = vmul.f32 0.044715, %v8815_v45  ;;  %v8833_v31 = vmul.f32 0.044715, %v8817_v30  ;;  %v8819_v34 = vmul.f32 %v8803_v39, %v13417_v10  ;;  %v8821_v52 = vmul.f32 %v8805_v49, %v13420_v40  ;;  %v8736_v5 = vpop.f32.mrb[72].mxu1  ;;  %v8789_v25 = vpop.f32.mrb[44].mxu0 }
0x1544   :  { %v8846_v54 = vadd.f32 %v8830_v15, %v13391_v11  ;;  %v8848_v12 = vadd.f32 %v8832_v47, %v13394_v21  ;;  %v8834_v22 = vmul.f32 0.044715, %v8818_v19  ;;  %v8836_v3 = vmul.f32 0.044715, %v8820_v29  ;;  %v8738_v23 = vpop.f32.mrb[73].mxu1  ;;  %v8791_v59 = vpop.f32.mrb[45].mxu0 }
0x1545   :  { %v8847_v9 = vadd.f32 %v8831_v38, %v13397_v7  ;;  %v8849_v26 = vadd.f32 %v8833_v31, %v13400_v36  ;;  %v8835_v46 = vmul.f32 0.044715, %v8819_v34  ;;  %v8837_v51 = vmul.f32 0.044715, %v8821_v52  ;;  %v8740_v53 = vpop.f32.mrb[74].mxu1  ;;  %v8793_v43 = vpop.f32.mrb[46].mxu0 }
0x1546   :  { %v8862_v32 = vmul.f32 0.7978846, %v8846_v54  ;;  %v8864_v35 = vmul.f32 0.7978846, %v8848_v12  ;;  %v8850_v42 = vadd.f32 %v8834_v22, %v13407_v33  ;;  %v8852_v18 = vadd.f32 %v8836_v3, %v13410_v14  ;;  %v8742_v1 = vpop.f32.mrb[75].mxu1  ;;  %v8795_v55 = vpop.f32.mrb[47].mxu0 }
0x1547   :  { %v8863_v37 = vmul.f32 0.7978846, %v8847_v9  ;;  %v8865_v41 = vmul.f32 0.7978846, %v8849_v26  ;;  %v8851_v56 = vadd.f32 %v8835_v46, %v13417_v10  ;;  %v8853_v4 = vadd.f32 %v8837_v51, %v13420_v40 }
0x1548   :  { %11259 = vtanh.f32 %v8862_v32  ;;  %v8866_v13 = vmul.f32 0.7978846, %v8850_v42  ;;  %v8868_v44 = vmul.f32 0.7978846, %v8852_v18  ;;  %v13447_v48 = vadd.f32 %v8736_v5, %v13376_v6 }
0x1549   :  { %11261 = vtanh.f32 %v8864_v35  ;;  %v8867_v16 = vmul.f32 0.7978846, %v8851_v56  ;;  %v8869_v61 = vmul.f32 0.7978846, %v8853_v4  ;;  %v13450_v62 = vadd.f32 %v8789_v25, %v13380_v57 }
0x154a   :  { %11263 = vtanh.f32 %v8863_v37  ;;  %v8806_v63 = vmul.f32 %v13447_v48, %v13447_v48  ;;  %v13455_v50 = vadd.f32 %v8738_v23, %v13384_v27  ;;  %v13458_v24 = vadd.f32 %v8791_v59, %v13388_v8 }
0x154b   :  { %11265 = vtanh.f32 %v8865_v41  ;;  %v8808_v17 = vmul.f32 %v13450_v62, %v13450_v62  ;;  %v13463_v45 = vadd.f32 %v8740_v53, %v13376_v6  ;;  %v13466_v30 = vadd.f32 %v8793_v43, %v13380_v57 }
0x154c   :  { %11267 = vtanh.f32 %v8866_v13  ;;  %v8822_v39 = vmul.f32 %v8806_v63, %v13447_v48  ;;  %v8807_v49 = vmul.f32 %v13455_v50, %v13455_v50  ;;  %v8809_v15 = vmul.f32 %v13458_v24, %v13458_v24 }
0x154d   :  { %11269 = vtanh.f32 %v8868_v44  ;;  %v8824_v47 = vmul.f32 %v8808_v17, %v13450_v62  ;;  %v8810_v19 = vmul.f32 %v13463_v45, %v13463_v45  ;;  %v8812_v6 = vmul.f32 %v13466_v30, %v13466_v30 }
0x154e   :  { %11271 = vtanh.f32 %v8867_v16  ;;  %v8838_v57 = vmul.f32 0.044715, %v8822_v39  ;;  %v8823_v29 = vmul.f32 %v8807_v49, %v13455_v50  ;;  %v8825_v38 = vmul.f32 %v8809_v15, %v13458_v24 }
0x154f   :  { %11273 = vtanh.f32 %v8869_v61  ;;  %v8840_v31 = vmul.f32 0.044715, %v8824_v47  ;;  %v8826_v34 = vmul.f32 %v8810_v19, %v13463_v45  ;;  %v8828_v52 = vmul.f32 %v8812_v6, %v13466_v30 }
0x1550   :  { %v8854_v5 = vadd.f32 %v8838_v57, %v13447_v48  ;;  %v8839_v25 = vmul.f32 0.044715, %v8823_v29  ;;  %v8841_v54 = vmul.f32 0.044715, %v8825_v38  ;;  %v13484_v12 = vadd.f32 %v8742_v1, %v13384_v27 }
0x1551   :  { %v8856_v22 = vadd.f32 %v8840_v31, %v13450_v62  ;;  %v8842_v3 = vmul.f32 0.044715, %v8826_v34  ;;  %v8844_v23 = vmul.f32 0.044715, %v8828_v52  ;;  %v13488_v59 = vadd.f32 %v8795_v55, %v13388_v8 }
0x1552   :  { %v11260_v9 = vpop.eup %11259  ;;  %v8870_v26 = vmul.f32 0.7978846, %v8854_v5  ;;  %v8855_v46 = vadd.f32 %v8839_v25, %v13455_v50  ;;  %v8857_v51 = vadd.f32 %v8841_v54, %v13458_v24  ;;  %v8811_v53 = vmul.f32 %v13484_v12, %v13484_v12 }
0x1553   :  { %v11262_v43 = vpop.eup %11261  ;;  %v8894_v32 = vadd.f32 1.0, %v11260_v9  ;;  %v8872_v27 = vmul.f32 0.7978846, %v8856_v22  ;;  %v8858_v35 = vadd.f32 %v8842_v3, %v13463_v45  ;;  %v8860_v42 = vadd.f32 %v8844_v23, %v13466_v30 }
0x1554   :  { %v11264_v18 = vpop.eup %11263  ;;  %v8896_v1 = vadd.f32 1.0, %v11262_v43  ;;  %11275 = vtanh.f32 %v8870_v26  ;;  %v8871_v8 = vmul.f32 0.7978846, %v8855_v46  ;;  %v8873_v55 = vmul.f32 0.7978846, %v8857_v51 }
0x1555   :  { %v11266_v37 = vpop.eup %11265  ;;  %v8910_v41 = vmul.f32 0.5, %v8894_v32  ;;  %11277 = vtanh.f32 %v8872_v27  ;;  %v8874_v56 = vmul.f32 0.7978846, %v8858_v35  ;;  %v8876_v4 = vmul.f32 0.7978846, %v8860_v42 }
0x1556   :  { %v11268_v13 = vpop.eup %11267  ;;  %v8912_v44 = vmul.f32 0.5, %v8896_v1  ;;  %11279 = vtanh.f32 %v8871_v8  ;;  %v8827_v16 = vmul.f32 %v8811_v53, %v13484_v12  ;;  %v8813_v61 = vmul.f32 %v13488_v59, %v13488_v59 }
0x1557   :  { %v11270_v63 = vpop.eup %11269  ;;  %v8926_v17 = vmul.f32 %v8910_v41, %v13391_v11  ;;  %v8898_v39 = vadd.f32 1.0, %v11268_v13  ;;  %11281 = vtanh.f32 %v8873_v55  ;;  %v8895_v49 = vadd.f32 1.0, %v11264_v18 }
0x1558   :  { %v11272_v15 = vpop.eup %11271  ;;  %v8928_v47 = vmul.f32 %v8912_v44, %v13394_v21  ;;  %v8900_v19 = vadd.f32 1.0, %v11270_v63  ;;  %11283 = vtanh.f32 %v8874_v56  ;;  %v8843_v6 = vmul.f32 0.044715, %v8827_v16 }
0x1559   :  { %v11274_v57 = vpop.eup %11273  ;;  %v8914_v29 = vmul.f32 0.5, %v8898_v39  ;;  %11285 = vtanh.f32 %v8876_v4  ;;  %v8829_v38 = vmul.f32 %v8813_v61, %v13488_v59  ;;  %v8899_v31 = vadd.f32 1.0, %v11272_v15 }
0x155a   :  { %v8916_v34 = vmul.f32 0.5, %v8900_v19  ;;  %v8859_v52 = vadd.f32 %v8843_v6, %v13484_v12  ;;  %v8911_v5 = vmul.f32 0.5, %v8895_v49  ;;  %v8897_v11 = vadd.f32 1.0, %v11266_v37 }
0x155b   :  { %v8930_v25 = vmul.f32 %v8914_v29, %v13407_v33  ;;  %v8845_v54 = vmul.f32 0.044715, %v8829_v38  ;;  %v8915_v22 = vmul.f32 0.5, %v8899_v31  ;;  %v8901_v3 = vadd.f32 1.0, %v11274_v57 }
0x155c   :  { %v8932_v21 = vmul.f32 %v8916_v34, %v13410_v14  ;;  %v8875_v23 = vmul.f32 0.7978846, %v8859_v52  ;;  %v8927_v9 = vmul.f32 %v8911_v5, %v13397_v7  ;;  %v8913_v26 = vmul.f32 0.5, %v8897_v11 }
0x155d   :  { %v8942_v46 = vpack.c.bf16 %v8930_v25, %v8926_v17  ;;  %v8861_v51 = vadd.f32 %v8845_v54, %v13488_v59  ;;  %v8931_v53 = vmul.f32 %v8915_v22, %v13417_v10  ;;  %v8917_v43 = vmul.f32 0.5, %v8901_v3  ;;  %v11146_v25 = vld [vmem:[#allocation11] sm:$0xff]   ;;  %v11150_v54 = vld [vmem:[#allocation11 + $0x10] sm:$0xff]   ;;  %v11153_v22 = vld [vmem:[#allocation12 + $0x18] sm:$0xff]  }
0x155e   :  { %v11276_v32 = vpop.eup %11275  ;;  %v8944_v27 = vpack.c.bf16 %v8932_v21, %v8928_v47  ;;  %11287 = vtanh.f32 %v8875_v23  ;;  %v8929_v33 = vmul.f32 %v8913_v26, %v13400_v36  ;;  %v11152_v3 = vld [vmem:[#allocation11 + $0x18] sm:$0xff]   ;;  %v11155_v21 = vld [vmem:[#allocation12 + $0x20] sm:$0xff]   ;;  %v11156_v26 = vld [vmem:[#allocation11 + $0x28] sm:$0xff]  }
0x155f   :  { %v11278_v35 = vpop.eup %11277  ;;  %v8877_v42 = vmul.f32 0.7978846, %v8861_v51  ;;  %v8943_v18 = vpack.c.bf16 %v8931_v53, %v8927_v9  ;;  %v8933_v14 = vmul.f32 %v8917_v43, %v13420_v40  ;;  %v8902_v1 = vadd.f32 1.0, %v11276_v32  ;;  %v11154_v23 = vld [vmem:[#allocation11 + $0x20] sm:$0xff]   ;;  %v11157_v9 = vld [vmem:[#allocation12 + $0x28] sm:$0xff]   ;;  %v11158_v51 = vld [vmem:[#allocation11 + $0x30] sm:$0xff]  }
0x1560   :  { %v11280_v8 = vpop.eup %11279  ;;  %v8904_v7 = vadd.f32 1.0, %v11278_v35  ;;  %v11161_v53 = vld [vmem:[#allocation12 + $0x38] sm:$0xff]  }
0x1561   :  { %v11282_v55 = vpop.eup %11281  ;;  %11289 = vtanh.f32 %v8877_v42  ;;  %9245 = vmatprep.mubr.bf16.mxu1 %v8943_v18  ;;  %v8945_v37 = vpack.c.bf16 %v8933_v14, %v8929_v33  ;;  %v8918_v4 = vmul.f32 0.5, %v8902_v1  ;;  %v8903_v44 = vadd.f32 1.0, %v11280_v8  ;;  %v11160_v43 = vld [vmem:[#allocation11 + $0x38] sm:$0xff]  }
0x1562   :  { %v11284_v41 = vpop.eup %11283  ;;  %9246 = vmatmul.mubr.bf16.vlgmr.msra.gmra.mrb[76].mxu1 %v8942_v46  ;;  %v8920_v13 = vmul.f32 0.5, %v8904_v7  ;;  %v8905_v39 = vadd.f32 1.0, %v11282_v55  ;;  %v11159_v46 = vld [vmem:[#allocation12 + $0x30] sm:$0xff]  }
0x1563   :  { %v11286_v10 = vpop.eup %11285  ;;  %9294 = vmatprep.mubr.bf16.mxu0 %v8945_v37  ;;  %v8906_v56 = vadd.f32 1.0, %v11284_v41  ;;  %v8934_v40 = vmul.f32 %v8918_v4, %v13447_v48  ;;  %v8919_v19 = vmul.f32 0.5, %v8903_v44  ;;  %10794 = vmatpush3.bf16.msra.mxu1 %v11146_v25 }
0x1564   :  { %9295 = vmatmul.mubr.bf16.vlgmr.msra.gmra.mrb[48].mxu0 %v8944_v27  ;;  %v8908_v36 = vadd.f32 1.0, %v11286_v10  ;;  %v8936_v49 = vmul.f32 %v8920_v13, %v13450_v62  ;;  %v8921_v34 = vmul.f32 0.5, %v8905_v39  ;;  %10795 = vmatprep.subr.bf16.mxu1 %v11797_v0  ;;  %v13537_v27 = vld [vmem:[%s11995_s29] ss:$0 sm:$0xff]  ;;  %s13661_s29 = sld [smem:[#allocation48_spill]] }
0x1565   :  { %v8922_v16 = vmul.f32 0.5, %v8906_v56  ;;  %v8935_v52 = vmul.f32 %v8919_v19, %v13455_v50  ;;  %v11147_v50 = vld [vmem:[#allocation12] sm:$0xff]  }
0x1566   :  { %v8924_v61 = vmul.f32 0.5, %v8908_v36  ;;  %v8937_v11 = vmul.f32 %v8921_v34, %v13458_v24  ;;  %10814 = vmatpush3.bf16.msra.mxu0 %v11147_v50  ;;  %v11149_v24 = vld [vmem:[#allocation12 + $0x8] sm:$0xff]  }
0x1567   :  { %v8938_v63 = vmul.f32 %v8922_v16, %v13463_v45  ;;  %10815 = vmatprep.subr.bf16.mxu0 %v11797_v0 }
0x1568   :  { %v11288_v17 = vpop.eup %11287  ;;  %v8940_v15 = vmul.f32 %v8924_v61, %v13466_v30 }
0x1569   :  { %v8907_v47 = vadd.f32 1.0, %v11288_v17  ;;  %v8946_v6 = vpack.c.bf16 %v8938_v63, %v8934_v40 }
0x156a   :  { %v8948_v57 = vpack.c.bf16 %v8940_v15, %v8936_v49  ;;  %10816 = vmatpush3.bf16.msra.mxu0 %v11149_v24 }
0x156b   :  { %v11290_v29 = vpop.eup %11289  ;;  %v8923_v38 = vmul.f32 0.5, %v8907_v47  ;;  %10817 = vmatprep.subr.bf16.mxu0 %v11797_v0 }
0x156c   :  { %v8909_v31 = vadd.f32 1.0, %v11290_v29 }
0x156d   :  { %v8939_v48 = vmul.f32 %v8923_v38, %v13484_v12  ;;  %v11148_v12 = vld [vmem:[#allocation11 + $0x8] sm:$0xff]  }
0x156e   :  { %v8925_v5 = vmul.f32 0.5, %v8909_v31  ;;  %10796 = vmatpush3.bf16.msra.mxu1 %v11148_v12 }
0x156f   :  { %v8947_v45 = vpack.c.bf16 %v8939_v48, %v8935_v52  ;;  %10797 = vmatprep.subr.bf16.mxu1 %v11797_v0 }
0x1570   :  { %v8941_v62 = vmul.f32 %v8925_v5, %v13488_v59  ;;  %v11151_v59 = vld [vmem:[#allocation12 + $0x10] sm:$0xff]  }
0x1571   :  { %9253 = vmatprep.mubr.bf16.mxu1 %v8947_v45  ;;  %10818 = vmatpush3.bf16.msra.mxu0 %v11151_v59 }
0x1572   :  { %v8949_v30 = vpack.c.bf16 %v8941_v62, %v8937_v11  ;;  %9254 = vmatmul.mubr.bf16.gmra.mrb[80].mxu1 %v8946_v6  ;;  %10819 = vmatprep.subr.bf16.mxu0 %v11797_v0 }
0x1573   :  { %10809 = vmatprep.mubr.msk.bf16.mxu1 %vm11798_vm0, %v11797_v0  ;;  %10798 = vmatpush3.bf16.msra.mxu1 %v11150_v54 }
0x1574   :  { %9302 = vmatprep.mubr.bf16.mxu0 %v8949_v30  ;;  %10799 = vmatprep.subr.bf16.mxu1 %v11797_v0 }
0x1575   :  { %9303 = vmatmul.mubr.bf16.gmra.mrb[52].mxu0 %v8948_v57 }
0x1576   :  { %10829 = vmatprep.mubr.msk.bf16.mxu0 %vm11798_vm0, %v11797_v0  ;;  %10820 = vmatpush3.bf16.msra.mxu0 %v11153_v22 }
0x1577   :  { %10800 = vmatpush3.bf16.msra.mxu1 %v11152_v3  ;;  %10821 = vmatprep.subr.bf16.mxu0 %v11797_v0 }
0x1578   :  { %10801 = vmatprep.subr.bf16.mxu1 %v11797_v0 }
0x157a   :  { %10822 = vmatpush3.bf16.msra.mxu0 %v11155_v21 }
0x157b   :  { %10802 = vmatpush3.bf16.msra.mxu1 %v11154_v23  ;;  %10823 = vmatprep.subr.bf16.mxu0 %v11797_v0 }
0x157c   :  { %10803 = vmatprep.subr.bf16.mxu1 %v11797_v0 }
0x157e   :  { %10824 = vmatpush3.bf16.msra.mxu0 %v11157_v9 }
0x157f   :  { %10804 = vmatpush3.bf16.msra.mxu1 %v11156_v26  ;;  %10825 = vmatprep.subr.bf16.mxu0 %v11797_v0 }
0x1580   :  { %10805 = vmatprep.subr.bf16.mxu1 %v11797_v0 }
0x1582   :  { %10826 = vmatpush3.bf16.msra.mxu0 %v11159_v46 }
0x1583   :  { %10806 = vmatpush3.bf16.msra.mxu1 %v11158_v51  ;;  %10827 = vmatprep.subr.bf16.mxu0 %v11797_v0 }
0x1584   :  { %10807 = vmatprep.subr.bf16.mxu1 %v11797_v0 }
0x1586   :  { %10828 = vmatpush3.bf16.msra.mxu0 %v11161_v53 }
0x1587   :  { %10808 = vmatpush3.bf16.msra.mxu1 %v11160_v43 }
0x1635   :  { %v10481_v32 = vpop.f32.mrb[76].mxu1 }
0x1636   :  { %v10482_v33 = vpop.f32.mrb[77].mxu1 }
0x1637   :  { %v10509_v35 = vpop.f32.mrb[48].mxu0  ;;  %v10483_v42 = vadd.f32 %v10482_v33, %v10481_v32  ;;  %v10484_v18 = vpop.f32.mrb[78].mxu1 }
0x1638   :  { %v10510_v14 = vpop.f32.mrb[49].mxu0  ;;  %v10485_v1 = vpop.f32.mrb[79].mxu1 }
0x1639   :  { %v9248_v8 = vadd.f32 %v10483_v42, %v13537_v27  ;;  %v10511_v7 = vadd.f32 %v10510_v14, %v10509_v35  ;;  %v10512_v55 = vpop.f32.mrb[50].mxu0  ;;  %v10486_v37 = vadd.f32 %v10485_v1, %v10484_v18 }
0x163a   :  { %v10513_v41 = vpop.f32.mrb[51].mxu0 }
0x163b   :  { %v9297_v10 = vadd.f32 %v10511_v7, %v9248_v8  ;;  %v9251_v0 = vadd.f32 %v10486_v37, %v13537_v27  ;;  %v10514_v56 = vadd.f32 %v10513_v41, %v10512_v55 }
0x163d   :  { %v9315_v4 = vcombine.high %v9297_v10, %v9297_v10  ;;  %v9322_v36 = vrot.slane %v9297_v10, %v12193_v60  ;;  %v9300_v13 = vadd.f32 %v10514_v56, %v9251_v0 }
0x163f   :  { %v9329_v44 = vrot.slane %v9315_v4, %v12193_v60  ;;  %v9330_v16 = vcombine.high %v9322_v36, %v9322_v36  ;;  %v9364_v61 = vcombine.high %v9300_v13, %v9300_v13  ;;  %v9371_v40 = vrot.slane %v9300_v13, %v12193_v60 }
0x1640   :  { %v9338_v17 = vrot.slane %v9322_v36, %v12193_v60 }
0x1641   :  { %v9331_v63 = vcombine.high %v9329_v44, %v9329_v44  ;;  %v9352_v39 = vrot.slane %v9330_v16, %v12193_v60  ;;  %v9378_v49 = vrot.slane %v9364_v61, %v12193_v60  ;;  %v9379_v15 = vcombine.high %v9371_v40, %v9371_v40 }
0x1642   :  { %v9345_v47 = vrot.slane %v9329_v44, %v12193_v60  ;;  %v9387_v29 = vrot.slane %v9371_v40, %v12193_v60 }
0x1643   :  { %v9359_v19 = vrot.slane %v9331_v63, %v12193_v60  ;;  %v9484_v6 = vcombine.low %v9338_v17, %v9352_v39  ;;  %v10272_v57 = vcombine.high %v9338_v17, %v9352_v39  ;;  %v9394_v38 = vrot.slane %v9378_v49, %v12193_v60 }
0x1644   :  { %v9401_v31 = vrot.slane %v9379_v15, %v12193_v60  ;;  %v9380_v12 = vcombine.high %v9378_v49, %v9378_v49 }
0x1645   :  { %v9486_v34 = vcombine.low %v9345_v47, %v9359_v19  ;;  %v10273_v52 = vcombine.high %v9345_v47, %v9359_v19  ;;  %v9494_v48 = vrot.slane %v9484_v6, %v12193_v60  ;;  %v9501_v5 = vrot.slane %v10272_v57, %v12193_v60  ;;  %v10487_v45 = vpop.f32.mrb[80].mxu1 }
0x1646   :  { %v9533_v11 = vcombine.low %v9387_v29, %v9401_v31  ;;  %v10274_v62 = vcombine.high %v9387_v29, %v9401_v31  ;;  %v10488_v30 = vpop.f32.mrb[81].mxu1  ;;  %v9555_v3 = vrot.slane %v9394_v38, %v12193_v60  ;;  %v9408_v42 = vrot.slane %v9380_v12, %v12193_v60 }
0x1647   :  { %v9508_v50 = vrot.slane %v9486_v34, %v12193_v60  ;;  %v9515_v25 = vrot.slane %v10273_v52, %v12193_v60  ;;  %v9516_v24 = vcombine.low %v9494_v48, %v9501_v5  ;;  %v10490_v59 = vpop.f32.mrb[82].mxu1  ;;  %v10489_v23 = vadd.f32 %v10488_v30, %v10487_v45 }
0x1648   :  { %v9541_v54 = vrot.slane %v9533_v11, %v12193_v60  ;;  %v9548_v22 = vrot.slane %v10274_v62, %v12193_v60  ;;  %v10515_v21 = vpop.f32.mrb[52].mxu0  ;;  %v10491_v9 = vpop.f32.mrb[83].mxu1  ;;  %v9570_v8 = vrot.slane %v9555_v3, %v12193_v60  ;;  %v9410_v41 = vcombine.high %v9394_v38, %v9394_v38 }
0x1649   :  { %v9517_v26 = vcombine.low %v9508_v50, %v9515_v25  ;;  %v10516_v46 = vpop.f32.mrb[53].mxu0  ;;  %v9256_v53 = vadd.f32 %v10489_v23, %v13537_v27  ;;  %v9524_v33 = vrot.slane %v9516_v24, %v12193_v60  ;;  %v10492_v18 = vadd.f32 %v10491_v9, %v10490_v59 }
0x164a   :  { %v9556_v51 = vcombine.low %v9541_v54, %v9548_v22  ;;  %v10517_v43 = vadd.f32 %v10516_v46, %v10515_v21  ;;  %v10518_v32 = vpop.f32.mrb[54].mxu0  ;;  %v9412_v13 = vcombine.high %v9408_v42, %v9408_v42  ;;  %v9572_v17 = vcombine.low %v9408_v42, %v9410_v41  ;;  %v10284_v42 = vld [vmem:[%s13661_s29] ss:$0 sm:$0xff] }
0x164b   :  { %v9531_v35 = vrot.slane %v9517_v26, %v12193_v60  ;;  %v10519_v14 = vpop.f32.mrb[55].mxu0  ;;  %v9259_v10 = vadd.f32 %v10492_v18, %v13537_v27  ;;  %v10275_v18 = vld [vmem:[%s13662_s2] ss:$0 sm:$0xff] }
0x164c   :  { %v9563_v1 = vrot.slane %v9556_v51, %v12193_v60  ;;  %v9305_v7 = vadd.f32 %v10517_v43, %v9256_v53  ;;  %v10520_v55 = vadd.f32 %v10519_v14, %v10518_v32  ;;  %v9582_v38 = vrot.slane %v9572_v17, %v12193_v60 }
0x164d   :  { %v9532_v37 = vcombine.low %v9524_v33, %v9531_v35 }
0x164e   :  { %v9571_v0 = vcombine.low %v9563_v1, %v9570_v8  ;;  %v9413_v56 = vcombine.high %v9305_v7, %v9305_v7  ;;  %v9420_v4 = vrot.slane %v9305_v7, %v12193_v60  ;;  %v9308_v44 = vadd.f32 %v10520_v55, %v9259_v10 }
0x164f   :  { %v9664_v36 = vadd.f32 %v9532_v37, %v13276_v28 }
0x1650   :  { %v9665_v16 = vadd.f32 %v9571_v0, %v13287_v2  ;;  %v9427_v61 = vrot.slane %v9413_v56, %v12193_v60  ;;  %v9428_v40 = vcombine.high %v9420_v4, %v9420_v4  ;;  %v9436_v63 = vrot.slane %v9420_v4, %v12193_v60 }
0x1651   :  { %9668 = vst [vmem:[%s12000_s8] sm:$0xff] %v9664_v36  ;;  %9672 = vst [vmem:[#allocation2] sm:$0xff] %v9664_v36  ;;  %v9468_v27 = vrot.slane %v9308_v44, %v12193_v60 }
0x1652   :  { %9669 = vst [vmem:[%s12000_s8 + $0x8] sm:$0x1f] %v9665_v16  ;;  %9673 = vst [vmem:[#allocation2 + $0x8] sm:$0x1f] %v9665_v16  ;;  %v9429_v39 = vcombine.high %v9427_v61, %v9427_v61  ;;  %v9443_v49 = vrot.slane %v9427_v61, %v12193_v60  ;;  %v9450_v28 = vrot.slane %v9428_v40, %v12193_v60 }
0x1653   :  { %v9458_v15 = vcombine.high %v9436_v63, %v9436_v63  ;;  %v9573_v47 = vcombine.low %v9412_v13, %v9436_v63  ;;  %v9469_v2 = vcombine.high %v9468_v27, %v9468_v27  ;;  %v9476_v34 = vrot.slane %v9468_v27, %v12193_v60 }
0x1654   :  { %v9457_v19 = vrot.slane %v9429_v39, %v12193_v60  ;;  %v9459_v6 = vcombine.high %v9443_v49, %v9443_v49  ;;  %v9460_v57 = vcombine.high %v9450_v28, %v9450_v28 }
0x1655   :  { %v9574_v29 = vcombine.low %v9450_v28, %v9458_v15  ;;  %v9589_v31 = vrot.slane %v9573_v47, %v12193_v60  ;;  %v9483_v45 = vrot.slane %v9469_v2, %v12193_v60 }
0x1656   :  { %v9575_v52 = vcombine.low %v9460_v57, %v9443_v49  ;;  %v9621_v48 = vcombine.low %v9457_v19, %v9459_v6  ;;  %v9461_v5 = vcombine.high %v9457_v19, %v9457_v19 }
0x1657   :  { %v9604_v11 = vcombine.low %v9582_v38, %v9589_v31  ;;  %v9596_v62 = vrot.slane %v9574_v29, %v12193_v60  ;;  %v9643_v59 = vrot.slane %v9483_v45, %v12193_v60 }
0x1658   :  { %v9603_v30 = vrot.slane %v9575_v52, %v12193_v60  ;;  %v9622_v50 = vcombine.low %v9461_v5, %v9476_v34  ;;  %v9629_v24 = vrot.slane %v9621_v48, %v12193_v60 }
0x1659   :  { %v9612_v54 = vrot.slane %v9604_v11, %v12193_v60  ;;  %v9658_v9 = vrot.slane %v9643_v59, %v12193_v60  ;;  %v9676_v43 = vld [vmem:[#allocation2 + $0x1] sm:$0xff] }
0x165a   :  { %v9605_v25 = vcombine.low %v9596_v62, %v9603_v30  ;;  %v9636_v12 = vrot.slane %v9622_v50, %v12193_v60 }
0x165c   :  { %v9619_v22 = vrot.slane %v9605_v25, %v12193_v60  ;;  %v9644_v3 = vcombine.low %v9629_v24, %v9636_v12 }
0x165e   :  { %v9620_v21 = vcombine.low %v9612_v54, %v9619_v22  ;;  %v9651_v23 = vrot.slane %v9644_v3, %v12193_v60 }
0x1660   :  { %v9666_v26 = vadd.f32 %v9620_v21, %v13295_v20  ;;  %v9659_v46 = vcombine.low %v9651_v23, %v9658_v9 }
0x1662   :  { %9670 = vst [vmem:[%s12000_s8 + $0x10] sm:$0xff] %v9666_v26  ;;  %9674 = vst [vmem:[#allocation2 + $0x10] sm:$0xff] %v9666_v26  ;;  %v9667_v51 = vadd.f32 %v9659_v46, %v13292_v58 }
0x1664   :  { %9671 = vst [vmem:[%s12000_s8 + $0x18] sm:$0x1f] %v9667_v51  ;;  %9675 = vst [vmem:[#allocation2 + $0x18] sm:$0x1f] %v9667_v51  ;;  %s11669_s8 = scalar_lea.vmem %s9936_s9, 128 }
0x1665   :  { %p11670_p10 = scmp.ne.s32.totalorder %s9936_s9, %s11669_s8  ;;  %p11675_p12 = scmp.lt.s32.totalorder %s11669_s8, %s11669_s8 }
0x1667   :  { %p11676_p13 = por %p11675_p12, %p11674_p11 }
0x1669   :  { %v11162_v53 = vld [vmem:[#allocation2 + $0x1] ss:$16 sps:$4 sm:$0xff]   ;;  %p11677_p0 = pnand %p11676_p13, %p11670_p10 }
0x166a   :  { %v9799_v33 = vpack.c.bf16 %v11162_v53, %v11162_v53 }
0x166b   :  { %v9677_v32 = vld [vmem:[#allocation2 + $0x11] sm:$0xff] }
0x166c   :  { %v9678_v35 = vpack.c.bf16 %v9677_v32, %v9676_v43  ;;  %10830 = vmatmul.mubr.bf16.vlgmr.msra.gmra.mrb[56].mxu0 %v9799_v33 }
0x166e   :  { %10810 = vmatmul.mubr.bf16.vlgmr.msra.gmra.mrb[84].mxu1 %v9678_v35 }
0x173f   :  { %v9905_v60 = vpop.f32.mrb[56].mxu0 }
0x1740   :  { %v9906_v14 = vadd.f32 %v10284_v42, %v9905_v60  ;;  %v10831_v1 = vpop.f32.mrb[57].mxu0 }
0x1741   :  { %v9784_v20 = vpop.f32.mrb[84].mxu1  ;;  %v9908_v7 = vpop.f32.mrb[58].mxu0 }
0x1742   :  { %v9785_v58 = vadd.f32 %v10275_v18, %v9784_v20  ;;  %v10811_v8 = vpop.f32.mrb[85].mxu1  ;;  %v9912_v55 = vcombine.high %v9906_v14, %v9906_v14  ;;  %9914 = vst [vmem:[#allocation31] sm:$0xf] %v9906_v14  ;;  %v10832_v41 = vpop.f32.mrb[59].mxu0 }
0x1743   :  { %v9787_v37 = vpop.f32.mrb[86].mxu1 }
0x1744   :  { %9791 = vst [vmem:[#allocation30] sm:$0xff] %v9785_v58  ;;  %v9788_v10 = vadd.f32 %v10275_v18, %v9787_v37  ;;  %v10812_v0 = vpop.f32.mrb[87].mxu1  ;;  %9915 = vst [vmem:[#allocation31 + $0x4] sm:$0xf] %v9912_v55 }
0x1746   :  { %9792 = vst [vmem:[#allocation30 + $0x8] sm:$0xff] %v9788_v10 }
0x1747   :  { %11680 = shalt.err (!%p11677_p0)
}
0x1748   :  { %s11681_s18 = scalar_lea.hbm %s12010_s24, 128 }
0x1749   :  { %p11682_p1 = scmp.ne.s32.totalorder %s12010_s24, %s11681_s18  ;;  %p11685_p2 = scmp.lt.u32.totalorder %s11681_s18, %s12010_s24 }
0x174b   :  { %p11687_p3 = pnand %p11685_p2, %p11682_p1 }
0x174d   :  { %11690 = shalt.err (!%p11687_p3)
}
0x174e   :  { %9941 = dma.vmem_to_hbm [thread:$0]  %s9936_s9, 128, %s12010_s24, [#allocation32], %s11775_s28, %s11775_s28, %s11776_s1  }
0x174f   :  { %s11691_s17 = scalar_lea.vmem %s13596_s5, 256  ;;  %p11696_p5 = scmp.lt.s32.totalorder %s13596_s5, %s13596_s5 }
0x1750   :  { %p11692_p4 = scmp.ne.s32.totalorder %s13596_s5, %s11691_s17  ;;  %p11697_p6 = scmp.lt.s32.totalorder %s11691_s17, %s11691_s17 }
0x1752   :  { %p11698_p7 = por %p11697_p6, %p11696_p5 }
0x1754   :  { %p11699_p8 = pnand %p11698_p7, %p11692_p4 }
0x1756   :  { %11702 = shalt.err (!%p11699_p8)
}
0x1757   :  { %s11703_s19 = scalar_lea.hbm %s12005_s30, 256 }
0x1758   :  { %p11704_p9 = scmp.ne.s32.totalorder %s12005_s30, %s11703_s19  ;;  %p11707_p10 = scmp.lt.u32.totalorder %s11703_s19, %s12005_s30 }
0x175a   :  { %p11709_p11 = pnand %p11707_p10, %p11704_p9 }
0x175c   :  { %11712 = shalt.err (!%p11709_p11)
}
0x175d   :  { %s11805_s25 = smov 128   ;;  %s11806_s24 = smov 8  }
0x175e   :  { %9929 = dma.vmem_to_hbm [thread:$0]  %s13596_s5, 256, %s12005_s30, [#allocation5], %s11805_s25, %s11805_s25, %s11806_s24  }
0x175f   :  { %11731 = dma.done.wait [#allocation5], 256  }
0x1760   :  { %11732 = vsyncadd [#allocation5], 4294967040 }
0x1761   :  { %11733 = dma.done.wait [#allocation32], 128  }
0x1762   :  { %11734 = vsyncadd [#allocation32], 4294967168 }
0x1763   :  { %9950 = vsyncpa [#allocation4], 1 }
0x1764   :  { %9951 = vsyncpa [#allocation7], 1 }
0x1765   :  { %9952 = vsyncpa [#allocation10], 1 }
0x1766   :  { %9953 = vsyncpa [#allocation13], 1 }
0x1767   :  { %9954 = vsyncpa [#allocation16], 1 }
0x1768   :  { %9955 = vsyncpa [#allocation19], 1 }
0x1769   :  { %9956 = vsyncpa [#allocation22], 1 }
0x176a   :  { %9957 = vsyncpa [#allocation25], 1 }
0x176b   :  { %9958 = vsyncpa [#allocation28], 1 }
0x176c   :  { %9959 = vsyncpa [#allocation5], 1 }
0x176d   :  { %9960 = vsyncpa [#allocation32], 1 }

</bundles_post_ra>
